<compile_context>
chip_gen: v7x
topology: tpu7x:2x2x1
jax: 0.10.0
libtpu: 0.0.40
codegen_flags: <defaults>
</compile_context>

<pallas_src>
import functools

import jax
import jax.numpy as jnp
from jax import lax
from jax.experimental import pallas as pl
from jax.experimental.pallas import tpu as pltpu

# TODO(synk): normalize()/denormalize() are not defined in the reference snippet;
# using the standard WDSR/EDSR DIV2K mean-subtraction convention (std == 1).
RGB_MEAN = jnp.array([0.4488, 0.4371, 0.4040], jnp.float32)
RGB_STD = jnp.array([1.0, 1.0, 1.0], jnp.float32)

VMEM_LIMIT = 48 * 1024 * 1024   # scoped-VMEM budget (headroom below v7x's 64 MiB)


def _pick_row_chunk(H, W, target_px=4096):
    """Largest divisor of H whose row group is ~target_px pixels."""
    rc = max(1, min(H, target_px // max(1, W)))
    while H % rc:
        rc -= 1
    return rc


def _taps_per_group(cin, n_taps, target_k=256):
    """Taps to concatenate per MXU matmul so the contraction depth is ~target_k."""
    return max(1, min(n_taps, target_k // max(1, cin)))


def _mish_exp_dtype():
    """bf16 EUP exists on v6e/v7x; keep f32 on v5e and older (no bf16 EUP/VPU)."""
    try:
        kind = jax.devices()[0].device_kind.lower()
    except Exception:
        return jnp.float32
    if ("v6" in kind) or ("v7" in kind) or ("7x" in kind):
        return jnp.bfloat16
    return jnp.float32


# ----------------------------------------------------------------------------
# In-kernel helpers
# ----------------------------------------------------------------------------
def _mish(x, exp_dtype):
    """Mish(x) = x * tanh(softplus(x)) with a single exp (EUP):
    tanh(log1p(e^x)) = ((1+e^x)^2 - 1) / ((1+e^x)^2 + 1).   x is f32.
    TODO(synk): approx reciprocal / single-exp identity will not bit-match torch."""
    t = jnp.exp(jnp.minimum(x, 20.0).astype(exp_dtype)).astype(jnp.float32)
    n = (1.0 + t) * (1.0 + t)
    ratio = (n - 1.0) * pl.reciprocal(n + 1.0, approx=True)
    # PyTorch softplus threshold=20: softplus(x)=x, tanh(x)~=1 for x>20.
    ratio = jnp.where(x > 20.0, 1.0, ratio)
    return x * ratio


def _conv_taps_grouped(xpad, w, H, W, KH, KW, cin, taps_per_group):
    """Cross-correlation as grouped tap-concatenated MXU matmuls (f32 accumulation).

    xpad: (H+KH-1, W+KW-1, cin) bf16 value, already zero-padded spatially.
    w   : (KH*KW*cin, Cout) bf16 value, rows ordered (kh*KW + kw)*cin + ci.
    Returns (H*W, Cout) f32.
    """
    n_taps = KH * KW
    acc = None
    for g0 in range(0, n_taps, taps_per_group):
        g1 = min(g0 + taps_per_group, n_taps)
        parts = []
        for t in range(g0, g1):
            kh, kw = divmod(t, KW)
            parts.append(xpad[kh:kh + H, kw:kw + W, :].reshape(H * W, cin))
        xg = parts[0] if len(parts) == 1 else jnp.concatenate(parts, axis=-1)
        p = jnp.dot(xg, w[g0 * cin:g1 * cin, :], preferred_element_type=jnp.float32)
        acc = p if acc is None else acc + p
    return acc


# ----------------------------------------------------------------------------
# Pallas kernels
# ----------------------------------------------------------------------------
def _head_kernel(x_ref, w_ref, b_ref, o_ref, *, H, W):
    """3x3 head conv as one matmul on the glue-built 27-channel tap-concat input."""
    x = x_ref[0].reshape(H * W, x_ref.shape[-1])
    acc = jnp.dot(x, w_ref[...], preferred_element_type=jnp.float32) + b_ref[...]
    o_ref[...] = acc.reshape(1, H, W, o_ref.shape[-1]).astype(o_ref.dtype)


def _blocks_kernel(h0_ref, w1_ref, b1_ref, w2_ref, b2_ref, w3_ref, b3_ref,
                   o_ref, pad_scr, *, H, W, row_chunk, taps_per_group, exp_dtype):
    """All WDSR_B blocks fused: grid axis 1 walks the blocks while the activation
    stays resident in the VMEM output block (constant out index along that axis).
    WDSR_B.forward returns only the conv chain (no in-block skip connection)."""
    blk = pl.program_id(1)
    C = o_ref.shape[-1]
    c_lin = w2_ref.shape[-1]
    n_chunks = H // row_chunk

    @pl.when(blk == 0)
    def _():
        # Seed the resident activation with the head output and zero the conv3
        # halo scratch once per image; the interior is fully rewritten each block,
        # so the zero border persists across the block loop (and across batches).
        o_ref[...] = h0_ref[...]
        pad_scr[...] = jnp.zeros(pad_scr.shape, pad_scr.dtype)

    w1, b1 = w1_ref[0], b1_ref[0]
    w2, b2 = w2_ref[0], b2_ref[0]
    w3, b3 = w3_ref[0], b3_ref[0]

    # Stage 1: 1x1 conv -> Mish -> 1x1 conv, row-chunked so the f32 (px, 6*channels)
    # live range stays small; results land in the pad-scratch interior.
    def stage1(ci, carry):
        r0 = pl.multiple_of(ci * row_chunk, row_chunk)
        xc = o_ref[0, pl.ds(r0, row_chunk), :, :].reshape(row_chunk * W, C)
        r = jnp.dot(xc, w1, preferred_element_type=jnp.float32) + b1
        r = _mish(r, exp_dtype)
        r = jnp.dot(r.astype(w2.dtype), w2, preferred_element_type=jnp.float32) + b2
        pad_scr[pl.ds(r0 + 1, row_chunk), 1:W + 1, :] = (
            r.reshape(row_chunk, W, c_lin).astype(pad_scr.dtype))
        return carry

    lax.fori_loop(0, n_chunks, stage1, 0)

    # Stage 2: 3x3 conv (pad=1) as grouped tap-concatenated MXU matmuls, also
    # row-chunked; overwrites the resident activation in place (all stage-1
    # reads of o_ref are already done).
    def stage2(ci, carry):
        r0 = pl.multiple_of(ci * row_chunk, row_chunk)
        xp = pad_scr[pl.ds(r0, row_chunk + 2), :, :]
        acc = _conv_taps_grouped(xp, w3, row_chunk, W, 3, 3, c_lin, taps_per_group)
        acc = acc + b3
        o_ref[0, pl.ds(r0, row_chunk), :, :] = (
            acc.reshape(row_chunk, W, C).astype(o_ref.dtype))
        return carry

    lax.fori_loop(0, n_chunks, stage2, 0)


def _tail_kernel(h_ref, xs_ref, w1_ref, w2_ref, b_ref, o_ref, pad_scr, *,
                 H, W, row_chunk, taps_per_group):
    """Fused upsample convs: 5x5(body) + 5x5(skip, glue tap-concat input) with the
    x1+x2 add, both biases and denormalize() folded into one epilogue."""
    C = h_ref.shape[-1]
    Ks = xs_ref.shape[-1]
    Cout = o_ref.shape[-1]
    n_chunks = H // row_chunk

    pad_scr[...] = jnp.zeros(pad_scr.shape, pad_scr.dtype)   # once per image
    pad_scr[2:H + 2, 2:W + 2, :] = h_ref[0]

    w1, w2, bb = w1_ref[...], w2_ref[...], b_ref[...]

    def body(ci, carry):
        r0 = pl.multiple_of(ci * row_chunk, row_chunk)
        xp = pad_scr[pl.ds(r0, row_chunk + 4), :, :]
        acc = _conv_taps_grouped(xp, w1, row_chunk, W, 5, 5, C, taps_per_group)
        xs = xs_ref[0, pl.ds(r0, row_chunk), :, :].reshape(row_chunk * W, Ks)
        acc = acc + jnp.dot(xs, w2, preferred_element_type=jnp.float32) + bb
        o_ref[0, pl.ds(r0, row_chunk), :, :] = (
            acc.reshape(row_chunk, W, Cout).astype(o_ref.dtype))
        return carry

    lax.fori_loop(0, n_chunks, body, 0)


# ----------------------------------------------------------------------------
# pallas_call wrappers
# ----------------------------------------------------------------------------
def _head_conv(x27, head, H, W):
    N = x27.shape[0]
    K = x27.shape[-1]
    C = head["w"].shape[-1]
    return pl.pallas_call(
        functools.partial(_head_kernel, H=H, W=W),
        out_shape=jax.ShapeDtypeStruct((N, H, W, C), jnp.bfloat16),
        grid=(N,),
        in_specs=[
            pl.BlockSpec((1, H, W, K), lambda n: (n, 0, 0, 0)),
            pl.BlockSpec((K, C), lambda n: (0, 0)),
            pl.BlockSpec((1, C), lambda n: (0, 0)),
        ],
        out_specs=pl.BlockSpec((1, H, W, C), lambda n: (n, 0, 0, 0)),
        compiler_params=pltpu.CompilerParams(
            dimension_semantics=("parallel",), vmem_limit_bytes=VMEM_LIMIT),
    )(x27, head["w"], head["b"])


def _residual_blocks(h0, blk, H, W, *, row_chunk):
    N, _, _, C = h0.shape
    nb, _, c_mid = blk["w1"].shape
    c_lin = blk["w2"].shape[-1]
    assert H % row_chunk == 0
    kernel = functools.partial(
        _blocks_kernel, H=H, W=W, row_chunk=row_chunk,
        taps_per_group=_taps_per_group(c_lin, 9), exp_dtype=_mish_exp_dtype())
    return pl.pallas_call(
        kernel,
        out_shape=jax.ShapeDtypeStruct((N, H, W, C), jnp.bfloat16),
        grid=(N, nb),
        in_specs=[
            # Head activation: constant index along the block axis -> DMA'd once
            # per image and reused (read only at block 0).
            pl.BlockSpec((1, H, W, C), lambda n, b: (n, 0, 0, 0)),
            # Stacked per-block weights/biases stream along the block axis.
            pl.BlockSpec((1, C, c_mid), lambda n, b: (b, 0, 0)),
            pl.BlockSpec((1, 1, c_mid), lambda n, b: (b, 0, 0)),
            pl.BlockSpec((1, c_mid, c_lin), lambda n, b: (b, 0, 0)),
            pl.BlockSpec((1, 1, c_lin), lambda n, b: (b, 0, 0)),
            pl.BlockSpec((1, 9 * c_lin, C), lambda n, b: (b, 0, 0)),
            pl.BlockSpec((1, 1, C), lambda n, b: (b, 0, 0)),
        ],
        # Constant index along the block axis: the activation is the resident
        # accumulator and is written back to HBM only once per image.
        out_specs=pl.BlockSpec((1, H, W, C), lambda n, b: (n, 0, 0, 0)),
        scratch_shapes=[pltpu.VMEM((H + 2, W + 2, c_lin), jnp.bfloat16)],
        compiler_params=pltpu.CompilerParams(
            dimension_semantics=("parallel", "arbitrary"),
            vmem_limit_bytes=VMEM_LIMIT),
    )(h0, blk["w1"], blk["b1"], blk["w2"], blk["b2"], blk["w3"], blk["b3"])


def _tail_conv(h, x_skip, up, H, W, *, row_chunk):
    N, _, _, C = h.shape
    Ks = x_skip.shape[-1]
    Cout = up["w1"].shape[-1]
    assert H % row_chunk == 0
    kernel = functools.partial(_tail_kernel, H=H, W=W, row_chunk=row_chunk,
                               taps_per_group=_taps_per_group(C, 25))
    return pl.pallas_call(
        kernel,
        out_shape=jax.ShapeDtypeStruct((N, H, W, Cout), jnp.float32),
        grid=(N,),
        in_specs=[
            pl.BlockSpec((1, H, W, C), lambda n: (n, 0, 0, 0)),
            pl.BlockSpec((1, H, W, Ks), lambda n: (n, 0, 0, 0)),
            pl.BlockSpec((25 * C, Cout), lambda n: (0, 0)),
            pl.BlockSpec((Ks, Cout), lambda n: (0, 0)),
            pl.BlockSpec((1, Cout), lambda n: (0, 0)),
        ],
        out_specs=pl.BlockSpec((1, H, W, Cout), lambda n: (n, 0, 0, 0)),
        scratch_shapes=[pltpu.VMEM((H + 4, W + 4, C), jnp.bfloat16)],
        compiler_params=pltpu.CompilerParams(
            dimension_semantics=("parallel",), vmem_limit_bytes=VMEM_LIMIT),
    )(h, x_skip, up["w1"], up["w2"], up["b"])


# ----------------------------------------------------------------------------
# XLA glue (cheap data-movement only)
# ----------------------------------------------------------------------------
def _tap_concat_nhwc(xpad, KH, KW, H, W):
    """(N, H+KH-1, W+KW-1, C) -> (N, H, W, KH*KW*C), taps row-major (kh, kw)."""
    parts = [xpad[:, kh:kh + H, kw:kw + W, :]
             for kh in range(KH) for kw in range(KW)]
    return jnp.concatenate(parts, axis=-1)


def _pixel_shuffle_nhwc(x, r):
    """PyTorch PixelShuffle semantics in NHWC (channel index = c*r*r + i*r + j)."""
    N, H, W, Cr2 = x.shape
    C = Cr2 // (r * r)
    x = x.reshape(N, H, W, C, r, r)
    x = jnp.transpose(x, (0, 1, 4, 2, 5, 3))   # (N, H, i, W, j, C)
    return x.reshape(N, H * r, W * r, C)


# ----------------------------------------------------------------------------
# Parameters: synthetic weight_norm convs packed into kernel-ready layouts
# (tap-major (KH*KW*Cin, Cout) bf16 matmul weights, (1, Cout) f32 biases).
# ----------------------------------------------------------------------------
def _raw_conv(key, KH, KW, Cin, Cout):
    kv, kg, kb = jax.random.split(key, 3)
    v = jax.random.normal(kv, (KH, KW, Cin, Cout), jnp.float32) * 0.05
    g = jax.random.uniform(kg, (Cout,), jnp.float32, 0.5, 1.5)
    norm = jnp.sqrt(jnp.sum(v * v, axis=(0, 1, 2), keepdims=True)) + 1e-12
    w = v / norm * g                     # weight_norm reparam materialized in glue
    b = jax.random.normal(kb, (Cout,), jnp.float32) * 0.01
    return w, b


def _pack_conv_matrix(w, out_scale=None):
    """(KH, KW, Cin, Cout) -> tap-major (KH*KW*Cin, Cout) bf16 matmul weight."""
    KH, KW, Cin, Cout = w.shape
    if out_scale is not None:            # fold per-output-channel denorm scale
        w = w * out_scale
    return w.reshape(KH * KW * Cin, Cout).astype(jnp.bfloat16)


def make_wdsr_params(key, scale, channels, n_residual):
    c_mid = channels * 6
    c_lin = int(channels * 0.8)
    r2 = scale * scale
    keys = jax.random.split(key, 3 + 3 * n_residual)
    ki = iter(keys)

    hw, hb = _raw_conv(next(ki), 3, 3, 3, channels)
    params = {"head": {"w": _pack_conv_matrix(hw), "b": hb.reshape(1, channels)}}

    w1s, b1s, w2s, b2s, w3s, b3s = [], [], [], [], [], []
    for _ in range(n_residual):
        w1, b1 = _raw_conv(next(ki), 1, 1, channels, c_mid)
        w2, b2 = _raw_conv(next(ki), 1, 1, c_mid, c_lin)
        w3, b3 = _raw_conv(next(ki), 3, 3, c_lin, channels)
        w1s.append(_pack_conv_matrix(w1)); b1s.append(b1.reshape(1, c_mid))
        w2s.append(_pack_conv_matrix(w2)); b2s.append(b2.reshape(1, c_lin))
        w3s.append(_pack_conv_matrix(w3)); b3s.append(b3.reshape(1, channels))
    params["blocks"] = {"w1": jnp.stack(w1s), "b1": jnp.stack(b1s),
                        "w2": jnp.stack(w2s), "b2": jnp.stack(b2s),
                        "w3": jnp.stack(w3s), "b3": jnp.stack(b3s)}

    # Upsample convs: denormalize (scale/mean) and the x1 + x2 add are folded into
    # one weight pair and a single combined bias.
    u1w, u1b = _raw_conv(next(ki), 5, 5, channels, 3 * r2)
    u2w, u2b = _raw_conv(next(ki), 5, 5, 3, 3 * r2)
    std_rep = jnp.repeat(RGB_STD, r2)
    mean_rep = jnp.repeat(RGB_MEAN, r2)
    params["up"] = {
        "w1": _pack_conv_matrix(u1w, std_rep),
        "w2": _pack_conv_matrix(u2w, std_rep),
        "b": ((u1b + u2b) * std_rep + mean_rep).reshape(1, 3 * r2),
    }
    return params


# ----------------------------------------------------------------------------
# Forward pass (matches WDSR.forward; WDSR_B returns only its conv chain).
# ----------------------------------------------------------------------------
def wdsr_forward(x_nchw, params, *, scale, row_chunk=None):
    N, _, H, W = x_nchw.shape
    if row_chunk is None:
        row_chunk = _pick_row_chunk(H, W)
    x = jnp.transpose(x_nchw, (0, 2, 3, 1)).astype(jnp.float32)    # NCHW -> NHWC
    # normalize() folded into glue; denormalize() folded into the tail weights/bias.
    xn = ((x - RGB_MEAN) / RGB_STD).astype(jnp.bfloat16)

    # Dense tap-concat operands for the two convs that read the 3-channel input
    # (cheap XLA glue; avoids a degenerate 3-wide lane dim inside the kernels).
    x27 = _tap_concat_nhwc(jnp.pad(xn, ((0, 0), (1, 1), (1, 1), (0, 0))), 3, 3, H, W)
    x75 = _tap_concat_nhwc(jnp.pad(xn, ((0, 0), (2, 2), (2, 2), (0, 0))), 5, 5, H, W)

    h = _head_conv(x27, params["head"], H, W)                      # (N,H,W,C) bf16
    h = _residual_blocks(h, params["blocks"], H, W, row_chunk=row_chunk)
    u = _tail_conv(h, x75, params["up"], H, W, row_chunk=row_chunk)  # (N,H,W,3r^2) f32

    out = _pixel_shuffle_nhwc(u, scale)                            # (N, H*r, W*r, 3)
    return jnp.transpose(out, (0, 3, 1, 2))                        # NHWC -> NCHW


if __name__ == "__main__":
    scale_factor = 2
    channels = 8        # small, consistent with the module (default is 32)
    n_residual = 4      # small, consistent with the module (default is 64)

    key = jax.random.PRNGKey(0)
    kx, kp = jax.random.split(key)
    x = jax.random.uniform(kx, (2, 3, 16, 16), jnp.float32)        # NCHW, in [0, 1]
    params = make_wdsr_params(kp, scale_factor, channels, n_residual)

    # row_chunk=8 exercises the in-kernel row-chunk loops (2 chunks at H=16).
    fwd = jax.jit(functools.partial(wdsr_forward, scale=scale_factor, row_chunk=8))
    y = fwd(x, params)
    jax.block_until_ready(y)

    assert y.shape == (2, 3, 16 * scale_factor, 16 * scale_factor), y.shape
    assert y.dtype == jnp.float32
    print("KERNEL_OK")
</pallas_src>

<mosaic_0001>
module attributes {stable_mosaic.version = 11 : i64} {
  func.func @_head_kernel(%arg0: i32, %arg1: memref<1x16x16x27xbf16, #tpu.memory_space<vmem>>, %arg2: memref<27x8xbf16, #tpu.memory_space<vmem>>, %arg3: memref<1x8xf32, #tpu.memory_space<vmem>>, %arg4: memref<1x16x16x8xbf16, #tpu.memory_space<vmem>>) attributes {dimension_semantics = [#tpu.dimension_semantics<parallel>], iteration_bounds = array<i64: 2>, scalar_prefetch = 0 : i64, scratch_operands = 0 : i64, tpu.core_type = #tpu.core_type<tc>, window_params = [{transform_indices = @transform_0, window_bounds = array<i64: 1, 16, 16, 27>}, {pipeline_mode = #tpu.pipeline_mode<synchronous>, transform_indices = @transform_1, window_bounds = array<i64: 27, 8>}, {pipeline_mode = #tpu.pipeline_mode<synchronous>, transform_indices = @transform_2, window_bounds = array<i64: 1, 8>}, {transform_indices = @transform_3, window_bounds = array<i64: 1, 16, 16, 8>}]} {
    %c0 = arith.constant 0 : index
    %c0_0 = arith.constant 0 : index
    %c0_1 = arith.constant 0 : index
    %c0_2 = arith.constant 0 : index
    %0 = vector.load %arg1[%c0, %c0_0, %c0_1, %c0_2] : memref<1x16x16x27xbf16, #tpu.memory_space<vmem>>, vector<1x16x16x27xbf16>
    %1 = vector.shape_cast %0 : vector<1x16x16x27xbf16> to vector<16x16x27xbf16>
    %2 = vector.shape_cast %1 : vector<16x16x27xbf16> to vector<256x27xbf16>
    %c0_3 = arith.constant 0 : index
    %c0_4 = arith.constant 0 : index
    %3 = vector.load %arg2[%c0_3, %c0_4] : memref<27x8xbf16, #tpu.memory_space<vmem>>, vector<27x8xbf16>
    %cst = arith.constant dense<0.000000e+00> : vector<256x8xf32>
    %4 = tpu.matmul %2, %3, %cst {dimension_numbers = #tpu.dot_dimension_numbers<[1], [0], [0], [1], [0, 0, 1, 1], [], []>} : vector<256x27xbf16>, vector<27x8xbf16>, vector<256x8xf32> -> vector<256x8xf32>
    %c0_5 = arith.constant 0 : index
    %c0_6 = arith.constant 0 : index
    %5 = vector.load %arg3[%c0_5, %c0_6] : memref<1x8xf32, #tpu.memory_space<vmem>>, vector<1x8xf32>
    %6 = vector.broadcast %5 : vector<1x8xf32> to vector<256x8xf32>
    %7 = arith.addf %4, %6 : vector<256x8xf32>
    %8 = vector.shape_cast %7 : vector<256x8xf32> to vector<1x16x16x8xf32>
    %9 = arith.truncf %8 : vector<1x16x16x8xf32> to vector<1x16x16x8xbf16>
    %c0_7 = arith.constant 0 : index
    %c0_8 = arith.constant 0 : index
    %c0_9 = arith.constant 0 : index
    %c0_10 = arith.constant 0 : index
    %10 = vector.load %arg4[%c0_7, %c0_8, %c0_9, %c0_10] : memref<1x16x16x8xbf16, #tpu.memory_space<vmem>>, vector<1x16x16x8xbf16>
    tpu.vector_store %arg4[%c0_7, %c0_8, %c0_9, %c0_10], %9 {strides = array<i32>} : memref<1x16x16x8xbf16, #tpu.memory_space<vmem>>, vector<1x16x16x8xbf16>,
    return
  }
  func.func @transform_0(%arg0: i32) -> (i32, i32, i32, i32) {
    %c0_i32 = arith.constant 0 : i32
    %c0_i32_0 = arith.constant 0 : i32
    %c0_i32_1 = arith.constant 0 : i32
    %c0_i32_2 = arith.constant 0 : i32
    return %arg0, %c0_i32, %c0_i32_0, %c0_i32_1 : i32, i32, i32, i32
  }
  func.func @transform_1(%arg0: i32) -> (i32, i32) {
    %c0_i32 = arith.constant 0 : i32
    %c0_i32_0 = arith.constant 0 : i32
    %c0_i32_1 = arith.constant 0 : i32
    return %c0_i32, %c0_i32_0 : i32, i32
  }
  func.func @transform_2(%arg0: i32) -> (i32, i32) {
    %c0_i32 = arith.constant 0 : i32
    %c0_i32_0 = arith.constant 0 : i32
    %c0_i32_1 = arith.constant 0 : i32
    return %c0_i32, %c0_i32_0 : i32, i32
  }
  func.func @transform_3(%arg0: i32) -> (i32, i32, i32, i32) {
    %c0_i32 = arith.constant 0 : i32
    %c0_i32_0 = arith.constant 0 : i32
    %c0_i32_1 = arith.constant 0 : i32
    %c0_i32_2 = arith.constant 0 : i32
    return %arg0, %c0_i32, %c0_i32_0, %c0_i32_1 : i32, i32, i32, i32
  }
}

module attributes {stable_mosaic.version = 11 : i64} {
  func.func @_blocks_kernel(%arg0: i32, %arg1: i32, %arg2: memref<1x16x16x8xbf16, #tpu.memory_space<vmem>>, %arg3: memref<1x8x48xbf16, #tpu.memory_space<vmem>>, %arg4: memref<1x1x48xf32, #tpu.memory_space<vmem>>, %arg5: memref<1x48x6xbf16, #tpu.memory_space<vmem>>, %arg6: memref<1x1x6xf32, #tpu.memory_space<vmem>>, %arg7: memref<1x54x8xbf16, #tpu.memory_space<vmem>>, %arg8: memref<1x1x8xf32, #tpu.memory_space<vmem>>, %arg9: memref<1x16x16x8xbf16, #tpu.memory_space<vmem>>, %arg10: memref<18x18x6xbf16, #tpu.memory_space<vmem>>) attributes {dimension_semantics = [#tpu.dimension_semantics<parallel>, #tpu.dimension_semantics<arbitrary>], iteration_bounds = array<i64: 2, 4>, scalar_prefetch = 0 : i64, scratch_operands = 1 : i64, tpu.core_type = #tpu.core_type<tc>, window_params = [{transform_indices = @transform_0, window_bounds = array<i64: 1, 16, 16, 8>}, {transform_indices = @transform_1, window_bounds = array<i64: 1, 8, 48>}, {transform_indices = @transform_2, window_bounds = array<i64: 1, 1, 48>}, {transform_indices = @transform_3, window_bounds = array<i64: 1, 48, 6>}, {transform_indices = @transform_4, window_bounds = array<i64: 1, 1, 6>}, {transform_indices = @transform_5, window_bounds = array<i64: 1, 54, 8>}, {transform_indices = @transform_6, window_bounds = array<i64: 1, 1, 8>}, {transform_indices = @transform_7, window_bounds = array<i64: 1, 16, 16, 8>}]} {
    %c0_i32 = arith.constant 0 : i32
    %0 = arith.cmpi eq, %arg1, %c0_i32 : i32
    %1 = arith.extui %0 : i1 to i32
    %c0_i32_0 = arith.constant 0 : i32
    %2 = arith.cmpi ne, %1, %c0_i32_0 : i32
    scf.if %2 {
      %c0_24 = arith.constant 0 : index
      %c0_25 = arith.constant 0 : index
      %c0_26 = arith.constant 0 : index
      %c0_27 = arith.constant 0 : index
      %17 = vector.load %arg2[%c0_24, %c0_25, %c0_26, %c0_27] : memref<1x16x16x8xbf16, #tpu.memory_space<vmem>>, vector<1x16x16x8xbf16>
      %c0_28 = arith.constant 0 : index
      %c0_29 = arith.constant 0 : index
      %c0_30 = arith.constant 0 : index
      %c0_31 = arith.constant 0 : index
      %18 = vector.load %arg9[%c0_28, %c0_29, %c0_30, %c0_31] : memref<1x16x16x8xbf16, #tpu.memory_space<vmem>>, vector<1x16x16x8xbf16>
      tpu.vector_store %arg9[%c0_28, %c0_29, %c0_30, %c0_31], %17 {strides = array<i32>} : memref<1x16x16x8xbf16, #tpu.memory_space<vmem>>, vector<1x16x16x8xbf16>,
      %cst = arith.constant 0.000000e+00 : bf16
      %19 = vector.broadcast %cst : bf16 to vector<18x18x6xbf16>
      %c0_32 = arith.constant 0 : index
      %c0_33 = arith.constant 0 : index
      %c0_34 = arith.constant 0 : index
      %20 = vector.load %arg10[%c0_32, %c0_33, %c0_34] : memref<18x18x6xbf16, #tpu.memory_space<vmem>>, vector<18x18x6xbf16>
      tpu.vector_store %arg10[%c0_32, %c0_33, %c0_34], %19 {strides = array<i32>} : memref<18x18x6xbf16, #tpu.memory_space<vmem>>, vector<18x18x6xbf16>,
    } else {
    }
    %c0 = arith.constant 0 : index
    %c0_1 = arith.constant 0 : index
    %c0_2 = arith.constant 0 : index
    %3 = vector.load %arg3[%c0, %c0_1, %c0_2] : memref<1x8x48xbf16, #tpu.memory_space<vmem>>, vector<1x8x48xbf16>
    %4 = vector.shape_cast %3 : vector<1x8x48xbf16> to vector<8x48xbf16>
    %c0_3 = arith.constant 0 : index
    %c0_4 = arith.constant 0 : index
    %c0_5 = arith.constant 0 : index
    %5 = vector.load %arg4[%c0_3, %c0_4, %c0_5] : memref<1x1x48xf32, #tpu.memory_space<vmem>>, vector<1x1x48xf32>
    %6 = vector.shape_cast %5 : vector<1x1x48xf32> to vector<1x48xf32>
    %c0_6 = arith.constant 0 : index
    %c0_7 = arith.constant 0 : index
    %c0_8 = arith.constant 0 : index
    %7 = vector.load %arg5[%c0_6, %c0_7, %c0_8] : memref<1x48x6xbf16, #tpu.memory_space<vmem>>, vector<1x48x6xbf16>
    %8 = vector.shape_cast %7 : vector<1x48x6xbf16> to vector<48x6xbf16>
    %c0_9 = arith.constant 0 : index
    %c0_10 = arith.constant 0 : index
    %c0_11 = arith.constant 0 : index
    %9 = vector.load %arg6[%c0_9, %c0_10, %c0_11] : memref<1x1x6xf32, #tpu.memory_space<vmem>>, vector<1x1x6xf32>
    %10 = vector.shape_cast %9 : vector<1x1x6xf32> to vector<1x6xf32>
    %c0_12 = arith.constant 0 : index
    %c0_13 = arith.constant 0 : index
    %c0_14 = arith.constant 0 : index
    %11 = vector.load %arg7[%c0_12, %c0_13, %c0_14] : memref<1x54x8xbf16, #tpu.memory_space<vmem>>, vector<1x54x8xbf16>
    %12 = vector.shape_cast %11 : vector<1x54x8xbf16> to vector<54x8xbf16>
    %c0_15 = arith.constant 0 : index
    %c0_16 = arith.constant 0 : index
    %c0_17 = arith.constant 0 : index
    %13 = vector.load %arg8[%c0_15, %c0_16, %c0_17] : memref<1x1x8xf32, #tpu.memory_space<vmem>>, vector<1x1x8xf32>
    %14 = vector.shape_cast %13 : vector<1x1x8xf32> to vector<1x8xf32>
    %c0_i32_18 = arith.constant 0 : i32
    %c2_i32 = arith.constant 2 : i32
    %15 = arith.addi %c0_i32_18, %c2_i32 : i32
    %c1_i32 = arith.constant 1 : i32
    scf.for %arg11 = %c0_i32_18 to %15 step %c1_i32  : i32 {
      %c8_i32 = arith.constant 8 : i32
      %17 = arith.muli %arg11, %c8_i32 : i32
      %18 = tpu.assume_multiple %17, 8 : i32
      %c0_24 = arith.constant 0 : index
      %19 = arith.index_cast %18 : i32 to index
      %c0_25 = arith.constant 0 : index
      %c0_26 = arith.constant 0 : index
      %20 = vector.load %arg9[%c0_24, %19, %c0_25, %c0_26] : memref<1x16x16x8xbf16, #tpu.memory_space<vmem>>, vector<1x8x16x8xbf16>
      %21 = vector.shape_cast %20 : vector<1x8x16x8xbf16> to vector<8x16x8xbf16>
      %22 = vector.shape_cast %21 : vector<8x16x8xbf16> to vector<128x8xbf16>
      %cst = arith.constant dense<0.000000e+00> : vector<128x48xf32>
      %23 = tpu.matmul %22, %4, %cst {dimension_numbers = #tpu.dot_dimension_numbers<[1], [0], [0], [1], [0, 0, 1, 1], [], []>} : vector<128x8xbf16>, vector<8x48xbf16>, vector<128x48xf32> -> vector<128x48xf32>
      %24 = vector.broadcast %6 : vector<1x48xf32> to vector<128x48xf32>
      %25 = arith.addf %23, %24 : vector<128x48xf32>
      %cst_27 = arith.constant 2.000000e+01 : f32
      %26 = vector.broadcast %cst_27 : f32 to vector<128x48xf32>
      %27 = arith.minimumf %25, %26 : vector<128x48xf32>
      %28 = math.exp %27 : vector<128x48xf32>
      %cst_28 = arith.constant 1.000000e+00 : f32
      %29 = vector.broadcast %cst_28 : f32 to vector<128x48xf32>
      %30 = arith.addf %29, %28 : vector<128x48xf32>
      %cst_29 = arith.constant 1.000000e+00 : f32
      %31 = vector.broadcast %cst_29 : f32 to vector<128x48xf32>
      %32 = arith.addf %31, %28 : vector<128x48xf32>
      %33 = arith.mulf %30, %32 : vector<128x48xf32>
      %cst_30 = arith.constant 1.000000e+00 : f32
      %34 = vector.broadcast %cst_30 : f32 to vector<128x48xf32>
      %35 = arith.subf %33, %34 : vector<128x48xf32>
      %cst_31 = arith.constant 1.000000e+00 : f32
      %36 = vector.broadcast %cst_31 : f32 to vector<128x48xf32>
      %37 = arith.addf %33, %36 : vector<128x48xf32>
      %38 = tpu.reciprocal %37 {approx = true} : vector<128x48xf32> -> vector<128x48xf32>
      %39 = arith.mulf %35, %38 : vector<128x48xf32>
      %cst_32 = arith.constant 2.000000e+01 : f32
      %40 = vector.broadcast %cst_32 : f32 to vector<128x48xf32>
      %41 = arith.cmpf ogt, %25, %40 : vector<128x48xf32>
      %cst_33 = arith.constant 1.000000e+00 : f32
      %42 = vector.broadcast %cst_33 : f32 to vector<128x48xf32>
      %43 = arith.select %41, %42, %39 : vector<128x48xi1>, vector<128x48xf32>
      %44 = arith.mulf %25, %43 : vector<128x48xf32>
      %45 = arith.truncf %44 : vector<128x48xf32> to vector<128x48xbf16>
      %cst_34 = arith.constant dense<0.000000e+00> : vector<128x6xf32>
      %46 = tpu.matmul %45, %8, %cst_34 {dimension_numbers = #tpu.dot_dimension_numbers<[1], [0], [0], [1], [0, 0, 1, 1], [], []>} : vector<128x48xbf16>, vector<48x6xbf16>, vector<128x6xf32> -> vector<128x6xf32>
      %47 = vector.broadcast %10 : vector<1x6xf32> to vector<128x6xf32>
      %48 = arith.addf %46, %47 : vector<128x6xf32>
      %49 = vector.shape_cast %48 : vector<128x6xf32> to vector<8x16x6xf32>
      %50 = arith.truncf %49 : vector<8x16x6xf32> to vector<8x16x6xbf16>
      %c1_i32_35 = arith.constant 1 : i32
      %51 = arith.addi %18, %c1_i32_35 : i32
      %52 = arith.index_cast %51 : i32 to index
      %c1 = arith.constant 1 : index
      %c0_36 = arith.constant 0 : index
      %53 = vector.load %arg10[%52, %c1, %c0_36] : memref<18x18x6xbf16, #tpu.memory_space<vmem>>, vector<8x16x6xbf16>
      tpu.vector_store %arg10[%52, %c1, %c0_36], %50 {strides = array<i32>} : memref<18x18x6xbf16, #tpu.memory_space<vmem>>, vector<8x16x6xbf16>,
    }
    %c2_i32_19 = arith.constant 2 : i32
    %c0_i32_20 = arith.constant 0 : i32
    %c2_i32_21 = arith.constant 2 : i32
    %16 = arith.addi %c0_i32_20, %c2_i32_21 : i32
    %c1_i32_22 = arith.constant 1 : i32
    scf.for %arg11 = %c0_i32_20 to %16 step %c1_i32_22  : i32 {
      %c8_i32 = arith.constant 8 : i32
      %17 = arith.muli %arg11, %c8_i32 : i32
      %18 = tpu.assume_multiple %17, 8 : i32
      %19 = arith.index_cast %18 : i32 to index
      %c0_24 = arith.constant 0 : index
      %c0_25 = arith.constant 0 : index
      %20 = vector.load %arg10[%19, %c0_24, %c0_25] : memref<18x18x6xbf16, #tpu.memory_space<vmem>>, vector<10x18x6xbf16>
      %21 = vector.extract_strided_slice %20 {offsets = [0, 0, 0], sizes = [8, 16, 6], strides = [1, 1, 1]} : vector<10x18x6xbf16> to vector<8x16x6xbf16>
      %22 = vector.shape_cast %21 : vector<8x16x6xbf16> to vector<128x6xbf16>
      %23 = vector.extract_strided_slice %20 {offsets = [0, 1, 0], sizes = [8, 16, 6], strides = [1, 1, 1]} : vector<10x18x6xbf16> to vector<8x16x6xbf16>
      %24 = vector.shape_cast %23 : vector<8x16x6xbf16> to vector<128x6xbf16>
      %25 = vector.extract_strided_slice %20 {offsets = [0, 2, 0], sizes = [8, 16, 6], strides = [1, 1, 1]} : vector<10x18x6xbf16> to vector<8x16x6xbf16>
      %26 = vector.shape_cast %25 : vector<8x16x6xbf16> to vector<128x6xbf16>
      %27 = vector.extract_strided_slice %20 {offsets = [1, 0, 0], sizes = [8, 16, 6], strides = [1, 1, 1]} : vector<10x18x6xbf16> to vector<8x16x6xbf16>
      %28 = vector.shape_cast %27 : vector<8x16x6xbf16> to vector<128x6xbf16>
      %29 = vector.extract_strided_slice %20 {offsets = [1, 1, 0], sizes = [8, 16, 6], strides = [1, 1, 1]} : vector<10x18x6xbf16> to vector<8x16x6xbf16>
      %30 = vector.shape_cast %29 : vector<8x16x6xbf16> to vector<128x6xbf16>
      %31 = vector.extract_strided_slice %20 {offsets = [1, 2, 0], sizes = [8, 16, 6], strides = [1, 1, 1]} : vector<10x18x6xbf16> to vector<8x16x6xbf16>
      %32 = vector.shape_cast %31 : vector<8x16x6xbf16> to vector<128x6xbf16>
      %33 = vector.extract_strided_slice %20 {offsets = [2, 0, 0], sizes = [8, 16, 6], strides = [1, 1, 1]} : vector<10x18x6xbf16> to vector<8x16x6xbf16>
      %34 = vector.shape_cast %33 : vector<8x16x6xbf16> to vector<128x6xbf16>
      %35 = vector.extract_strided_slice %20 {offsets = [2, 1, 0], sizes = [8, 16, 6], strides = [1, 1, 1]} : vector<10x18x6xbf16> to vector<8x16x6xbf16>
      %36 = vector.shape_cast %35 : vector<8x16x6xbf16> to vector<128x6xbf16>
      %37 = vector.extract_strided_slice %20 {offsets = [2, 2, 0], sizes = [8, 16, 6], strides = [1, 1, 1]} : vector<10x18x6xbf16> to vector<8x16x6xbf16>
      %38 = vector.shape_cast %37 : vector<8x16x6xbf16> to vector<128x6xbf16>
      %39 = tpu.concatenate %22, %24, %26, %28, %30, %32, %34, %36, %38 in 1 : vector<128x6xbf16>, vector<128x6xbf16>, vector<128x6xbf16>, vector<128x6xbf16>, vector<128x6xbf16>, vector<128x6xbf16>, vector<128x6xbf16>, vector<128x6xbf16>, vector<128x6xbf16> -> vector<128x54xbf16>
      %cst = arith.constant dense<0.000000e+00> : vector<128x8xf32>
      %40 = tpu.matmul %39, %12, %cst {dimension_numbers = #tpu.dot_dimension_numbers<[1], [0], [0], [1], [0, 0, 1, 1], [], []>} : vector<128x54xbf16>, vector<54x8xbf16>, vector<128x8xf32> -> vector<128x8xf32>
      %41 = vector.broadcast %14 : vector<1x8xf32> to vector<128x8xf32>
      %42 = arith.addf %40, %41 : vector<128x8xf32>
      %43 = vector.shape_cast %42 : vector<128x8xf32> to vector<8x16x8xf32>
      %44 = arith.truncf %43 : vector<8x16x8xf32> to vector<8x16x8xbf16>
      %c0_26 = arith.constant 0 : index
      %45 = arith.index_cast %18 : i32 to index
      %c0_27 = arith.constant 0 : index
      %c0_28 = arith.constant 0 : index
      %46 = vector.load %arg9[%c0_26, %45, %c0_27, %c0_28] : memref<1x16x16x8xbf16, #tpu.memory_space<vmem>>, vector<1x8x16x8xbf16>
      %47 = vector.shape_cast %46 : vector<1x8x16x8xbf16> to vector<8x16x8xbf16>
      %48 = vector.shape_cast %44 : vector<8x16x8xbf16> to vector<1x8x16x8xbf16>
      tpu.vector_store %arg9[%c0_26, %45, %c0_27, %c0_28], %48 {strides = array<i32>} : memref<1x16x16x8xbf16, #tpu.memory_space<vmem>>, vector<1x8x16x8xbf16>,
    }
    %c2_i32_23 = arith.constant 2 : i32
    return
  }
  func.func @transform_0(%arg0: i32, %arg1: i32) -> (i32, i32, i32, i32) {
    %c0_i32 = arith.constant 0 : i32
    %c0_i32_0 = arith.constant 0 : i32
    %c0_i32_1 = arith.constant 0 : i32
    %c0_i32_2 = arith.constant 0 : i32
    return %arg0, %c0_i32, %c0_i32_0, %c0_i32_1 : i32, i32, i32, i32
  }
  func.func @transform_1(%arg0: i32, %arg1: i32) -> (i32, i32, i32) {
    %c0_i32 = arith.constant 0 : i32
    %c0_i32_0 = arith.constant 0 : i32
    %c0_i32_1 = arith.constant 0 : i32
    return %arg1, %c0_i32, %c0_i32_0 : i32, i32, i32
  }
  func.func @transform_2(%arg0: i32, %arg1: i32) -> (i32, i32, i32) {
    %c0_i32 = arith.constant 0 : i32
    %c0_i32_0 = arith.constant 0 : i32
    %c0_i32_1 = arith.constant 0 : i32
    return %arg1, %c0_i32, %c0_i32_0 : i32, i32, i32
  }
  func.func @transform_3(%arg0: i32, %arg1: i32) -> (i32, i32, i32) {
    %c0_i32 = arith.constant 0 : i32
    %c0_i32_0 = arith.constant 0 : i32
    %c0_i32_1 = arith.constant 0 : i32
    return %arg1, %c0_i32, %c0_i32_0 : i32, i32, i32
  }
  func.func @transform_4(%arg0: i32, %arg1: i32) -> (i32, i32, i32) {
    %c0_i32 = arith.constant 0 : i32
    %c0_i32_0 = arith.constant 0 : i32
    %c0_i32_1 = arith.constant 0 : i32
    return %arg1, %c0_i32, %c0_i32_0 : i32, i32, i32
  }
  func.func @transform_5(%arg0: i32, %arg1: i32) -> (i32, i32, i32) {
    %c0_i32 = arith.constant 0 : i32
    %c0_i32_0 = arith.constant 0 : i32
    %c0_i32_1 = arith.constant 0 : i32
    return %arg1, %c0_i32, %c0_i32_0 : i32, i32, i32
  }
  func.func @transform_6(%arg0: i32, %arg1: i32) -> (i32, i32, i32) {
    %c0_i32 = arith.constant 0 : i32
    %c0_i32_0 = arith.constant 0 : i32
    %c0_i32_1 = arith.constant 0 : i32
    return %arg1, %c0_i32, %c0_i32_0 : i32, i32, i32
  }
  func.func @transform_7(%arg0: i32, %arg1: i32) -> (i32, i32, i32, i32) {
    %c0_i32 = arith.constant 0 : i32
    %c0_i32_0 = arith.constant 0 : i32
    %c0_i32_1 = arith.constant 0 : i32
    %c0_i32_2 = arith.constant 0 : i32
    return %arg0, %c0_i32, %c0_i32_0, %c0_i32_1 : i32, i32, i32, i32
  }
}

module attributes {stable_mosaic.version = 11 : i64} {
  func.func @_tail_kernel(%arg0: i32, %arg1: memref<1x16x16x8xbf16, #tpu.memory_space<vmem>>, %arg2: memref<1x16x16x75xbf16, #tpu.memory_space<vmem>>, %arg3: memref<200x12xbf16, #tpu.memory_space<vmem>>, %arg4: memref<75x12xbf16, #tpu.memory_space<vmem>>, %arg5: memref<1x12xf32, #tpu.memory_space<vmem>>, %arg6: memref<1x16x16x12xf32, #tpu.memory_space<vmem>>, %arg7: memref<20x20x8xbf16, #tpu.memory_space<vmem>>) attributes {dimension_semantics = [#tpu.dimension_semantics<parallel>], iteration_bounds = array<i64: 2>, scalar_prefetch = 0 : i64, scratch_operands = 1 : i64, tpu.core_type = #tpu.core_type<tc>, window_params = [{transform_indices = @transform_0, window_bounds = array<i64: 1, 16, 16, 8>}, {transform_indices = @transform_1, window_bounds = array<i64: 1, 16, 16, 75>}, {pipeline_mode = #tpu.pipeline_mode<synchronous>, transform_indices = @transform_2, window_bounds = array<i64: 200, 12>}, {pipeline_mode = #tpu.pipeline_mode<synchronous>, transform_indices = @transform_3, window_bounds = array<i64: 75, 12>}, {pipeline_mode = #tpu.pipeline_mode<synchronous>, transform_indices = @transform_4, window_bounds = array<i64: 1, 12>}, {transform_indices = @transform_5, window_bounds = array<i64: 1, 16, 16, 12>}]} {
    %cst = arith.constant 0.000000e+00 : bf16
    %0 = vector.broadcast %cst : bf16 to vector<20x20x8xbf16>
    %c0 = arith.constant 0 : index
    %c0_0 = arith.constant 0 : index
    %c0_1 = arith.constant 0 : index
    %1 = vector.load %arg7[%c0, %c0_0, %c0_1] : memref<20x20x8xbf16, #tpu.memory_space<vmem>>, vector<20x20x8xbf16>
    tpu.vector_store %arg7[%c0, %c0_0, %c0_1], %0 {strides = array<i32>} : memref<20x20x8xbf16, #tpu.memory_space<vmem>>, vector<20x20x8xbf16>,
    %c0_2 = arith.constant 0 : index
    %c0_3 = arith.constant 0 : index
    %c0_4 = arith.constant 0 : index
    %c0_5 = arith.constant 0 : index
    %2 = vector.load %arg1[%c0_2, %c0_3, %c0_4, %c0_5] : memref<1x16x16x8xbf16, #tpu.memory_space<vmem>>, vector<1x16x16x8xbf16>
    %3 = vector.shape_cast %2 : vector<1x16x16x8xbf16> to vector<16x16x8xbf16>
    %c2 = arith.constant 2 : index
    %c2_6 = arith.constant 2 : index
    %c0_7 = arith.constant 0 : index
    %4 = vector.load %arg7[%c2, %c2_6, %c0_7] : memref<20x20x8xbf16, #tpu.memory_space<vmem>>, vector<16x16x8xbf16>
    tpu.vector_store %arg7[%c2, %c2_6, %c0_7], %3 {strides = array<i32>} : memref<20x20x8xbf16, #tpu.memory_space<vmem>>, vector<16x16x8xbf16>,
    %c0_8 = arith.constant 0 : index
    %c0_9 = arith.constant 0 : index
    %5 = vector.load %arg3[%c0_8, %c0_9] : memref<200x12xbf16, #tpu.memory_space<vmem>>, vector<200x12xbf16>
    %c0_10 = arith.constant 0 : index
    %c0_11 = arith.constant 0 : index
    %6 = vector.load %arg4[%c0_10, %c0_11] : memref<75x12xbf16, #tpu.memory_space<vmem>>, vector<75x12xbf16>
    %c0_12 = arith.constant 0 : index
    %c0_13 = arith.constant 0 : index
    %7 = vector.load %arg5[%c0_12, %c0_13] : memref<1x12xf32, #tpu.memory_space<vmem>>, vector<1x12xf32>
    %c0_i32 = arith.constant 0 : i32
    %c2_i32 = arith.constant 2 : i32
    %8 = arith.addi %c0_i32, %c2_i32 : i32
    %c1_i32 = arith.constant 1 : i32
    scf.for %arg8 = %c0_i32 to %8 step %c1_i32  : i32 {
      %c8_i32 = arith.constant 8 : i32
      %9 = arith.muli %arg8, %c8_i32 : i32
      %10 = tpu.assume_multiple %9, 8 : i32
      %11 = arith.index_cast %10 : i32 to index
      %c0_15 = arith.constant 0 : index
      %c0_16 = arith.constant 0 : index
      %12 = vector.load %arg7[%11, %c0_15, %c0_16] : memref<20x20x8xbf16, #tpu.memory_space<vmem>>, vector<12x20x8xbf16>
      %13 = vector.extract_strided_slice %12 {offsets = [0, 0, 0], sizes = [8, 16, 8], strides = [1, 1, 1]} : vector<12x20x8xbf16> to vector<8x16x8xbf16>
      %14 = vector.shape_cast %13 : vector<8x16x8xbf16> to vector<128x8xbf16>
      %15 = vector.extract_strided_slice %12 {offsets = [0, 1, 0], sizes = [8, 16, 8], strides = [1, 1, 1]} : vector<12x20x8xbf16> to vector<8x16x8xbf16>
      %16 = vector.shape_cast %15 : vector<8x16x8xbf16> to vector<128x8xbf16>
      %17 = vector.extract_strided_slice %12 {offsets = [0, 2, 0], sizes = [8, 16, 8], strides = [1, 1, 1]} : vector<12x20x8xbf16> to vector<8x16x8xbf16>
      %18 = vector.shape_cast %17 : vector<8x16x8xbf16> to vector<128x8xbf16>
      %19 = vector.extract_strided_slice %12 {offsets = [0, 3, 0], sizes = [8, 16, 8], strides = [1, 1, 1]} : vector<12x20x8xbf16> to vector<8x16x8xbf16>
      %20 = vector.shape_cast %19 : vector<8x16x8xbf16> to vector<128x8xbf16>
      %21 = vector.extract_strided_slice %12 {offsets = [0, 4, 0], sizes = [8, 16, 8], strides = [1, 1, 1]} : vector<12x20x8xbf16> to vector<8x16x8xbf16>
      %22 = vector.shape_cast %21 : vector<8x16x8xbf16> to vector<128x8xbf16>
      %23 = vector.extract_strided_slice %12 {offsets = [1, 0, 0], sizes = [8, 16, 8], strides = [1, 1, 1]} : vector<12x20x8xbf16> to vector<8x16x8xbf16>
      %24 = vector.shape_cast %23 : vector<8x16x8xbf16> to vector<128x8xbf16>
      %25 = vector.extract_strided_slice %12 {offsets = [1, 1, 0], sizes = [8, 16, 8], strides = [1, 1, 1]} : vector<12x20x8xbf16> to vector<8x16x8xbf16>
      %26 = vector.shape_cast %25 : vector<8x16x8xbf16> to vector<128x8xbf16>
      %27 = vector.extract_strided_slice %12 {offsets = [1, 2, 0], sizes = [8, 16, 8], strides = [1, 1, 1]} : vector<12x20x8xbf16> to vector<8x16x8xbf16>
      %28 = vector.shape_cast %27 : vector<8x16x8xbf16> to vector<128x8xbf16>
      %29 = vector.extract_strided_slice %12 {offsets = [1, 3, 0], sizes = [8, 16, 8], strides = [1, 1, 1]} : vector<12x20x8xbf16> to vector<8x16x8xbf16>
      %30 = vector.shape_cast %29 : vector<8x16x8xbf16> to vector<128x8xbf16>
      %31 = vector.extract_strided_slice %12 {offsets = [1, 4, 0], sizes = [8, 16, 8], strides = [1, 1, 1]} : vector<12x20x8xbf16> to vector<8x16x8xbf16>
      %32 = vector.shape_cast %31 : vector<8x16x8xbf16> to vector<128x8xbf16>
      %33 = vector.extract_strided_slice %12 {offsets = [2, 0, 0], sizes = [8, 16, 8], strides = [1, 1, 1]} : vector<12x20x8xbf16> to vector<8x16x8xbf16>
      %34 = vector.shape_cast %33 : vector<8x16x8xbf16> to vector<128x8xbf16>
      %35 = vector.extract_strided_slice %12 {offsets = [2, 1, 0], sizes = [8, 16, 8], strides = [1, 1, 1]} : vector<12x20x8xbf16> to vector<8x16x8xbf16>
      %36 = vector.shape_cast %35 : vector<8x16x8xbf16> to vector<128x8xbf16>
      %37 = vector.extract_strided_slice %12 {offsets = [2, 2, 0], sizes = [8, 16, 8], strides = [1, 1, 1]} : vector<12x20x8xbf16> to vector<8x16x8xbf16>
      %38 = vector.shape_cast %37 : vector<8x16x8xbf16> to vector<128x8xbf16>
      %39 = vector.extract_strided_slice %12 {offsets = [2, 3, 0], sizes = [8, 16, 8], strides = [1, 1, 1]} : vector<12x20x8xbf16> to vector<8x16x8xbf16>
      %40 = vector.shape_cast %39 : vector<8x16x8xbf16> to vector<128x8xbf16>
      %41 = vector.extract_strided_slice %12 {offsets = [2, 4, 0], sizes = [8, 16, 8], strides = [1, 1, 1]} : vector<12x20x8xbf16> to vector<8x16x8xbf16>
      %42 = vector.shape_cast %41 : vector<8x16x8xbf16> to vector<128x8xbf16>
      %43 = vector.extract_strided_slice %12 {offsets = [3, 0, 0], sizes = [8, 16, 8], strides = [1, 1, 1]} : vector<12x20x8xbf16> to vector<8x16x8xbf16>
      %44 = vector.shape_cast %43 : vector<8x16x8xbf16> to vector<128x8xbf16>
      %45 = vector.extract_strided_slice %12 {offsets = [3, 1, 0], sizes = [8, 16, 8], strides = [1, 1, 1]} : vector<12x20x8xbf16> to vector<8x16x8xbf16>
      %46 = vector.shape_cast %45 : vector<8x16x8xbf16> to vector<128x8xbf16>
      %47 = vector.extract_strided_slice %12 {offsets = [3, 2, 0], sizes = [8, 16, 8], strides = [1, 1, 1]} : vector<12x20x8xbf16> to vector<8x16x8xbf16>
      %48 = vector.shape_cast %47 : vector<8x16x8xbf16> to vector<128x8xbf16>
      %49 = vector.extract_strided_slice %12 {offsets = [3, 3, 0], sizes = [8, 16, 8], strides = [1, 1, 1]} : vector<12x20x8xbf16> to vector<8x16x8xbf16>
      %50 = vector.shape_cast %49 : vector<8x16x8xbf16> to vector<128x8xbf16>
      %51 = vector.extract_strided_slice %12 {offsets = [3, 4, 0], sizes = [8, 16, 8], strides = [1, 1, 1]} : vector<12x20x8xbf16> to vector<8x16x8xbf16>
      %52 = vector.shape_cast %51 : vector<8x16x8xbf16> to vector<128x8xbf16>
      %53 = vector.extract_strided_slice %12 {offsets = [4, 0, 0], sizes = [8, 16, 8], strides = [1, 1, 1]} : vector<12x20x8xbf16> to vector<8x16x8xbf16>
      %54 = vector.shape_cast %53 : vector<8x16x8xbf16> to vector<128x8xbf16>
      %55 = vector.extract_strided_slice %12 {offsets = [4, 1, 0], sizes = [8, 16, 8], strides = [1, 1, 1]} : vector<12x20x8xbf16> to vector<8x16x8xbf16>
      %56 = vector.shape_cast %55 : vector<8x16x8xbf16> to vector<128x8xbf16>
      %57 = vector.extract_strided_slice %12 {offsets = [4, 2, 0], sizes = [8, 16, 8], strides = [1, 1, 1]} : vector<12x20x8xbf16> to vector<8x16x8xbf16>
      %58 = vector.shape_cast %57 : vector<8x16x8xbf16> to vector<128x8xbf16>
      %59 = vector.extract_strided_slice %12 {offsets = [4, 3, 0], sizes = [8, 16, 8], strides = [1, 1, 1]} : vector<12x20x8xbf16> to vector<8x16x8xbf16>
      %60 = vector.shape_cast %59 : vector<8x16x8xbf16> to vector<128x8xbf16>
      %61 = vector.extract_strided_slice %12 {offsets = [4, 4, 0], sizes = [8, 16, 8], strides = [1, 1, 1]} : vector<12x20x8xbf16> to vector<8x16x8xbf16>
      %62 = vector.shape_cast %61 : vector<8x16x8xbf16> to vector<128x8xbf16>
      %63 = tpu.concatenate %14, %16, %18, %20, %22, %24, %26, %28, %30, %32, %34, %36, %38, %40, %42, %44 in 1 : vector<128x8xbf16>, vector<128x8xbf16>, vector<128x8xbf16>, vector<128x8xbf16>, vector<128x8xbf16>, vector<128x8xbf16>, vector<128x8xbf16>, vector<128x8xbf16>, vector<128x8xbf16>, vector<128x8xbf16>, vector<128x8xbf16>, vector<128x8xbf16>, vector<128x8xbf16>, vector<128x8xbf16>, vector<128x8xbf16>, vector<128x8xbf16> -> vector<128x128xbf16>
      %64 = tpu.concatenate %46, %48, %50, %52, %54, %56, %58, %60, %62 in 1 : vector<128x8xbf16>, vector<128x8xbf16>, vector<128x8xbf16>, vector<128x8xbf16>, vector<128x8xbf16>, vector<128x8xbf16>, vector<128x8xbf16>, vector<128x8xbf16>, vector<128x8xbf16> -> vector<128x72xbf16>
      %65 = tpu.concatenate %63, %64 in 1 : vector<128x128xbf16>, vector<128x72xbf16> -> vector<128x200xbf16>
      %cst_17 = arith.constant dense<0.000000e+00> : vector<128x12xf32>
      %66 = tpu.matmul %65, %5, %cst_17 {dimension_numbers = #tpu.dot_dimension_numbers<[1], [0], [0], [1], [0, 0, 1, 1], [], []>} : vector<128x200xbf16>, vector<200x12xbf16>, vector<128x12xf32> -> vector<128x12xf32>
      %c0_18 = arith.constant 0 : index
      %67 = arith.index_cast %10 : i32 to index
      %c0_19 = arith.constant 0 : index
      %c0_20 = arith.constant 0 : index
      %68 = vector.load %arg2[%c0_18, %67, %c0_19, %c0_20] : memref<1x16x16x75xbf16, #tpu.memory_space<vmem>>, vector<1x8x16x75xbf16>
      %69 = vector.shape_cast %68 : vector<1x8x16x75xbf16> to vector<8x16x75xbf16>
      %70 = vector.shape_cast %69 : vector<8x16x75xbf16> to vector<128x75xbf16>
      %cst_21 = arith.constant dense<0.000000e+00> : vector<128x12xf32>
      %71 = tpu.matmul %70, %6, %cst_21 {dimension_numbers = #tpu.dot_dimension_numbers<[1], [0], [0], [1], [0, 0, 1, 1], [], []>} : vector<128x75xbf16>, vector<75x12xbf16>, vector<128x12xf32> -> vector<128x12xf32>
      %72 = arith.addf %66, %71 : vector<128x12xf32>
      %73 = vector.broadcast %7 : vector<1x12xf32> to vector<128x12xf32>
      %74 = arith.addf %72, %73 : vector<128x12xf32>
      %75 = vector.shape_cast %74 : vector<128x12xf32> to vector<8x16x12xf32>
      %c0_22 = arith.constant 0 : index
      %76 = arith.index_cast %10 : i32 to index
      %c0_23 = arith.constant 0 : index
      %c0_24 = arith.constant 0 : index
      %77 = vector.load %arg6[%c0_22, %76, %c0_23, %c0_24] : memref<1x16x16x12xf32, #tpu.memory_space<vmem>>, vector<1x8x16x12xf32>
      %78 = vector.shape_cast %77 : vector<1x8x16x12xf32> to vector<8x16x12xf32>
      %79 = vector.shape_cast %75 : vector<8x16x12xf32> to vector<1x8x16x12xf32>
      tpu.vector_store %arg6[%c0_22, %76, %c0_23, %c0_24], %79 {strides = array<i32>} : memref<1x16x16x12xf32, #tpu.memory_space<vmem>>, vector<1x8x16x12xf32>,
    }
    %c2_i32_14 = arith.constant 2 : i32
    return
  }
  func.func @transform_0(%arg0: i32) -> (i32, i32, i32, i32) {
    %c0_i32 = arith.constant 0 : i32
    %c0_i32_0 = arith.constant 0 : i32
    %c0_i32_1 = arith.constant 0 : i32
    %c0_i32_2 = arith.constant 0 : i32
    return %arg0, %c0_i32, %c0_i32_0, %c0_i32_1 : i32, i32, i32, i32
  }
  func.func @transform_1(%arg0: i32) -> (i32, i32, i32, i32) {
    %c0_i32 = arith.constant 0 : i32
    %c0_i32_0 = arith.constant 0 : i32
    %c0_i32_1 = arith.constant 0 : i32
    %c0_i32_2 = arith.constant 0 : i32
    return %arg0, %c0_i32, %c0_i32_0, %c0_i32_1 : i32, i32, i32, i32
  }
  func.func @transform_2(%arg0: i32) -> (i32, i32) {
    %c0_i32 = arith.constant 0 : i32
    %c0_i32_0 = arith.constant 0 : i32
    %c0_i32_1 = arith.constant 0 : i32
    return %c0_i32, %c0_i32_0 : i32, i32
  }
  func.func @transform_3(%arg0: i32) -> (i32, i32) {
    %c0_i32 = arith.constant 0 : i32
    %c0_i32_0 = arith.constant 0 : i32
    %c0_i32_1 = arith.constant 0 : i32
    return %c0_i32, %c0_i32_0 : i32, i32
  }
  func.func @transform_4(%arg0: i32) -> (i32, i32) {
    %c0_i32 = arith.constant 0 : i32
    %c0_i32_0 = arith.constant 0 : i32
    %c0_i32_1 = arith.constant 0 : i32
    return %c0_i32, %c0_i32_0 : i32, i32
  }
  func.func @transform_5(%arg0: i32) -> (i32, i32, i32, i32) {
    %c0_i32 = arith.constant 0 : i32
    %c0_i32_0 = arith.constant 0 : i32
    %c0_i32_1 = arith.constant 0 : i32
    %c0_i32_2 = arith.constant 0 : i32
    return %arg0, %c0_i32, %c0_i32_0, %c0_i32_1 : i32, i32, i32, i32
  }
}

</mosaic_0001>

<bundles_post_ra>
// kernel: wdsr_forward.3
= control target key start
LH: loop header
LB: loop body
LE: loop exit
PB: predicated region body
PF: predicated region fallthrough
CT: control target
= control target key end

     0   :  { %s965_s12 = smov 0   ;;  %s1132_s0 = inlined_call_operand.vmem [shape: bf16[2,16,16,27], index: 0, kind: input, shape index: {}]   ;;  %s1133_s1 = inlined_call_operand.vmem [shape: bf16[27,8], index: 1, kind: input, shape index: {}]   ;;  %s1134_s2 = inlined_call_operand.vmem [shape: f32[1,8], index: 2, kind: input, shape index: {}]   ;;  %s1135_s3 = inlined_call_operand.vmem [shape: bf16[2,16,16,8], index: 3, kind: output, shape index: {}]  }
   0x1 LB: > { %s739_s13 = sadd.s32 4294967295, %s942_s12   ;;  %p743_p0 = scmp.ge.s32.totalorder %s942_s12, 1  ;;  %s942_s12 = sphi %s965_s12, %s13_s12  }
   0x2   : > { %p137_p1 = scmp.lt.s32.totalorder %s942_s12, 3 }
   0x4   : > { %p138_p2 = pnand %p743_p0, %p137_p1 }
   0x5   : > { %v918_v0 = vld [vmem:[%s1133_s1] sm:$0xff] (!%p138_p2)   ;;  %vm355_vm0 = vcmask (!%p138_p2), 1044480   ;;  %v919_v1 = vld [vmem:[%s1133_s1 + $0x8] sm:$0x3f] (!%p138_p2)   ;;  %vm356_vm1 = vcmask (!%p138_p2), 1045504   ;;  %p161_p3 = scmp.lt.s32.totalorder (!%p138_p2), %s739_s13, 1 }
   0x6   : > { %141 = sbr.rel (%p138_p2) target bundleno = 263 (0x107), region = 32  ;;  %869 = vmatprep.subr.bf16.mxu0 (!%p138_p2), %v918_v0  ;;  %905 = vmatprep.subr.bf16.mxu1 (!%p138_p2), %v918_v0  ;;  %v944_v2 = vmov (!%p138_p2), 65535   ;;  %vm306_vm2 = vcmask (!%p138_p2), 220160   ;;  %v1024_v22 = vld [vmem:[%s1134_s2] ss:$0 sm:$0xff] (!%p138_p2)  ;;  %vm651_vm3 = vcmask (!%p138_p2), 60416  }
   0x7   : > { %870 = vmatpush3.bf16.msra.mxu0 (!%p138_p2), %v918_v0  ;;  %907 = vmatpush3.bf16.msra.mxu1 (!%p138_p2), %v918_v0  ;;  %v357_v3 = vsel (!%p138_p2), %vm355_vm0, 4294967295, %v944_v2 }
   0x8   : > { %v358_v4 = vsel (!%p138_p2), %vm356_vm1, %v357_v3, 0 }
   0x9   : > { %v360_v5 = vand.u32 (!%p138_p2), %v919_v1, %v358_v4 }
   0xb   : > { %871 = vmatprep.subr.bf16.mxu0 (!%p138_p2), %v360_v5  ;;  %906 = vmatprep.subr.bf16.mxu1 (!%p138_p2), %v360_v5 }
   0xc   : > { %872 = vmatpush3.bf16.msra.mxu0 (!%p138_p2), %v360_v5  ;;  %908 = vmatpush3.bf16.msra.mxu1 (!%p138_p2), %v360_v5 }
   0xd   : > { %s1137_s13 = smov (!%p161_p3, %s739_s13), 1 }
   0xe   : > { %s817_s18 = sshll.u32 %s1137_s13, 7 }
   0xf   : > { %s987_s21 = scalar_lea.vmem %s1132_s0, %s817_s18  ;;  %s1032_s26 = scalar_lea.vmem %s1135_s3, %s817_s18 }
  0x10   : > { %v920_v6 = vld [vmem:[%s987_s21] sm:$0xff]   ;;  %v922_v8 = vld [vmem:[%s987_s21 + $0x8] sm:$0xff]   ;;  %v924_v10 = vld [vmem:[%s987_s21 + $0x10] sm:$0xff]  }
  0x11   : > { %v921_v7 = vld [vmem:[%s987_s21 + $0x40] sm:$0xff]   ;;  %873 = vmatprep.mubr.msk.bf16.mxu0 %vm306_vm2, %v920_v6  ;;  %v923_v9 = vld [vmem:[%s987_s21 + $0x48] sm:$0xff]   ;;  %v925_v11 = vld [vmem:[%s987_s21 + $0x50] sm:$0xff]  }
  0x12   : > { %889 = vmatprep.mubr.msk.bf16.mxu1 %vm306_vm2, %v921_v7  ;;  %874 = vmatmul.mubr.msk.bf16.vlgmr.msra.gmra.mrb[0].mxu0 %vm306_vm2, %v922_v8  ;;  %v926_v12 = vld [vmem:[%s987_s21 + $0x18] sm:$0xff]   ;;  %v928_v14 = vld [vmem:[%s987_s21 + $0x20] sm:$0xff]   ;;  %v930_v16 = vld [vmem:[%s987_s21 + $0x28] sm:$0xff]  }
  0x13   : > { %890 = vmatmul.mubr.msk.bf16.vlgmr.msra.gmra.mrb[0].mxu1 %vm306_vm2, %v923_v9  ;;  %877 = vmatprep.mubr.msk.bf16.mxu0 %vm306_vm2, %v924_v10  ;;  %v927_v13 = vld [vmem:[%s987_s21 + $0x58] sm:$0xff]   ;;  %v929_v15 = vld [vmem:[%s987_s21 + $0x60] sm:$0xff]   ;;  %v931_v17 = vld [vmem:[%s987_s21 + $0x68] sm:$0xff]  }
  0x14   : > { %893 = vmatprep.mubr.msk.bf16.mxu1 %vm306_vm2, %v925_v11  ;;  %v932_v18 = vld [vmem:[%s987_s21 + $0x30] sm:$0xff]   ;;  %v934_v20 = vld [vmem:[%s987_s21 + $0x38] sm:$0xff]  }
  0x15   : > { %v933_v19 = vld [vmem:[%s987_s21 + $0x70] sm:$0xff]   ;;  %v935_v21 = vld [vmem:[%s987_s21 + $0x78] sm:$0xff]  }
  0x1a   : > { %878 = vmatmul.mubr.msk.bf16.gmra.mrb[4].mxu0 %vm306_vm2, %v926_v12 }
  0x1b   : > { %894 = vmatmul.mubr.msk.bf16.gmra.mrb[4].mxu1 %vm306_vm2, %v927_v13  ;;  %881 = vmatprep.mubr.msk.bf16.mxu0 %vm306_vm2, %v928_v14 }
  0x1c   : > { %897 = vmatprep.mubr.msk.bf16.mxu1 %vm306_vm2, %v929_v15 }
  0x22   : > { %882 = vmatmul.mubr.msk.bf16.gmra.mrb[8].mxu0 %vm306_vm2, %v930_v16 }
  0x23   : > { %898 = vmatmul.mubr.msk.bf16.gmra.mrb[8].mxu1 %vm306_vm2, %v931_v17  ;;  %885 = vmatprep.mubr.msk.bf16.mxu0 %vm306_vm2, %v932_v18 }
  0x24   : > { %901 = vmatprep.mubr.msk.bf16.mxu1 %vm306_vm2, %v933_v19 }
  0x2a   : > { %886 = vmatmul.mubr.msk.bf16.gmra.mrb[12].mxu0 %vm306_vm2, %v934_v20 }
  0x2b   : > { %902 = vmatmul.mubr.msk.bf16.gmra.mrb[12].mxu1 %vm306_vm2, %v935_v21 }
  0xe5   : > { %v875_v23 = vpop.f32.mrb[0].mxu0 }
  0xe6   : > { %v405_v24 = vadd.f32 %v875_v23, %v1024_v22  ;;  %v891_v25 = vpop.f32.mrb[0].mxu1  ;;  %v396_v26 = vpop.f32.mrb[1].mxu0 }
  0xe7   : > { %v469_v27 = vadd.f32 %v891_v25, %v1024_v22  ;;  %v397_v28 = vadd.f32 %v1024_v22, %v396_v26  ;;  %v460_v29 = vpop.f32.mrb[1].mxu1  ;;  %v876_v30 = vpop.f32.mrb[2].mxu0 }
  0xe8   : > { %v821_v31 = vpack.c.bf16 %v405_v24, %v405_v24  ;;  %v461_v32 = vadd.f32 %v1024_v22, %v460_v29  ;;  %v408_v33 = vadd.f32 %v876_v30, %v1024_v22  ;;  %v892_v34 = vpop.f32.mrb[2].mxu1  ;;  %v399_v35 = vpop.f32.mrb[3].mxu0 }
  0xe9   : > { %v837_v36 = vpack.c.bf16 %v469_v27, %v469_v27  ;;  %v819_v37 = vpack.c.bf16 %v397_v28, %v397_v28  ;;  %v472_v38 = vadd.f32 %v892_v34, %v1024_v22  ;;  %v400_v39 = vadd.f32 %v1024_v22, %v399_v35  ;;  %v463_v40 = vpop.f32.mrb[3].mxu1 }
  0xea   : > { %654 = vst.msk [vmem:[%s1032_s26 + $0x8] sm:$0xf] %vm651_vm3, %v821_v31  ;;  %v835_v41 = vpack.c.bf16 %v461_v32, %v461_v32  ;;  %v822_v42 = vpack.c.bf16 %v408_v33, %v408_v33  ;;  %v464_v43 = vadd.f32 %v1024_v22, %v463_v40 }
  0xeb   : > { %670 = vst.msk [vmem:[%s1032_s26 + $0x48] sm:$0xf] %vm651_vm3, %v837_v36  ;;  %652 = vst.msk [vmem:[%s1032_s26] sm:$0xf] %vm651_vm3, %v819_v37  ;;  %v838_v44 = vpack.c.bf16 %v472_v38, %v472_v38  ;;  %v820_v45 = vpack.c.bf16 %v400_v39, %v400_v39 }
  0xec   : > { %668 = vst.msk [vmem:[%s1032_s26 + $0x40] sm:$0xf] %vm651_vm3, %v835_v41  ;;  %655 = vst.msk [vmem:[%s1032_s26 + $0xc] sm:$0xf] %vm651_vm3, %v822_v42  ;;  %v836_v46 = vpack.c.bf16 %v464_v43, %v464_v43 }
  0xed   : > { %671 = vst.msk [vmem:[%s1032_s26 + $0x4c] sm:$0xf] %vm651_vm3, %v838_v44  ;;  %653 = vst.msk [vmem:[%s1032_s26 + $0x4] sm:$0xf] %vm651_vm3, %v820_v45  ;;  %v879_v47 = vpop.f32.mrb[4].mxu0 }
  0xee   : > { %669 = vst.msk [vmem:[%s1032_s26 + $0x44] sm:$0xf] %vm651_vm3, %v836_v46  ;;  %v421_v48 = vadd.f32 %v879_v47, %v1024_v22  ;;  %v895_v49 = vpop.f32.mrb[4].mxu1  ;;  %v412_v50 = vpop.f32.mrb[5].mxu0 }
  0xef   : > { %v485_v51 = vadd.f32 %v895_v49, %v1024_v22  ;;  %v413_v52 = vadd.f32 %v1024_v22, %v412_v50  ;;  %v476_v53 = vpop.f32.mrb[5].mxu1  ;;  %v880_v54 = vpop.f32.mrb[6].mxu0 }
  0xf0   : > { %v825_v55 = vpack.c.bf16 %v421_v48, %v421_v48  ;;  %v477_v56 = vadd.f32 %v1024_v22, %v476_v53  ;;  %v424_v57 = vadd.f32 %v880_v54, %v1024_v22  ;;  %v896_v58 = vpop.f32.mrb[6].mxu1  ;;  %v415_v59 = vpop.f32.mrb[7].mxu0 }
  0xf1   : > { %v841_v60 = vpack.c.bf16 %v485_v51, %v485_v51  ;;  %v823_v61 = vpack.c.bf16 %v413_v52, %v413_v52  ;;  %v488_v62 = vadd.f32 %v896_v58, %v1024_v22  ;;  %v416_v63 = vadd.f32 %v1024_v22, %v415_v59  ;;  %v479_v0 = vpop.f32.mrb[7].mxu1 }
  0xf2   : > { %658 = vst.msk [vmem:[%s1032_s26 + $0x18] sm:$0xf] %vm651_vm3, %v825_v55  ;;  %v839_v1 = vpack.c.bf16 %v477_v56, %v477_v56  ;;  %v826_v2 = vpack.c.bf16 %v424_v57, %v424_v57  ;;  %v480_v3 = vadd.f32 %v1024_v22, %v479_v0 }
  0xf3   : > { %674 = vst.msk [vmem:[%s1032_s26 + $0x58] sm:$0xf] %vm651_vm3, %v841_v60  ;;  %656 = vst.msk [vmem:[%s1032_s26 + $0x10] sm:$0xf] %vm651_vm3, %v823_v61  ;;  %v842_v4 = vpack.c.bf16 %v488_v62, %v488_v62  ;;  %v824_v5 = vpack.c.bf16 %v416_v63, %v416_v63 }
  0xf4   : > { %672 = vst.msk [vmem:[%s1032_s26 + $0x50] sm:$0xf] %vm651_vm3, %v839_v1  ;;  %659 = vst.msk [vmem:[%s1032_s26 + $0x1c] sm:$0xf] %vm651_vm3, %v826_v2  ;;  %v840_v6 = vpack.c.bf16 %v480_v3, %v480_v3 }
  0xf5   : > { %675 = vst.msk [vmem:[%s1032_s26 + $0x5c] sm:$0xf] %vm651_vm3, %v842_v4  ;;  %657 = vst.msk [vmem:[%s1032_s26 + $0x14] sm:$0xf] %vm651_vm3, %v824_v5  ;;  %v883_v7 = vpop.f32.mrb[8].mxu0 }
  0xf6   : > { %673 = vst.msk [vmem:[%s1032_s26 + $0x54] sm:$0xf] %vm651_vm3, %v840_v6  ;;  %v437_v8 = vadd.f32 %v883_v7, %v1024_v22  ;;  %v899_v9 = vpop.f32.mrb[8].mxu1  ;;  %v428_v10 = vpop.f32.mrb[9].mxu0 }
  0xf7   : > { %v501_v11 = vadd.f32 %v899_v9, %v1024_v22  ;;  %v429_v12 = vadd.f32 %v1024_v22, %v428_v10  ;;  %v492_v13 = vpop.f32.mrb[9].mxu1  ;;  %v884_v14 = vpop.f32.mrb[10].mxu0 }
  0xf8   : > { %v829_v15 = vpack.c.bf16 %v437_v8, %v437_v8  ;;  %v493_v16 = vadd.f32 %v1024_v22, %v492_v13  ;;  %v440_v17 = vadd.f32 %v884_v14, %v1024_v22  ;;  %v900_v18 = vpop.f32.mrb[10].mxu1  ;;  %v431_v19 = vpop.f32.mrb[11].mxu0 }
  0xf9   : > { %v845_v20 = vpack.c.bf16 %v501_v11, %v501_v11  ;;  %v827_v21 = vpack.c.bf16 %v429_v12, %v429_v12  ;;  %v504_v23 = vadd.f32 %v900_v18, %v1024_v22  ;;  %v432_v24 = vadd.f32 %v1024_v22, %v431_v19  ;;  %v495_v25 = vpop.f32.mrb[11].mxu1 }
  0xfa   : > { %662 = vst.msk [vmem:[%s1032_s26 + $0x28] sm:$0xf] %vm651_vm3, %v829_v15  ;;  %v843_v26 = vpack.c.bf16 %v493_v16, %v493_v16  ;;  %v830_v27 = vpack.c.bf16 %v440_v17, %v440_v17  ;;  %v496_v28 = vadd.f32 %v1024_v22, %v495_v25 }
  0xfb   : > { %678 = vst.msk [vmem:[%s1032_s26 + $0x68] sm:$0xf] %vm651_vm3, %v845_v20  ;;  %660 = vst.msk [vmem:[%s1032_s26 + $0x20] sm:$0xf] %vm651_vm3, %v827_v21  ;;  %v846_v29 = vpack.c.bf16 %v504_v23, %v504_v23  ;;  %v828_v30 = vpack.c.bf16 %v432_v24, %v432_v24 }
  0xfc   : > { %676 = vst.msk [vmem:[%s1032_s26 + $0x60] sm:$0xf] %vm651_vm3, %v843_v26  ;;  %663 = vst.msk [vmem:[%s1032_s26 + $0x2c] sm:$0xf] %vm651_vm3, %v830_v27  ;;  %v844_v31 = vpack.c.bf16 %v496_v28, %v496_v28 }
  0xfd   : > { %679 = vst.msk [vmem:[%s1032_s26 + $0x6c] sm:$0xf] %vm651_vm3, %v846_v29  ;;  %661 = vst.msk [vmem:[%s1032_s26 + $0x24] sm:$0xf] %vm651_vm3, %v828_v30  ;;  %v887_v32 = vpop.f32.mrb[12].mxu0 }
  0xfe   : > { %677 = vst.msk [vmem:[%s1032_s26 + $0x64] sm:$0xf] %vm651_vm3, %v844_v31  ;;  %v453_v33 = vadd.f32 %v887_v32, %v1024_v22  ;;  %v903_v34 = vpop.f32.mrb[12].mxu1  ;;  %v444_v35 = vpop.f32.mrb[13].mxu0 }
  0xff   : > { %v517_v36 = vadd.f32 %v903_v34, %v1024_v22  ;;  %v445_v37 = vadd.f32 %v1024_v22, %v444_v35  ;;  %v508_v38 = vpop.f32.mrb[13].mxu1  ;;  %v888_v39 = vpop.f32.mrb[14].mxu0 }
 0x100   : > { %v833_v40 = vpack.c.bf16 %v453_v33, %v453_v33  ;;  %v509_v41 = vadd.f32 %v1024_v22, %v508_v38  ;;  %v456_v42 = vadd.f32 %v888_v39, %v1024_v22  ;;  %v904_v43 = vpop.f32.mrb[14].mxu1  ;;  %v447_v44 = vpop.f32.mrb[15].mxu0 }
 0x101   : > { %v849_v45 = vpack.c.bf16 %v517_v36, %v517_v36  ;;  %v831_v46 = vpack.c.bf16 %v445_v37, %v445_v37  ;;  %v520_v47 = vadd.f32 %v904_v43, %v1024_v22  ;;  %v448_v48 = vadd.f32 %v1024_v22, %v447_v44  ;;  %v511_v49 = vpop.f32.mrb[15].mxu1 }
 0x102   : > { %666 = vst.msk [vmem:[%s1032_s26 + $0x38] sm:$0xf] %vm651_vm3, %v833_v40  ;;  %v847_v50 = vpack.c.bf16 %v509_v41, %v509_v41  ;;  %v834_v51 = vpack.c.bf16 %v456_v42, %v456_v42  ;;  %v512_v52 = vadd.f32 %v1024_v22, %v511_v49 }
 0x103   : > { %682 = vst.msk [vmem:[%s1032_s26 + $0x78] sm:$0xf] %vm651_vm3, %v849_v45  ;;  %664 = vst.msk [vmem:[%s1032_s26 + $0x30] sm:$0xf] %vm651_vm3, %v831_v46  ;;  %v850_v53 = vpack.c.bf16 %v520_v47, %v520_v47  ;;  %v832_v54 = vpack.c.bf16 %v448_v48, %v448_v48 }
 0x104   : > { %680 = vst.msk [vmem:[%s1032_s26 + $0x70] sm:$0xf] %vm651_vm3, %v847_v50  ;;  %667 = vst.msk [vmem:[%s1032_s26 + $0x3c] sm:$0xf] %vm651_vm3, %v834_v51  ;;  %v848_v55 = vpack.c.bf16 %v512_v52, %v512_v52 }
 0x105   : > { %683 = vst.msk [vmem:[%s1032_s26 + $0x7c] sm:$0xf] %vm651_vm3, %v850_v53  ;;  %665 = vst.msk [vmem:[%s1032_s26 + $0x34] sm:$0xf] %vm651_vm3, %v832_v54 }
 0x106   : > { %681 = vst.msk [vmem:[%s1032_s26 + $0x74] sm:$0xf] %vm651_vm3, %v848_v55 }
 0x107 PF: > { %s13_s12 = sadd.s32 1, %s942_s12  }
 0x108   : > { %p10_p4 = scmp.ge.s32.totalorder %s13_s12, 4  }
 0x10a   :  { %12 = sbr.rel (!%p10_p4) target bundleno = 1 (0x1), region = 62 }

// kernel: wdsr_forward.4
= control target key start
LH: loop header
LB: loop body
LE: loop exit
PB: predicated region body
PF: predicated region fallthrough
CT: control target
= control target key end

     0   :  { %s3075_s24 = smov 0   ;;  %s3077_s25 = smov 0   ;;  %s4275_s0 = inlined_call_operand.vmem [shape: bf16[2,16,16,8], index: 0, kind: input, shape index: {}]   ;;  %s4276_s1 = inlined_call_operand.vmem [shape: bf16[4,8,48], index: 1, kind: input, shape index: {}]   ;;  %s4277_s2 = inlined_call_operand.vmem [shape: f32[4,1,48], index: 2, kind: input, shape index: {}]   ;;  %s4278_s3 = inlined_call_operand.vmem [shape: bf16[4,48,6], index: 3, kind: input, shape index: {}]   ;;  %s4279_s4 = inlined_call_operand.vmem [shape: f32[4,1,6], index: 4, kind: input, shape index: {}]   ;;  %s4280_s5 = inlined_call_operand.vmem [shape: bf16[4,54,8], index: 5, kind: input, shape index: {}]   ;;  %s4281_s6 = inlined_call_operand.vmem [shape: f32[4,1,8], index: 6, kind: input, shape index: {}]   ;;  %s4282_s7 = inlined_call_operand.vmem [shape: bf16[2,16,16,8], index: 7, kind: output, shape index: {}]  }
   0x1   :  { %4283 = sst [smem:[#allocation5_spill]] %s4275_s0  ;;  %s3079_s26 = smov 0  }
   0x2   :  { %s3081_s27 = smov 0   ;;  %s3083_s28 = smov 0  }
   0x3 LB: > { %s26_s29 = sadd.s32 1, %s3008_s26  ;;  %s29_s30 = sadd.s32 1, %s3012_s27  ;;  %s3016_s28 = sphi %s3083_s28, %s17_s28   ;;  %s3012_s27 = sphi %s3081_s27, %s4305_s27   ;;  %s3008_s26 = sphi %s3079_s26, %s4304_s26   ;;  %s3004_s25 = sphi %s3077_s25, %s4303_s25   ;;  %s3000_s24 = sphi %s3075_s24, %s4302_s24  }
   0x4   : > { %p27_p0 = scmp.ge.s32.totalorder %s26_s29, 4  ;;  %p2484_p1 = scmp.ge.s32.totalorder %s3016_s28, 1 }
   0x5   : > { %p302_p2 = scmp.lt.s32.totalorder %s3016_s28, 9 }
   0x6   : > { %s4307_s29 = smov (%p27_p0, %s26_s29), 0  ;;  %s4309_s30 = smov (!%p27_p0, %s29_s30), %s3012_s27 }
   0x7   : > { %4284 = sst [smem:[#allocation3_spill]] %s4307_s29  ;;  %p303_p3 = pnand %p2484_p1, %p302_p2 }
   0x8   : > { %p31_p4 = scmp.ge.s32.totalorder %s4309_s30, 2  ;;  %p357_p5 = scmp.lt.s32.totalorder (!%p303_p3), %s3004_s25, 1 }
   0x9   : > { %306 = sbr.rel (%p303_p3) target bundleno = 1083 (0x43b), region = 48  ;;  %p362_p6 = scmp.lt.s32.totalorder (!%p303_p3), %s3000_s24, 3 }
   0xa   : > { %s4311_s30 = smov (%p31_p4, %s4309_s30), 0  ;;  %s4286_s0 = sld [smem:[#allocation5_spill]] (!%p303_p3) }
   0xb   : > { %4285 = sst [smem:[#allocation4_spill]] %s4311_s30  ;;  %p2492_p7 = scmp.ne.s32.totalorder (!%p303_p3), %s3000_s24, 0 }
  0x10   : > { %s4313_s25 = smov (!%p357_p5, %s3004_s25), 1  ;;  %vm427_vm0 = vcmask (!%p2492_p7), 60416   ;;  %vm460_vm1 = vcmask (!%p2492_p7), 44032   ;;  %vm463_vm2 = vcmask (!%p2492_p7), 40960   ;;  %v3026_v32 = vmov (!%p2492_p7), 0  }
  0x11   : > { %s3109_s8 = scalar_select %p362_p6, %s3000_s24, 3 }
  0x12   : > { %s2675_s9 = sshll.u32 %s4313_s25, 7  ;;  %394 = sbr.rel (%p2492_p7) target bundleno = 68 (0x44), region = 52  ;;  %461 = vst.msk [vmem:[#allocation2] sm:$0xf] (!%p2492_p7), %vm460_vm1, %v3026_v32  ;;  %462 = vst.msk [vmem:[#allocation2 + $0x4] sm:$0xf] (!%p2492_p7), %vm460_vm1, %v3026_v32 }
  0x13   : > { %s3114_s12 = scalar_lea.vmem %s4286_s0, %s2675_s9  ;;  %s2487_s13 = sshll.u32 %s3109_s8, 2  ;;  %465 = vst.msk [vmem:[#allocation2 + $0xc] sm:$0xf] (!%p2492_p7), %vm460_vm1, %v3026_v32  ;;  %466 = vst.msk [vmem:[#allocation2 + $0x10] sm:$0xf] (!%p2492_p7), %vm460_vm1, %v3026_v32 }
  0x14   : > { %s3120_s16 = scalar_lea.vmem %s4276_s1, %s2487_s13  ;;  %s2821_s20 = smul.u32 24, %s3109_s8  ;;  %v395_v0 = vld [vmem:[%s3114_s12] sm:$0xf] (!%p2492_p7)  ;;  %v396_v1 = vld [vmem:[%s3114_s12 + $0x4] sm:$0xf] (!%p2492_p7) }
  0x15   : > { %s376_s23 = scalar_lea.vmem %s4279_s4, %s3109_s8  ;;  %s2822_s25 = smul.u32 28, %s3109_s8  ;;  %v397_v2 = vld [vmem:[%s3114_s12 + $0x8] sm:$0xf] (!%p2492_p7)  ;;  %v398_v3 = vld [vmem:[%s3114_s12 + $0xc] sm:$0xf] (!%p2492_p7) }
  0x16   : > { %s384_s11 = scalar_lea.vmem %s4281_s6, %s3109_s8  ;;  %s3139_s14 = scalar_lea.vmem %s4278_s3, %s2821_s20  ;;  %v399_v4 = vld [vmem:[%s3114_s12 + $0x10] sm:$0xf] (!%p2492_p7)  ;;  %v400_v5 = vld [vmem:[%s3114_s12 + $0x14] sm:$0xf] (!%p2492_p7)  ;;  %v401_v6 = vld [vmem:[%s3114_s12 + $0x18] sm:$0xf] (!%p2492_p7) }
  0x17   : > { %s3144_s17 = scalar_lea.vmem %s4282_s7, %s2675_s9  ;;  %s3149_s21 = scalar_lea.vmem %s4280_s5, %s2822_s25  ;;  %v402_v7 = vld [vmem:[%s3114_s12 + $0x1c] sm:$0xf] (!%p2492_p7)  ;;  %v403_v8 = vld [vmem:[%s3114_s12 + $0x20] sm:$0xf] (!%p2492_p7)  ;;  %v404_v9 = vld [vmem:[%s3114_s12 + $0x24] sm:$0xf] (!%p2492_p7) }
  0x18   : > { %428 = vst.msk [vmem:[%s3144_s17] sm:$0xf] (!%p2492_p7), %vm427_vm0, %v395_v0  ;;  %429 = vst.msk [vmem:[%s3144_s17 + $0x4] sm:$0xf] (!%p2492_p7), %vm427_vm0, %v396_v1  ;;  %v405_v10 = vld [vmem:[%s3114_s12 + $0x28] sm:$0xf] (!%p2492_p7) }
  0x19   : > { %430 = vst.msk [vmem:[%s3144_s17 + $0x8] sm:$0xf] %vm427_vm0, %v397_v2  ;;  %431 = vst.msk [vmem:[%s3144_s17 + $0xc] sm:$0xf] %vm427_vm0, %v398_v3  ;;  %v406_v11 = vld [vmem:[%s3114_s12 + $0x2c] sm:$0xf] }
  0x1a   : > { %432 = vst.msk [vmem:[%s3144_s17 + $0x10] sm:$0xf] %vm427_vm0, %v399_v4  ;;  %433 = vst.msk [vmem:[%s3144_s17 + $0x14] sm:$0xf] %vm427_vm0, %v400_v5  ;;  %v407_v12 = vld [vmem:[%s3114_s12 + $0x30] sm:$0xf] }
  0x1b   : > { %434 = vst.msk [vmem:[%s3144_s17 + $0x18] sm:$0xf] %vm427_vm0, %v401_v6  ;;  %435 = vst.msk [vmem:[%s3144_s17 + $0x1c] sm:$0xf] %vm427_vm0, %v402_v7  ;;  %v408_v13 = vld [vmem:[%s3114_s12 + $0x34] sm:$0xf] }
  0x1c   : > { %436 = vst.msk [vmem:[%s3144_s17 + $0x20] sm:$0xf] %vm427_vm0, %v403_v8  ;;  %437 = vst.msk [vmem:[%s3144_s17 + $0x24] sm:$0xf] %vm427_vm0, %v404_v9  ;;  %v409_v14 = vld [vmem:[%s3114_s12 + $0x38] sm:$0xf] }
  0x1d   : > { %438 = vst.msk [vmem:[%s3144_s17 + $0x28] sm:$0xf] %vm427_vm0, %v405_v10  ;;  %439 = vst.msk [vmem:[%s3144_s17 + $0x2c] sm:$0xf] %vm427_vm0, %v406_v11  ;;  %v410_v15 = vld [vmem:[%s3114_s12 + $0x3c] sm:$0xf] }
  0x1e   : > { %440 = vst.msk [vmem:[%s3144_s17 + $0x30] sm:$0xf] %vm427_vm0, %v407_v12  ;;  %441 = vst.msk [vmem:[%s3144_s17 + $0x34] sm:$0xf] %vm427_vm0, %v408_v13  ;;  %v411_v16 = vld [vmem:[%s3114_s12 + $0x40] sm:$0xf] }
  0x1f   : > { %442 = vst.msk [vmem:[%s3144_s17 + $0x38] sm:$0xf] %vm427_vm0, %v409_v14  ;;  %443 = vst.msk [vmem:[%s3144_s17 + $0x3c] sm:$0xf] %vm427_vm0, %v410_v15  ;;  %v412_v17 = vld [vmem:[%s3114_s12 + $0x44] sm:$0xf] }
  0x20   : > { %444 = vst.msk [vmem:[%s3144_s17 + $0x40] sm:$0xf] %vm427_vm0, %v411_v16  ;;  %v413_v18 = vld [vmem:[%s3114_s12 + $0x48] sm:$0xf]  ;;  %v414_v19 = vld [vmem:[%s3114_s12 + $0x4c] sm:$0xf] }
  0x21   : > { %445 = vst.msk [vmem:[%s3144_s17 + $0x44] sm:$0xf] %vm427_vm0, %v412_v17  ;;  %446 = vst.msk [vmem:[%s3144_s17 + $0x48] sm:$0xf] %vm427_vm0, %v413_v18  ;;  %v415_v20 = vld [vmem:[%s3114_s12 + $0x50] sm:$0xf] }
  0x22   : > { %447 = vst.msk [vmem:[%s3144_s17 + $0x4c] sm:$0xf] %vm427_vm0, %v414_v19  ;;  %v416_v21 = vld [vmem:[%s3114_s12 + $0x54] sm:$0xf]  ;;  %v417_v22 = vld [vmem:[%s3114_s12 + $0x58] sm:$0xf] }
  0x23   : > { %448 = vst.msk [vmem:[%s3144_s17 + $0x50] sm:$0xf] %vm427_vm0, %v415_v20  ;;  %449 = vst.msk [vmem:[%s3144_s17 + $0x54] sm:$0xf] %vm427_vm0, %v416_v21  ;;  %v418_v23 = vld [vmem:[%s3114_s12 + $0x5c] sm:$0xf] }
  0x24   : > { %450 = vst.msk [vmem:[%s3144_s17 + $0x58] sm:$0xf] %vm427_vm0, %v417_v22  ;;  %v419_v24 = vld [vmem:[%s3114_s12 + $0x60] sm:$0xf]  ;;  %v420_v25 = vld [vmem:[%s3114_s12 + $0x64] sm:$0xf] }
  0x25   : > { %451 = vst.msk [vmem:[%s3144_s17 + $0x5c] sm:$0xf] %vm427_vm0, %v418_v23  ;;  %452 = vst.msk [vmem:[%s3144_s17 + $0x60] sm:$0xf] %vm427_vm0, %v419_v24  ;;  %v421_v26 = vld [vmem:[%s3114_s12 + $0x68] sm:$0xf] }
  0x26   : > { %453 = vst.msk [vmem:[%s3144_s17 + $0x64] sm:$0xf] %vm427_vm0, %v420_v25  ;;  %v422_v27 = vld [vmem:[%s3114_s12 + $0x6c] sm:$0xf]  ;;  %v423_v28 = vld [vmem:[%s3114_s12 + $0x70] sm:$0xf] }
  0x27   : > { %454 = vst.msk [vmem:[%s3144_s17 + $0x68] sm:$0xf] %vm427_vm0, %v421_v26  ;;  %455 = vst.msk [vmem:[%s3144_s17 + $0x6c] sm:$0xf] %vm427_vm0, %v422_v27  ;;  %v424_v29 = vld [vmem:[%s3114_s12 + $0x74] sm:$0xf] }
  0x28   : > { %456 = vst.msk [vmem:[%s3144_s17 + $0x70] sm:$0xf] %vm427_vm0, %v423_v28  ;;  %v425_v30 = vld [vmem:[%s3114_s12 + $0x78] sm:$0xf]  ;;  %v426_v31 = vld [vmem:[%s3114_s12 + $0x7c] sm:$0xf] }
  0x29   : > { %457 = vst.msk [vmem:[%s3144_s17 + $0x74] sm:$0xf] %vm427_vm0, %v424_v29  ;;  %458 = vst.msk [vmem:[%s3144_s17 + $0x78] sm:$0xf] %vm427_vm0, %v425_v30 }
  0x2a   : > { %459 = vst.msk [vmem:[%s3144_s17 + $0x7c] sm:$0xf] %vm427_vm0, %v426_v31 }
  0x2b   : > { %468 = vst.msk [vmem:[#allocation2 + $0x18] sm:$0xf] %vm460_vm1, %v3026_v32  ;;  %469 = vst.msk [vmem:[#allocation2 + $0x1c] sm:$0xf] %vm460_vm1, %v3026_v32 }
  0x2c   : > { %471 = vst.msk [vmem:[#allocation2 + $0x24] sm:$0xf] %vm460_vm1, %v3026_v32  ;;  %472 = vst.msk [vmem:[#allocation2 + $0x28] sm:$0xf] %vm460_vm1, %v3026_v32 }
  0x2d   : > { %474 = vst.msk [vmem:[#allocation2 + $0x30] sm:$0xf] %vm460_vm1, %v3026_v32  ;;  %475 = vst.msk [vmem:[#allocation2 + $0x34] sm:$0xf] %vm460_vm1, %v3026_v32 }
  0x2e   : > { %477 = vst.msk [vmem:[#allocation2 + $0x3c] sm:$0xf] %vm460_vm1, %v3026_v32  ;;  %478 = vst.msk [vmem:[#allocation2 + $0x40] sm:$0xf] %vm460_vm1, %v3026_v32 }
  0x2f   : > { %480 = vst.msk [vmem:[#allocation2 + $0x48] sm:$0xf] %vm460_vm1, %v3026_v32  ;;  %481 = vst.msk [vmem:[#allocation2 + $0x4c] sm:$0xf] %vm460_vm1, %v3026_v32 }
  0x30   : > { %483 = vst.msk [vmem:[#allocation2 + $0x54] sm:$0xf] %vm460_vm1, %v3026_v32  ;;  %484 = vst.msk [vmem:[#allocation2 + $0x58] sm:$0xf] %vm460_vm1, %v3026_v32 }
  0x31   : > { %486 = vst.msk [vmem:[#allocation2 + $0x60] sm:$0xf] %vm460_vm1, %v3026_v32  ;;  %487 = vst.msk [vmem:[#allocation2 + $0x64] sm:$0xf] %vm460_vm1, %v3026_v32 }
  0x32   : > { %489 = vst.msk [vmem:[#allocation2 + $0x6c] sm:$0xf] %vm460_vm1, %v3026_v32  ;;  %490 = vst.msk [vmem:[#allocation2 + $0x70] sm:$0xf] %vm460_vm1, %v3026_v32 }
  0x33   : > { %492 = vst.msk [vmem:[#allocation2 + $0x78] sm:$0xf] %vm460_vm1, %v3026_v32  ;;  %493 = vst.msk [vmem:[#allocation2 + $0x7c] sm:$0xf] %vm460_vm1, %v3026_v32 }
  0x34   : > { %495 = vst.msk [vmem:[#allocation2 + $0x84] sm:$0xf] %vm460_vm1, %v3026_v32  ;;  %496 = vst.msk [vmem:[#allocation2 + $0x88] sm:$0xf] %vm460_vm1, %v3026_v32 }
  0x35   : > { %498 = vst.msk [vmem:[#allocation2 + $0x90] sm:$0xf] %vm460_vm1, %v3026_v32  ;;  %499 = vst.msk [vmem:[#allocation2 + $0x94] sm:$0xf] %vm460_vm1, %v3026_v32 }
  0x36   : > { %501 = vst.msk [vmem:[#allocation2 + $0x9c] sm:$0xf] %vm460_vm1, %v3026_v32  ;;  %502 = vst.msk [vmem:[#allocation2 + $0xa0] sm:$0xf] %vm460_vm1, %v3026_v32 }
  0x37   : > { %504 = vst.msk [vmem:[#allocation2 + $0xa8] sm:$0xf] %vm460_vm1, %v3026_v32  ;;  %505 = vst.msk [vmem:[#allocation2 + $0xac] sm:$0xf] %vm460_vm1, %v3026_v32 }
  0x38   : > { %507 = vst.msk [vmem:[#allocation2 + $0xb4] sm:$0xf] %vm460_vm1, %v3026_v32  ;;  %508 = vst.msk [vmem:[#allocation2 + $0xb8] sm:$0xf] %vm460_vm1, %v3026_v32 }
  0x39   : > { %510 = vst.msk [vmem:[#allocation2 + $0xc0] sm:$0xf] %vm460_vm1, %v3026_v32  ;;  %511 = vst.msk [vmem:[#allocation2 + $0xc4] sm:$0xf] %vm460_vm1, %v3026_v32 }
  0x3a   : > { %513 = vst.msk [vmem:[#allocation2 + $0xcc] sm:$0xf] %vm460_vm1, %v3026_v32  ;;  %514 = vst.msk [vmem:[#allocation2 + $0xd0] sm:$0xf] %vm460_vm1, %v3026_v32 }
  0x3b   : > { %464 = vst.msk [vmem:[#allocation2 + $0x8] sm:$0x1] %vm463_vm2, %v3026_v32  ;;  %467 = vst.msk [vmem:[#allocation2 + $0x14] sm:$0x1] %vm463_vm2, %v3026_v32 }
  0x3c   : > { %470 = vst.msk [vmem:[#allocation2 + $0x20] sm:$0x1] %vm463_vm2, %v3026_v32  ;;  %473 = vst.msk [vmem:[#allocation2 + $0x2c] sm:$0x1] %vm463_vm2, %v3026_v32 }
  0x3d   : > { %476 = vst.msk [vmem:[#allocation2 + $0x38] sm:$0x1] %vm463_vm2, %v3026_v32  ;;  %479 = vst.msk [vmem:[#allocation2 + $0x44] sm:$0x1] %vm463_vm2, %v3026_v32 }
  0x3e   : > { %482 = vst.msk [vmem:[#allocation2 + $0x50] sm:$0x1] %vm463_vm2, %v3026_v32  ;;  %485 = vst.msk [vmem:[#allocation2 + $0x5c] sm:$0x1] %vm463_vm2, %v3026_v32 }
  0x3f   : > { %488 = vst.msk [vmem:[#allocation2 + $0x68] sm:$0x1] %vm463_vm2, %v3026_v32  ;;  %491 = vst.msk [vmem:[#allocation2 + $0x74] sm:$0x1] %vm463_vm2, %v3026_v32 }
  0x40   : > { %494 = vst.msk [vmem:[#allocation2 + $0x80] sm:$0x1] %vm463_vm2, %v3026_v32  ;;  %497 = vst.msk [vmem:[#allocation2 + $0x8c] sm:$0x1] %vm463_vm2, %v3026_v32 }
  0x41   : > { %500 = vst.msk [vmem:[#allocation2 + $0x98] sm:$0x1] %vm463_vm2, %v3026_v32  ;;  %503 = vst.msk [vmem:[#allocation2 + $0xa4] sm:$0x1] %vm463_vm2, %v3026_v32 }
  0x42   : > { %506 = vst.msk [vmem:[#allocation2 + $0xb0] sm:$0x1] %vm463_vm2, %v3026_v32  ;;  %509 = vst.msk [vmem:[#allocation2 + $0xbc] sm:$0x1] %vm463_vm2, %v3026_v32 }
  0x43   : > { %512 = vst.msk [vmem:[#allocation2 + $0xc8] sm:$0x1] %vm463_vm2, %v3026_v32  ;;  %515 = vst.msk [vmem:[#allocation2 + $0xd4] sm:$0x1] %vm463_vm2, %v3026_v32 }
  0x44 PF: > { %v3303_v33 = vld [vmem:[%s3120_s16] sm:$0xf]  ;;  %s4287_s29 = scalar_lea.vmem %s4277_s2, %s3109_s8  ;;  %v3316_v36 = vld [vmem:[%s3139_s14 + $0x4] sm:$0xf]  ;;  %v3319_v37 = vld [vmem:[%s3139_s14 + $0x8] sm:$0xf] }
  0x45   : > { %v3310_v34 = vld [vmem:[%s4287_s29] ss:$0 sm:$0xff]  ;;  %v3322_v38 = vld [vmem:[%s3139_s14 + $0xc] sm:$0xf]  ;;  %v3325_v39 = vld [vmem:[%s3139_s14 + $0x10] sm:$0xf] }
  0x46   : > { %v3313_v35 = vld [vmem:[%s3139_s14] sm:$0xf]  ;;  %v3328_v40 = vld [vmem:[%s3139_s14 + $0x14] sm:$0xf]  ;;  %v3341_v43 = vld [vmem:[%s3149_s21 + $0x4] sm:$0xf] }
  0x47   : > { %v3335_v41 = vld [vmem:[%s376_s23] ss:$0 sm:$0xff]  ;;  %v3344_v44 = vld [vmem:[%s3149_s21 + $0x8] sm:$0xf]  ;;  %v3347_v45 = vld [vmem:[%s3149_s21 + $0xc] sm:$0xf] }
  0x48   : > { %v3338_v42 = vld [vmem:[%s3149_s21] sm:$0xf]  ;;  %v3350_v46 = vld [vmem:[%s3149_s21 + $0x10] sm:$0xf]  ;;  %v3353_v47 = vld [vmem:[%s3149_s21 + $0x14] sm:$0xf] }
  0x49   : > { %v3356_v48 = vld [vmem:[%s3149_s21 + $0x18] sm:$0x7]  ;;  %v3363_v49 = vld [vmem:[%s384_s11] ss:$0 sm:$0xff]  ;;  %s3365_s19 = smov 0  }
  0x4a LB: >> { %vm630_vm3 = vcmask 1043456   ;;  %s2678_s20 = sshll.u32 %s3020_s19, 6  ;;  %vm605_vm4 = vcmask 64512   ;;  %v2530_v59 = vcombine.low %v3313_v35, %v3316_v36  ;;  %v2531_v60 = vcombine.low %v3319_v37, %v3322_v38  ;;  %s2558_s8 = smul.u32 96, %s3020_s19  ;;  %s3020_s19 = sphi %s3365_s19, %s538_s19  }
  0x4b   : >> { %2818 = vmatprep.subr.msk.bf16.mxu0 %vm630_vm3, %v3303_v33  ;;  %v632_v50 = vsel %vm630_vm3, %v3303_v33, 0  ;;  %s542_s22 = scalar_lea.vmem %s3144_s17, %s2678_s20  ;;  %v2532_v61 = vcombine.low %v3325_v39, %v3328_v40  ;;  %vm955_vm13 = vcmask 392192   ;;  %s538_s19 = sadd.s32 1, %s3020_s19  }
  0x4c   : >> { %2747 = vmatpush3.bf16.msra.mxu0 %v632_v50  ;;  %v2888_v51 = vld [vmem:[%s542_s22] sm:$0xff]   ;;  %v2889_v52 = vld [vmem:[%s542_s22 + $0x8] sm:$0xff]   ;;  %v2890_v53 = vld [vmem:[%s542_s22 + $0x10] sm:$0xff]   ;;  %2764 = vmatprep.subr.bf16.mxu1 %v2530_v59  ;;  %s3537_s23 = scalar_lea.vmem [#allocation2], %s2558_s8  ;;  %p535_p8 = scmp.ge.s32.totalorder %s538_s19, 2  }
  0x4d   : >> { %2748 = vmatprep.mubr.msk.bf16.mxu0 %vm605_vm4, %v2888_v51  ;;  %v2891_v54 = vld [vmem:[%s542_s22 + $0x18] sm:$0xff]   ;;  %v2892_v55 = vld [vmem:[%s542_s22 + $0x20] sm:$0xff]   ;;  %v2893_v56 = vld [vmem:[%s542_s22 + $0x28] sm:$0xff]   ;;  %2765 = vmatpush3.bf16.msra.mxu1 %v2530_v59  ;;  %s3667_s25 = smov (%p535_p8), 0  }
  0x4e   : >> { %v2894_v57 = vld [vmem:[%s542_s22 + $0x30] sm:$0xff]   ;;  %v2895_v58 = vld [vmem:[%s542_s22 + $0x38] sm:$0xff]   ;;  %2766 = vmatprep.subr.bf16.mxu1 %v2531_v60 }
  0x4f   : >> { %2749 = vmatmul.mubr.msk.bf16.vlgmr.msra.gmra.mrb[0].mxu0 %vm605_vm4, %v2889_v52 }
  0x50   : >> { %2752 = vmatprep.mubr.msk.bf16.mxu0 %vm605_vm4, %v2890_v53 }
  0x51   : >> { %2767 = vmatpush3.bf16.msra.mxu1 %v2531_v60 }
  0x52   : >> { %2768 = vmatprep.subr.bf16.mxu1 %v2532_v61 }
  0x55   : >> { %2769 = vmatpush3.bf16.msra.mxu1 %v2532_v61 }
  0x57   : >> { %2753 = vmatmul.mubr.msk.bf16.gmra.mrb[4].mxu0 %vm605_vm4, %v2891_v54 }
  0x58   : >> { %2756 = vmatprep.mubr.msk.bf16.mxu0 %vm605_vm4, %v2892_v55 }
  0x5f   : >> { %2757 = vmatmul.mubr.msk.bf16.gmra.mrb[8].mxu0 %vm605_vm4, %v2893_v56 }
  0x60   : >> { %2760 = vmatprep.mubr.msk.bf16.mxu0 %vm605_vm4, %v2894_v57 }
  0x67   : >> { %2761 = vmatmul.mubr.msk.bf16.gmra.mrb[12].mxu0 %vm605_vm4, %v2895_v58 }
 0x122   : >> { %v2750_v62 = vpop.f32.mrb[0].mxu0 }
 0x123   : >> { %v3389_v63 = vadd.f32 %v2750_v62, %v3310_v34  ;;  %v668_v0 = vpop.f32.mrb[1].mxu0 }
 0x124   : >> { %v3392_v1 = vadd.f32 %v3310_v34, %v668_v0  ;;  %v2751_v2 = vpop.f32.mrb[2].mxu0 }
 0x125   : >> { %v733_v3 = vmin.f32 %v3389_v63, 20.0  ;;  %v3396_v4 = vadd.f32 %v2751_v2, %v3310_v34  ;;  %v671_v5 = vpop.f32.mrb[3].mxu0  ;;  %vm877_vm5 = vcmp.gt.f32.partialorder %v3389_v63, 20.0 }
 0x126   : >> { %v731_v6 = vmin.f32 %v3392_v1, 20.0  ;;  %v3400_v7 = vadd.f32 %v3310_v34, %v671_v5  ;;  %vm875_vm9 = vcmp.gt.f32.partialorder %v3392_v1, 20.0 }
 0x127   : >> { %v751_v8 = vmul.f32 1.442695, %v733_v3  ;;  %v734_v9 = vmin.f32 %v3396_v4, 20.0  ;;  %vm878_vm6 = vcmp.gt.f32.partialorder %v3396_v4, 20.0 }
 0x128   : >> { %v747_v10 = vmul.f32 1.442695, %v731_v6  ;;  %v732_v11 = vmin.f32 %v3400_v7, 20.0  ;;  %vm876_vm12 = vcmp.gt.f32.partialorder %v3400_v7, 20.0 }
 0x129   : >> { %2896 = vpow2.f32 %v751_v8  ;;  %v753_v12 = vmul.f32 1.442695, %v734_v9 }
 0x12a   : >> { %2898 = vpow2.f32 %v747_v10  ;;  %v749_v13 = vmul.f32 1.442695, %v732_v11  ;;  %v2754_v14 = vpop.f32.mrb[4].mxu0 }
 0x12b   : >> { %2900 = vpow2.f32 %v753_v12  ;;  %v3405_v15 = vadd.f32 %v2754_v14, %v3310_v34  ;;  %v684_v16 = vpop.f32.mrb[5].mxu0 }
 0x12c   : >> { %2902 = vpow2.f32 %v749_v13  ;;  %v3408_v17 = vadd.f32 %v3310_v34, %v684_v16  ;;  %v2755_v18 = vpop.f32.mrb[6].mxu0 }
 0x12d   : >> { %v737_v19 = vmin.f32 %v3405_v15, 20.0  ;;  %v3412_v20 = vadd.f32 %v2755_v18, %v3310_v34  ;;  %v687_v21 = vpop.f32.mrb[7].mxu0  ;;  %vm881_vm7 = vcmp.gt.f32.partialorder %v3405_v15, 20.0 }
 0x12e   : >> { %v735_v22 = vmin.f32 %v3408_v17, 20.0  ;;  %v3416_v23 = vadd.f32 %v3310_v34, %v687_v21  ;;  %vm879_vm8 = vcmp.gt.f32.partialorder %v3408_v17, 20.0 }
 0x12f   : >> { %v759_v24 = vmul.f32 1.442695, %v737_v19  ;;  %v738_v25 = vmin.f32 %v3412_v20, 20.0  ;;  %vm882_vm10 = vcmp.gt.f32.partialorder %v3412_v20, 20.0 }
 0x130   : >> { %v755_v26 = vmul.f32 1.442695, %v735_v22  ;;  %v736_v27 = vmin.f32 %v3416_v23, 20.0  ;;  %vm880_vm11 = vcmp.gt.f32.partialorder %v3416_v23, 20.0 }
 0x131   : >> { %2904 = vpow2.f32 %v759_v24  ;;  %v761_v28 = vmul.f32 1.442695, %v738_v25 }
 0x132   : >> { %2906 = vpow2.f32 %v755_v26  ;;  %v757_v29 = vmul.f32 1.442695, %v736_v27  ;;  %v2758_v30 = vpop.f32.mrb[8].mxu0 }
 0x133   : >> { %v2897_v31 = vpop.eup %2896  ;;  %2908 = vpow2.f32 %v761_v28  ;;  %v3421_v32 = vadd.f32 %v2758_v30, %v3310_v34  ;;  %v700_v50 = vpop.f32.mrb[9].mxu0 }
 0x134   : >> { %v2899_v51 = vpop.eup %2898  ;;  %v781_v52 = vadd.f32 1.0, %v2897_v31  ;;  %2910 = vpow2.f32 %v757_v29  ;;  %v3424_v53 = vadd.f32 %v3310_v34, %v700_v50  ;;  %v2759_v54 = vpop.f32.mrb[10].mxu0 }
 0x135   : >> { %v2901_v55 = vpop.eup %2900  ;;  %v779_v56 = vadd.f32 1.0, %v2899_v51  ;;  %v741_v57 = vmin.f32 %v3421_v32, 20.0  ;;  %v3428_v58 = vadd.f32 %v2759_v54, %v3310_v34  ;;  %v703_v59 = vpop.f32.mrb[11].mxu0  ;;  %vm885_vm14 = vcmp.gt.f32.partialorder %v3421_v32, 20.0 }
 0x136   : >> { %v2903_v60 = vpop.eup %2902  ;;  %v797_v61 = vmul.f32 %v781_v52, %v781_v52  ;;  %v782_v62 = vadd.f32 1.0, %v2901_v55  ;;  %v739_v0 = vmin.f32 %v3424_v53, 20.0  ;;  %v3438_v19 = vadd.f32 %v3310_v34, %v703_v59 }
 0x137   : >> { %v3431_v2 = vmul.f32 %v779_v56, %v779_v56  ;;  %v780_v3 = vadd.f32 1.0, %v2903_v60  ;;  %v767_v5 = vmul.f32 1.442695, %v741_v57  ;;  %v742_v6 = vmin.f32 %v3428_v58, 20.0 }
 0x138   : >> { %v829_v8 = vadd.f32 1.0, %v797_v61  ;;  %v798_v9 = vmul.f32 %v782_v62, %v782_v62  ;;  %v763_v13 = vmul.f32 1.442695, %v739_v0  ;;  %v740_v30 = vmin.f32 %v3438_v19, 20.0 }
 0x139   : >> { %v827_v10 = vadd.f32 1.0, %v3431_v2  ;;  %v3435_v11 = vmul.f32 %v780_v3, %v780_v3  ;;  %2912 = vpow2.f32 %v767_v5  ;;  %v769_v18 = vmul.f32 1.442695, %v742_v6 }
 0x13a   : >> { %2914 = vrcp.f32 %v829_v8  ;;  %v830_v12 = vadd.f32 1.0, %v798_v9  ;;  %v2762_v14 = vpop.f32.mrb[12].mxu0  ;;  %v765_v59 = vmul.f32 1.442695, %v740_v30  ;;  %vm886_vm15 = vcmp.gt.f32.partialorder %v3428_v58, 20.0 }
 0x13b   : >> { %v2905_v16 = vpop.eup %2904  ;;  %v3441_v21 = vadd.f32 %v2762_v14, %v3310_v34  ;;  %v716_v22 = vpop.f32.mrb[13].mxu0  ;;  %v828_v25 = vadd.f32 1.0, %v3435_v11  ;;  %vm883_vm0 = vcmp.gt.f32.partialorder %v3424_v53, 20.0  ;;  %vm884_vm1 = vcmp.gt.f32.partialorder %v3438_v19, 20.0 }
 0x13c   : >> { %v2907_v24 = vpop.eup %2906  ;;  %2916 = vrcp.f32 %v830_v12  ;;  %v785_v26 = vadd.f32 1.0, %v2905_v16  ;;  %v2763_v27 = vpop.f32.mrb[14].mxu0  ;;  %v3446_v31 = vadd.f32 %v3310_v34, %v716_v22  ;;  %v2516_v16 = vadd.f32 -1.0, %v798_v9 }
 0x13d   : >> { %v2909_v28 = vpop.eup %2908  ;;  %2918 = vrcp.f32 %v827_v10  ;;  %v783_v29 = vadd.f32 1.0, %v2907_v24  ;;  %v719_v50 = vpop.f32.mrb[15].mxu0  ;;  %v745_v55 = vmin.f32 %v3441_v21, 20.0  ;;  %v2515_v10 = vadd.f32 -1.0, %v797_v61 }
 0x13e   : >> { %v2911_v51 = vpop.eup %2910  ;;  %v801_v52 = vmul.f32 %v785_v26, %v785_v26  ;;  %v786_v54 = vadd.f32 1.0, %v2909_v28  ;;  %2920 = vpow2.f32 %v763_v13  ;;  %v743_v13 = vmin.f32 %v3446_v31, 20.0 }
 0x13f   : >> { %v799_v56 = vmul.f32 %v783_v29, %v783_v29  ;;  %v784_v57 = vadd.f32 1.0, %v2911_v51  ;;  %2922 = vpow2.f32 %v769_v18  ;;  %v775_v6 = vmul.f32 1.442695, %v745_v55 }
 0x140   : >> { %2924 = vrcp.f32 %v828_v25  ;;  %v833_v60 = vadd.f32 1.0, %v801_v52  ;;  %v802_v62 = vmul.f32 %v786_v54, %v786_v54  ;;  %v3456_v22 = vadd.f32 %v2763_v27, %v3310_v34 }
 0x141   : >> { %v831_v0 = vadd.f32 1.0, %v799_v56  ;;  %v3450_v3 = vmul.f32 %v784_v57, %v784_v57  ;;  %2926 = vpow2.f32 %v765_v59  ;;  %v771_v25 = vmul.f32 1.442695, %v743_v13 }
 0x142   : >> { %2928 = vrcp.f32 %v833_v60  ;;  %v834_v5 = vadd.f32 1.0, %v802_v62  ;;  %v3459_v26 = vadd.f32 %v3310_v34, %v719_v50  ;;  %v746_v29 = vmin.f32 %v3456_v22, 20.0 }
 0x143   : >> { %v2913_v8 = vpop.eup %2912  ;;  %2930 = vrcp.f32 %v831_v0  ;;  %v832_v12 = vadd.f32 1.0, %v3450_v3  ;;  %v2513_v57 = vadd.f32 -1.0, %v3431_v2  ;;  %v2519_v0 = vadd.f32 -1.0, %v801_v52 }
 0x144   : >> { %v2915_v14 = vpop.eup %2914  ;;  %2932 = vrcp.f32 %v834_v5  ;;  %v789_v18 = vadd.f32 1.0, %v2913_v8  ;;  %v744_v27 = vmin.f32 %v3459_v26, 20.0  ;;  %v777_v55 = vmul.f32 1.442695, %v746_v29 }
 0x145   : >> { %v861_v24 = vmul.f32 %v2915_v14, %v2515_v10  ;;  %2934 = vrcp.f32 %v832_v12  ;;  %v2517_v14 = vadd.f32 -1.0, %v799_v56  ;;  %v2518_v56 = vadd.f32 -1.0, %v3450_v3 }
 0x146   : >> { %v2917_v28 = vpop.eup %2916  ;;  %v805_v61 = vmul.f32 %v789_v18, %v789_v18  ;;  %2936 = vpow2.f32 %v775_v6  ;;  %v773_v6 = vmul.f32 1.442695, %v744_v27  ;;  %vm889_vm2 = vcmp.gt.f32.partialorder %v3441_v21, 20.0 }
 0x147   : >> { %v2919_v30 = vpop.eup %2918  ;;  %v893_v9 = vsel %vm877_vm5, 1.0, %v861_v24  ;;  %v862_v51 = vmul.f32 %v2917_v28, %v2516_v16  ;;  %2938 = vpow2.f32 %v771_v25  ;;  %v2520_v16 = vadd.f32 -1.0, %v802_v62 }
 0x148   : >> { %v2921_v54 = vpop.eup %2920  ;;  %v837_v50 = vadd.f32 1.0, %v805_v61  ;;  %v3474_v10 = vmul.f32 %v893_v9, %v3389_v63  ;;  %v2514_v9 = vadd.f32 -1.0, %v3435_v11  ;;  %v2523_v11 = vadd.f32 -1.0, %v805_v61 }
 0x149   : >> { %v2923_v59 = vpop.eup %2922  ;;  %v894_v60 = vsel %vm878_vm6, 1.0, %v862_v51  ;;  %v787_v5 = vadd.f32 1.0, %v2921_v54  ;;  %v859_v51 = vmul.f32 %v2919_v30, %v2513_v57  ;;  %vm887_vm3 = vcmp.gt.f32.partialorder %v3446_v31, 20.0 }
 0x14a   : >> { %v2925_v8 = vpop.eup %2924  ;;  %v3477_v12 = vmul.f32 %v894_v60, %v3396_v4  ;;  %2940 = vrcp.f32 %v837_v50  ;;  %v790_v2 = vadd.f32 1.0, %v2923_v59  ;;  %vm890_vm4 = vcmp.gt.f32.partialorder %v3456_v22, 20.0 }
 0x14b   : >> { %v2927_v13 = vpop.eup %2926  ;;  %v803_v18 = vmul.f32 %v787_v5, %v787_v5  ;;  %2942 = vpow2.f32 %v777_v55  ;;  %v860_v5 = vmul.f32 %v2925_v8, %v2514_v9  ;;  %vm888_vm5 = vcmp.gt.f32.partialorder %v3459_v26, 20.0 }
 0x14c   : >> { %v2929_v52 = vpop.eup %2928  ;;  %v924_v24 = vpack.c.bf16 %v3477_v12, %v3474_v10  ;;  %v806_v25 = vmul.f32 %v790_v2, %v790_v2  ;;  %v788_v28 = vadd.f32 1.0, %v2927_v13  ;;  %2944 = vpow2.f32 %v773_v6 }
 0x14d   : >> { %v2931_v63 = vpop.eup %2930  ;;  %v865_v29 = vmul.f32 %v2929_v52, %v2519_v0  ;;  %v835_v4 = vadd.f32 1.0, %v803_v18  ;;  %vm1292_vm6 = vcmask 44032  }
 0x14e   : >> { %v2933_v27 = vpop.eup %2932  ;;  %v863_v54 = vmul.f32 %v2931_v63, %v2517_v14  ;;  %v838_v62 = vadd.f32 1.0, %v806_v25  ;;  %v804_v50 = vmul.f32 %v788_v28, %v788_v28  ;;  %v891_v14 = vsel %vm875_vm9, 1.0, %v859_v51 }
 0x14f   : >> { %v2935_v55 = vpop.eup %2934  ;;  %v897_v59 = vsel %vm881_vm7, 1.0, %v865_v29  ;;  %v866_v60 = vmul.f32 %v2933_v27, %v2520_v16  ;;  %2946 = vrcp.f32 %v835_v4  ;;  %vm1293_vm7 = vsmask.f32 7938 }
 0x150   : >> { %v2937_v6 = vpop.eup %2936  ;;  %v895_v0 = vsel %vm879_vm8, 1.0, %v863_v54  ;;  %v864_v2 = vmul.f32 %v2935_v55, %v2518_v56  ;;  %2948 = vrcp.f32 %v838_v62  ;;  %v3489_v57 = vmul.f32 %v897_v59, %v3405_v15 }
 0x151   : >> { %v2939_v30 = vpop.eup %2938  ;;  %v898_v3 = vsel %vm882_vm10, 1.0, %v866_v60  ;;  %v836_v13 = vadd.f32 1.0, %v804_v50  ;;  %v793_v52 = vadd.f32 1.0, %v2937_v6  ;;  %v911_v61 = vmul.f32 %v895_v0, %v3408_v17 }
 0x152   : >> { %v914_v8 = vmul.f32 %v898_v3, %v3412_v20  ;;  %v896_v16 = vsel %vm880_vm11, 1.0, %v864_v2  ;;  %v791_v28 = vadd.f32 1.0, %v2939_v30  ;;  %v892_v15 = vsel %vm876_vm12, 1.0, %v860_v5  ;;  %vm3541_vm11 = vmand %vm1292_vm6, %vm1293_vm7 }
 0x153   : >> { %v912_v63 = vmul.f32 %v896_v16, %v3416_v23  ;;  %2950 = vrcp.f32 %v836_v13  ;;  %v809_v9 = vmul.f32 %v793_v52, %v793_v52  ;;  %v908_v20 = vmul.f32 %v892_v15, %v3400_v7 }
 0x154   : >> { %v2941_v29 = vpop.eup %2940  ;;  %v926_v4 = vpack.c.bf16 %v914_v8, %v3489_v57  ;;  %v807_v51 = vmul.f32 %v791_v28, %v791_v28  ;;  %v907_v56 = vmul.f32 %v891_v14, %v3392_v1  ;;  %v2521_v5 = vadd.f32 -1.0, %v803_v18 }
 0x155   : >> { %v2943_v27 = vpop.eup %2942  ;;  %v925_v54 = vpack.c.bf16 %v912_v63, %v911_v61  ;;  %v869_v55 = vmul.f32 %v2941_v29, %v2523_v11  ;;  %v841_v17 = vadd.f32 1.0, %v809_v9  ;;  %v2524_v2 = vadd.f32 -1.0, %v806_v25 }
 0x156   : >> { %v2945_v62 = vpop.eup %2944  ;;  %v839_v59 = vadd.f32 1.0, %v807_v51  ;;  %v794_v23 = vadd.f32 1.0, %v2943_v27  ;;  %v923_v6 = vpack.c.bf16 %v908_v20, %v907_v56  ;;  %v2522_v18 = vadd.f32 -1.0, %v804_v50 }
 0x157   : >> { %v792_v60 = vadd.f32 1.0, %v2945_v62  ;;  %2952 = vrcp.f32 %v841_v17  ;;  %v901_v57 = vsel %vm885_vm14, 1.0, %v869_v55  ;;  %v2527_v15 = vadd.f32 -1.0, %v809_v9 }
 0x158   : >> { %2954 = vrcp.f32 %v839_v59  ;;  %v810_v7 = vmul.f32 %v794_v23, %v794_v23  ;;  %2770 = vmatprep.mubr.msk.bf16.mxu1 %vm955_vm13, %v923_v6  ;;  %v917_v8 = vmul.f32 %v901_v57, %v3421_v32  ;;  %v2525_v20 = vadd.f32 -1.0, %v807_v51 }
 0x159   : >> { %v2947_v0 = vpop.eup %2946  ;;  %v808_v30 = vmul.f32 %v792_v60, %v792_v60  ;;  %2771 = vmatmul.mubr.msk.bf16.vlgmr.msra.gmra.mrb[0].mxu1 %vm955_vm13, %v924_v24  ;;  %vm1126_vm8 = vsmask.f32 256  ;;  %vm1127_vm9 = vsmask.f32 4368  ;;  %vm1300_vm10 = vcmask 40960  }
 0x15a   : >> { %v2949_v1 = vpop.eup %2948  ;;  %v867_v11 = vmul.f32 %v2947_v0, %v2521_v5  ;;  %v842_v13 = vadd.f32 1.0, %v810_v7  ;;  %2774 = vmatprep.mubr.msk.bf16.mxu1 %vm955_vm13, %v925_v54  ;;  %vm3548_vm12 = vmor %vm1126_vm8, %vm1127_vm9 }
 0x15b   : >> { %v870_v3 = vmul.f32 %v2949_v1, %v2524_v2  ;;  %v840_v25 = vadd.f32 1.0, %v808_v30  ;;  %v2526_v62 = vadd.f32 -1.0, %v808_v30  ;;  %vm3555_vm14 = vmand %vm1300_vm10, %vm1126_vm8 }
 0x15c   : >> { %2956 = vrcp.f32 %v842_v13  ;;  %v899_v52 = vsel %vm883_vm0, 1.0, %v867_v11 }
 0x15d   : >> { %v2951_v14 = vpop.eup %2950  ;;  %v902_v16 = vsel %vm886_vm15, 1.0, %v870_v3  ;;  %2958 = vrcp.f32 %v840_v25  ;;  %v915_v61 = vmul.f32 %v899_v52, %v3424_v53 }
 0x15e   : >> { %v918_v10 = vmul.f32 %v902_v16, %v3428_v58  ;;  %v868_v12 = vmul.f32 %v2951_v14, %v2522_v18  ;;  %v2528_v58 = vadd.f32 -1.0, %v810_v7  ;;  %v2564_v16 = vld [vmem:[%s3537_s23 + $0x18] sm:$0xf] }
 0x160   : >> { %v928_v24 = vpack.c.bf16 %v918_v10, %v917_v8  ;;  %v900_v28 = vsel %vm884_vm1, 1.0, %v868_v12 }
 0x161   : >> { %v916_v50 = vmul.f32 %v900_v28, %v3438_v19  ;;  %v2953_v63 = vpop.eup %2952  ;;  %2775 = vmatmul.mubr.msk.bf16.gmra.mrb[4].mxu1 %vm955_vm13, %v926_v4 }
 0x162   : >> { %v2955_v32 = vpop.eup %2954  ;;  %v873_v27 = vmul.f32 %v2953_v63, %v2527_v15 }
 0x163   : >> { %v927_v29 = vpack.c.bf16 %v916_v50, %v915_v61  ;;  %v871_v54 = vmul.f32 %v2955_v32, %v2525_v20 }
 0x164   : >> { %v905_v53 = vsel %vm889_vm2, 1.0, %v873_v27 }
 0x165   : >> { %2778 = vmatprep.mubr.msk.bf16.mxu1 %vm955_vm13, %v927_v29  ;;  %v903_v9 = vsel %vm887_vm3, 1.0, %v871_v54  ;;  %v921_v17 = vmul.f32 %v905_v53, %v3441_v21  ;;  %v2559_v29 = vld [vmem:[%s3537_s23 + $0xc] sm:$0xf]  ;;  %v2567_v53 = vld [vmem:[%s3537_s23 + $0x20] sm:$0x1] }
 0x166   : >> { %v2957_v56 = vpop.eup %2956  ;;  %v919_v60 = vmul.f32 %v903_v9, %v3446_v31 }
 0x167   : >> { %v2959_v55 = vpop.eup %2958  ;;  %v874_v19 = vmul.f32 %v2957_v56, %v2528_v58 }
 0x168   : >> { %v872_v4 = vmul.f32 %v2959_v55, %v2526_v62 }
 0x169   : >> { %v906_v51 = vsel %vm890_vm4, 1.0, %v874_v19  ;;  %2779 = vmatmul.mubr.msk.bf16.gmra.mrb[8].mxu1 %vm955_vm13, %v928_v24 }
 0x16a   : >> { %v922_v59 = vmul.f32 %v906_v51, %v3456_v22  ;;  %v904_v23 = vsel %vm888_vm5, 1.0, %v872_v4 }
 0x16b   : >> { %v920_v6 = vmul.f32 %v904_v23, %v3459_v26  ;;  %v2562_v23 = vld [vmem:[%s3537_s23 + $0x14] sm:$0x1] }
 0x16c   : >> { %v930_v5 = vpack.c.bf16 %v922_v59, %v921_v17 }
 0x16d   : >> { %v929_v0 = vpack.c.bf16 %v920_v6, %v919_v60 }
 0x16f   : >> { %2782 = vmatprep.mubr.msk.bf16.mxu1 %vm955_vm13, %v929_v0 }
 0x171   : >> { %2783 = vmatmul.mubr.msk.bf16.gmra.mrb[12].mxu1 %vm955_vm13, %v930_v5 }
 0x22c   : >> { %v2772_v2 = vpop.f32.mrb[0].mxu1 }
 0x22d   : >> { %v1023_v7 = vadd.f32 %v2772_v2, %v3335_v41  ;;  %v1014_v30 = vpop.f32.mrb[1].mxu1 }
 0x22e   : >> { %v1015_v21 = vadd.f32 %v3335_v41, %v1014_v30  ;;  %v2773_v1 = vpop.f32.mrb[2].mxu1 }
 0x22f   : >> { %v2681_v22 = vpack.c.bf16 %v1023_v7, %v1023_v7  ;;  %v1026_v57 = vadd.f32 %v2773_v1, %v3335_v41  ;;  %v1017_v31 = vpop.f32.mrb[3].mxu1 }
 0x230   : >> { %v2679_v26 = vpack.c.bf16 %v1015_v21, %v1015_v21  ;;  %v1018_v11 = vadd.f32 %v3335_v41, %v1017_v31 }
 0x231   : >> { %v1147_v3 = vshrl.u32 %v2681_v22, 16  ;;  %v2682_v13 = vpack.c.bf16 %v1026_v57, %v1026_v57  ;;  %v1150_v8 = vshll.u32 %v2681_v22, 16 }
 0x232   : >> { %v1130_v18 = vshrl.u32 %v2679_v26, 16  ;;  %v2680_v25 = vpack.c.bf16 %v1018_v11, %v1018_v11  ;;  %v1133_v52 = vshll.u32 %v2679_v26, 16 }
 0x233   : >> { %v1149_v14 = vrot.slane %v1147_v3, 7  ;;  %v1155_v10 = vshrl.u32 %v2682_v13, 16  ;;  %v1158_v28 = vshll.u32 %v2682_v13, 16 }
 0x234   : >> { %v1132_v24 = vrot.slane %v1130_v18, 7  ;;  %v1138_v61 = vshrl.u32 %v2680_v25, 16  ;;  %v1141_v50 = vshll.u32 %v2680_v25, 16  ;;  %v2776_v63 = vpop.f32.mrb[4].mxu1  ;;  %v2574_v18 = vld [vmem:[%s3537_s23 + $0x30] sm:$0xf] }
 0x235   : >> { %v1152_v15 = vor.u32 %v1150_v8, %v1149_v14  ;;  %v1153_v32 = vrot.slane %v1149_v14, 4  ;;  %v1157_v27 = vrot.slane %v1155_v10, 7  ;;  %v1039_v54 = vadd.f32 %v2776_v63, %v3335_v41  ;;  %v1030_v58 = vpop.f32.mrb[5].mxu1  ;;  %v2569_v10 = vld [vmem:[%s3537_s23 + $0x24] sm:$0xf] }
 0x236   : >> { %v1135_v56 = vor.u32 %v1133_v52, %v1132_v24  ;;  %v1136_v62 = vrot.slane %v1132_v24, 4  ;;  %v1140_v19 = vrot.slane %v1138_v61, 7  ;;  %v1031_v9 = vadd.f32 %v3335_v41, %v1030_v58  ;;  %v2777_v4 = vpop.f32.mrb[6].mxu1 }
 0x237   : >> { %v1306_v51 = vsel %vm3541_vm11, %v1152_v15, %v2564_v16  ;;  %v1160_v17 = vor.u32 %v1158_v28, %v1157_v27  ;;  %v1162_v59 = vrot.slane %v1157_v27, 4  ;;  %v2685_v60 = vpack.c.bf16 %v1039_v54, %v1039_v54  ;;  %v1033_v6 = vpop.f32.mrb[7].mxu1 }
 0x238   : >> { %2565 = vst [vmem:[%s3537_s23 + $0x18] sm:$0xf] %v1306_v51  ;;  %v1296_v5 = vsel %vm3541_vm11, %v1135_v56, %v2559_v29  ;;  %v1143_v0 = vor.u32 %v1141_v50, %v1140_v19  ;;  %v1145_v2 = vrot.slane %v1140_v19, 4  ;;  %v2683_v7 = vpack.c.bf16 %v1031_v9, %v1031_v9 }
 0x239   : >> { %2560 = vst [vmem:[%s3537_s23 + $0xc] sm:$0xf] %v1296_v5  ;;  %v1161_v30 = vsel %vm3548_vm12, %v1153_v32, %v1160_v17  ;;  %v1310_v21 = vsel %vm3555_vm14, %v1162_v59, %v2567_v53  ;;  %v1181_v1 = vshrl.u32 %v2685_v60, 16  ;;  %v1184_v11 = vshll.u32 %v2685_v60, 16  ;;  %v2577_v17 = vld [vmem:[%s3537_s23 + $0x38] sm:$0x1] }
 0x23a   : >> { %2566 = vst.msk [vmem:[%s3537_s23 + $0x1c] sm:$0xf] %vm1292_vm6, %v1161_v30  ;;  %2568 = vst [vmem:[%s3537_s23 + $0x20] sm:$0x1] %v1310_v21  ;;  %v1144_v22 = vsel %vm3548_vm12, %v1136_v62, %v1143_v0  ;;  %v1303_v57 = vsel %vm3555_vm14, %v1145_v2, %v2562_v23  ;;  %v1164_v31 = vshrl.u32 %v2683_v7, 16  ;;  %v1042_v3 = vadd.f32 %v2777_v4, %v3335_v41 }
 0x23b   : >> { %2561 = vst.msk [vmem:[%s3537_s23 + $0x10] sm:$0xf] %vm1292_vm6, %v1144_v22  ;;  %2563 = vst [vmem:[%s3537_s23 + $0x14] sm:$0x1] %v1303_v57  ;;  %v1183_v26 = vrot.slane %v1181_v1, 7  ;;  %v1034_v13 = vadd.f32 %v3335_v41, %v1033_v6  ;;  %v1167_v14 = vshll.u32 %v2683_v7, 16 }
 0x23c   : >> { %v1166_v25 = vrot.slane %v1164_v31, 7  ;;  %v2780_v8 = vpop.f32.mrb[8].mxu1  ;;  %v2686_v24 = vpack.c.bf16 %v1042_v3, %v1042_v3  ;;  %v2572_v6 = vld [vmem:[%s3537_s23 + $0x2c] sm:$0x1] }
 0x23d   : >> { %v1186_v16 = vor.u32 %v1184_v11, %v1183_v26  ;;  %v1187_v52 = vrot.slane %v1183_v26, 4  ;;  %v2684_v28 = vpack.c.bf16 %v1034_v13, %v1034_v13  ;;  %v1046_v61 = vpop.f32.mrb[9].mxu1  ;;  %v1055_v15 = vadd.f32 %v2780_v8, %v3335_v41  ;;  %v2584_v8 = vld [vmem:[%s3537_s23 + $0x48] sm:$0xf] }
 0x23e   : >> { %v1169_v50 = vor.u32 %v1167_v14, %v1166_v25  ;;  %v1170_v63 = vrot.slane %v1166_v25, 4  ;;  %v1047_v32 = vadd.f32 %v3335_v41, %v1046_v61  ;;  %v2781_v29 = vpop.f32.mrb[10].mxu1  ;;  %v1189_v54 = vshrl.u32 %v2686_v24, 16 }
 0x23f   : >> { %v1320_v27 = vsel %vm3541_vm11, %v1186_v16, %v2574_v18  ;;  %v1192_v58 = vshll.u32 %v2686_v24, 16  ;;  %v1172_v56 = vshrl.u32 %v2684_v28, 16  ;;  %v1049_v62 = vpop.f32.mrb[11].mxu1  ;;  %v1175_v19 = vshll.u32 %v2684_v28, 16  ;;  %v2579_v16 = vld [vmem:[%s3537_s23 + $0x3c] sm:$0xf] }
 0x240   : >> { %2575 = vst [vmem:[%s3537_s23 + $0x30] sm:$0xf] %v1320_v27  ;;  %v1313_v53 = vsel %vm3541_vm11, %v1169_v50, %v2569_v10  ;;  %v2689_v9 = vpack.c.bf16 %v1055_v15, %v1055_v15  ;;  %v2687_v4 = vpack.c.bf16 %v1047_v32, %v1047_v32  ;;  %v1191_v51 = vrot.slane %v1189_v54, 7 }
 0x241   : >> { %2570 = vst [vmem:[%s3537_s23 + $0x24] sm:$0xf] %v1313_v53  ;;  %v1174_v59 = vrot.slane %v1172_v56, 7  ;;  %v1058_v23 = vadd.f32 %v2781_v29, %v3335_v41  ;;  %v1050_v60 = vadd.f32 %v3335_v41, %v1049_v62 }
 0x242   : >> { %v1215_v5 = vshrl.u32 %v2689_v9, 16  ;;  %v1218_v0 = vshll.u32 %v2689_v9, 16  ;;  %v1198_v2 = vshrl.u32 %v2687_v4, 16  ;;  %v1201_v7 = vshll.u32 %v2687_v4, 16  ;;  %v2587_v9 = vld [vmem:[%s3537_s23 + $0x50] sm:$0x1] }
 0x243   : >> { %v1194_v30 = vor.u32 %v1192_v58, %v1191_v51  ;;  %v1196_v21 = vrot.slane %v1191_v51, 4  ;;  %v1177_v1 = vor.u32 %v1175_v19, %v1174_v59  ;;  %v1179_v22 = vrot.slane %v1174_v59, 4  ;;  %v2582_v4 = vld [vmem:[%s3537_s23 + $0x44] sm:$0x1] }
 0x244   : >> { %v1217_v57 = vrot.slane %v1215_v5, 7  ;;  %v1200_v31 = vrot.slane %v1198_v2, 7  ;;  %v2690_v26 = vpack.c.bf16 %v1058_v23, %v1058_v23  ;;  %v2688_v11 = vpack.c.bf16 %v1050_v60, %v1050_v60  ;;  %v2784_v3 = vpop.f32.mrb[12].mxu1 }
 0x245   : >> { %v1195_v13 = vsel %vm3548_vm12, %v1187_v52, %v1194_v30  ;;  %v1324_v18 = vsel %vm3555_vm14, %v1196_v21, %v2577_v17  ;;  %v1178_v25 = vsel %vm3548_vm12, %v1170_v63, %v1177_v1  ;;  %v1317_v14 = vsel %vm3555_vm14, %v1179_v22, %v2572_v6  ;;  %v1062_v10 = vpop.f32.mrb[13].mxu1 }
 0x246   : >> { %2576 = vst.msk [vmem:[%s3537_s23 + $0x34] sm:$0xf] %vm1292_vm6, %v1195_v13  ;;  %2578 = vst [vmem:[%s3537_s23 + $0x38] sm:$0x1] %v1324_v18  ;;  %v1220_v52 = vor.u32 %v1218_v0, %v1217_v57  ;;  %v1203_v24 = vor.u32 %v1201_v7, %v1200_v31  ;;  %v2785_v28 = vpop.f32.mrb[14].mxu1  ;;  %v1221_v61 = vrot.slane %v1217_v57, 4  ;;  %v1071_v54 = vadd.f32 %v2784_v3, %v3335_v41 }
 0x247   : >> { %2571 = vst.msk [vmem:[%s3537_s23 + $0x28] sm:$0xf] %vm1292_vm6, %v1178_v25  ;;  %2573 = vst [vmem:[%s3537_s23 + $0x2c] sm:$0x1] %v1317_v14  ;;  %v1204_v50 = vrot.slane %v1200_v31, 4  ;;  %v1223_v63 = vshrl.u32 %v2690_v26, 16  ;;  %v1063_v58 = vadd.f32 %v3335_v41, %v1062_v10  ;;  %v1074_v59 = vadd.f32 %v2785_v28, %v3335_v41 }
 0x248   : >> { %v1206_v15 = vshrl.u32 %v2688_v11, 16  ;;  %v1065_v32 = vpop.f32.mrb[15].mxu1  ;;  %v1334_v29 = vsel %vm3541_vm11, %v1220_v52, %v2584_v8  ;;  %v1327_v27 = vsel %vm3541_vm11, %v1203_v24, %v2579_v16  ;;  %v1226_v62 = vshll.u32 %v2690_v26, 16  ;;  %v2594_v18 = vld [vmem:[%s3537_s23 + $0x60] sm:$0xf] }
 0x249   : >> { %2585 = vst [vmem:[%s3537_s23 + $0x48] sm:$0xf] %v1334_v29  ;;  %2580 = vst [vmem:[%s3537_s23 + $0x3c] sm:$0xf] %v1327_v27  ;;  %v1225_v56 = vrot.slane %v1223_v63, 7  ;;  %v1209_v19 = vshll.u32 %v2688_v11, 16  ;;  %v2693_v51 = vpack.c.bf16 %v1071_v54, %v1071_v54  ;;  %v2691_v17 = vpack.c.bf16 %v1063_v58, %v1063_v58 }
 0x24a   : >> { %v1208_v53 = vrot.slane %v1206_v15, 7  ;;  %v1066_v23 = vadd.f32 %v3335_v41, %v1065_v32  ;;  %v2694_v3 = vpack.c.bf16 %v1074_v59, %v1074_v59  ;;  %v2589_v25 = vld [vmem:[%s3537_s23 + $0x54] sm:$0xf]  ;;  %v2597_v29 = vld [vmem:[%s3537_s23 + $0x68] sm:$0x1] }
 0x24b   : >> { %v1228_v60 = vor.u32 %v1226_v62, %v1225_v56  ;;  %v1230_v6 = vrot.slane %v1225_v56, 4  ;;  %v1249_v2 = vshrl.u32 %v2693_v51, 16  ;;  %v1252_v7 = vshll.u32 %v2693_v51, 16  ;;  %v2592_v27 = vld [vmem:[%s3537_s23 + $0x5c] sm:$0x1] }
 0x24c   : >> { %v1211_v5 = vor.u32 %v1209_v19, %v1208_v53  ;;  %v1213_v0 = vrot.slane %v1208_v53, 4  ;;  %v1232_v30 = vshrl.u32 %v2691_v17, 16  ;;  %v1235_v21 = vshll.u32 %v2691_v17, 16 }
 0x24d   : >> { %v1229_v1 = vsel %vm3548_vm12, %v1221_v61, %v1228_v60  ;;  %v1338_v22 = vsel %vm3555_vm14, %v1230_v6, %v2587_v9  ;;  %v1251_v26 = vrot.slane %v1249_v2, 7  ;;  %v2692_v13 = vpack.c.bf16 %v1066_v23, %v1066_v23 }
 0x24e   : >> { %v1212_v57 = vsel %vm3548_vm12, %v1204_v50, %v1211_v5  ;;  %v1331_v31 = vsel %vm3555_vm14, %v1213_v0, %v2582_v4  ;;  %2586 = vst.msk [vmem:[%s3537_s23 + $0x4c] sm:$0xf] %vm1292_vm6, %v1229_v1  ;;  %2588 = vst [vmem:[%s3537_s23 + $0x50] sm:$0x1] %v1338_v22  ;;  %v1234_v11 = vrot.slane %v1232_v30, 7  ;;  %v1257_v16 = vshrl.u32 %v2694_v3, 16 }
 0x24f   : >> { %2581 = vst.msk [vmem:[%s3537_s23 + $0x40] sm:$0xf] %vm1292_vm6, %v1212_v57  ;;  %2583 = vst [vmem:[%s3537_s23 + $0x44] sm:$0x1] %v1331_v31  ;;  %v1254_v14 = vor.u32 %v1252_v7, %v1251_v26  ;;  %v1240_v10 = vshrl.u32 %v2692_v13, 16  ;;  %v1260_v61 = vshll.u32 %v2694_v3, 16 }
 0x250   : >> { %v1237_v8 = vor.u32 %v1235_v21, %v1234_v11  ;;  %v1259_v28 = vrot.slane %v1257_v16, 7  ;;  %v1243_v63 = vshll.u32 %v2692_v13, 16  ;;  %v1255_v15 = vrot.slane %v1251_v26, 4  ;;  %537 = sbr.rel (!%p535_p8) target bundleno = 74 (0x4a), region = 118 }
 0x251   : >> { %v1348_v52 = vsel %vm3541_vm11, %v1254_v14, %v2594_v18  ;;  %v1242_v50 = vrot.slane %v1240_v10, 7  ;;  %v1238_v32 = vrot.slane %v1234_v11, 4 }
 0x252   : >> { %v1341_v24 = vsel %vm3541_vm11, %v1237_v8, %v2589_v25  ;;  %2595 = vst [vmem:[%s3537_s23 + $0x60] sm:$0xf] %v1348_v52  ;;  %v1262_v54 = vor.u32 %v1260_v61, %v1259_v28  ;;  %v1264_v58 = vrot.slane %v1259_v28, 4 }
 0x253   : >> { %2590 = vst [vmem:[%s3537_s23 + $0x54] sm:$0xf] %v1341_v24  ;;  %v1245_v56 = vor.u32 %v1243_v63, %v1242_v50  ;;  %v1247_v62 = vrot.slane %v1242_v50, 4 }
 0x254   : >> { %v1263_v12 = vsel %vm3548_vm12, %v1255_v15, %v1262_v54  ;;  %v1352_v53 = vsel %vm3555_vm14, %v1264_v58, %v2597_v29 }
 0x255   : >> { %v1246_v19 = vsel %vm3548_vm12, %v1238_v32, %v1245_v56  ;;  %v1345_v9 = vsel %vm3555_vm14, %v1247_v62, %v2592_v27  ;;  %2596 = vst.msk [vmem:[%s3537_s23 + $0x64] sm:$0xf] %vm1292_vm6, %v1263_v12  ;;  %2598 = vst [vmem:[%s3537_s23 + $0x68] sm:$0x1] %v1352_v53 }
 0x256   : >> { %2591 = vst.msk [vmem:[%s3537_s23 + $0x58] sm:$0xf] %vm1292_vm6, %v1246_v19  ;;  %2593 = vst [vmem:[%s3537_s23 + $0x5c] sm:$0x1] %v1345_v9 }
 0x257 LB: >> { %s2695_s10 = smul.u32 96, %s3024_s25  ;;  %vm1613_vm15 = vcmask 1042432   ;;  %vm1614_vm0 = vcmask 1046532   ;;  %vm1394_vm1 = vsmask.f32 3328  ;;  %s3027_s14 = smov 18   ;;  %s3024_s25 = sphi %s3667_s25, %s1359_s25  }
 0x258   : >> { %vm1395_vm2 = vsmask.f32 7440  ;;  %vm3705_vm3 = vmor %vm1613_vm15, %vm1614_vm0  ;;  %s3028_s13 = smov 12   ;;  %s3029_s15 = smov 6   ;;  %vm1958_vm5 = vcmask 48128   ;;  %vm1983_vm6 = vcmask 97280  }
 0x259   : >> { %s3673_s11 = scalar_lea.vmem [#allocation2], %s2695_s10  ;;  %vm3754_vm4 = vmor %vm1394_vm1, %vm1395_vm2  ;;  %s3030_s18 = smov 24   ;;  %vm2017_vm7 = vcmask 195584   ;;  %vm2000_vm8 = vcmask 146432   ;;  %vm2034_vm9 = vcmask 244736   ;;  %vm2051_vm10 = vcmask 293888  }
 0x25a   : >> { %s3031_s21 = smov 30   ;;  %s3032_s0 = smov 36   ;;  %vm2068_vm11 = vcmask 343040   ;;  %vm2129_vm12 = vcmask 441344   ;;  %vm2314_vm14 = vcmask 60416  }
 0x25b   : >> { %s3033_s24 = smov 42   ;;  %s3034_s29 = smov 48  }
 0x25c   : >> { %s2713_s30 = sshll.u32 %s3024_s25, 6  ;;  %s1359_s25 = sadd.s32 1, %s3024_s25  }
 0x25d   : >> { %v3676_v20 = vld [vmem:[%s3673_s11 + $0x3c] sm:$0xf]  ;;  %v3679_v33 = vld [vmem:[%s3673_s11 + $0x40] sm:$0xf]  ;;  %v1367_v34 = vld [vmem:[%s3673_s11 + $0xc] sm:$0xf]  ;;  %s4208_s9 = scalar_lea.vmem %s3144_s17, %s2713_s30 }
 0x25e   : >> { %v1531_v35 = vshrl.u32 %v3679_v33, 16  ;;  %v3685_v36 = vcombine.low %v3676_v20, %v3679_v33  ;;  %v1518_v37 = vshrl.u32 %v3676_v20, 16  ;;  %v1521_v38 = vshll.u32 %v3676_v20, 16  ;;  %v1368_v39 = vld [vmem:[%s3673_s11 + $0x10] sm:$0xf]  ;;  %p1356_p9 = scmp.ge.s32.totalorder %s1359_s25, 2  }
 0x25f   : >> { %v1431_v40 = vshll.u32 %v1368_v39, 16  ;;  %v1435_v41 = vshrl.u32 %v1368_v39, 16  ;;  %v3690_v55 = vcombine.low %v1367_v34, %v1368_v39  ;;  %v1422_v4 = vshrl.u32 %v1367_v34, 16  ;;  %v3693_v51 = vld [vmem:[%s3673_s11 + $0x30] sm:$0xf] }
 0x260   : >> { %1855 = vrot.lane.b32.xlu1 %v3685_v36, %s3027_s14  ;;  %v1425_v17 = vshll.u32 %v1367_v34, 16  ;;  %v3698_v59 = vld [vmem:[%s3673_s11 + $0x34] sm:$0xf]  ;;  %v3701_v23 = vld [vmem:[%s3673_s11 + $0x38] sm:$0x1]  ;;  %v2606_v6 = vrot.slane %v3693_v51, 9 }
 0x261   : >> { %v1437_v5 = vrot.slane %v1435_v41, 4  ;;  %1847 = vrot.lane.b32.xlu0 %v3690_v55, %s3027_s14  ;;  %v1424_v0 = vrot.slane %v1422_v4, 4  ;;  %v1646_v2 = vrot.slane %v3698_v59, 5  ;;  %v1649_v7 = vrot.slane %v3701_v23, 5  ;;  %v3715_v30 = vld [vmem:[%s3673_s11] sm:$0xf] }
 0x262   : >> { %v1427_v21 = vrot.slane %v1425_v17, 5  ;;  %v3718_v1 = vld [vmem:[%s3673_s11 + $0x4] sm:$0xf]  ;;  %v1366_v22 = vld [vmem:[%s3673_s11 + $0x8] sm:$0x1]  ;;  %v2602_v57 = vrot.slane %v3715_v30, 9  ;;  %v3724_v31 = vcombine.low %v3693_v51, %v3698_v59 }
 0x263   : >> { %v1647_v26 = vsel %vm3705_vm3, %v2606_v6, %v1646_v2  ;;  %v1648_v11 = vrot.slane %v1646_v2, 4  ;;  %v1618_v3 = vrot.slane %v3718_v1, 5  ;;  %v1621_v13 = vrot.slane %v1366_v22, 5  ;;  %v3730_v18 = vld [vmem:[%s3673_s11 + $0x44] sm:$0x1] }
 0x264   : >> { %v2607_v25 = vrot.slane %v3676_v20, 9  ;;  %v1653_v14 = vrot.slane %v3679_v33, 5  ;;  %v1656_v8 = vrot.slane %v3730_v18, 5  ;;  %v1369_v16 = vld [vmem:[%s3673_s11 + $0x14] sm:$0x1]  ;;  %v2603_v10 = vrot.slane %v1367_v34, 9 }
 0x265   : >> { %v1650_v52 = vsel %vm3705_vm3, %v1648_v11, %v1649_v7  ;;  %v1619_v24 = vsel %vm3705_vm3, %v2602_v57, %v1618_v3  ;;  %v1620_v28 = vrot.slane %v1618_v3, 4  ;;  %v1625_v61 = vrot.slane %v1368_v39, 5 }
 0x266   : >> { %v3740_v50 = vcombine.low %v1647_v26, %v1650_v52  ;;  %v1654_v63 = vsel %vm3705_vm3, %v2607_v25, %v1653_v14  ;;  %v1655_v15 = vrot.slane %v1653_v14, 4  ;;  %v1628_v32 = vrot.slane %v1369_v16, 5 }
 0x267   : >> { %v1622_v29 = vsel %vm3705_vm3, %v1620_v28, %v1621_v13  ;;  %v1626_v27 = vsel %vm3705_vm3, %v2603_v10, %v1625_v61  ;;  %v1627_v54 = vrot.slane %v1625_v61, 4  ;;  %v1428_v58 = vor.u32 %v1427_v21, %v1424_v0 }
 0x268   : >> { %1836 = vrot.lane.b32.xlu1 %v3740_v50, %s3028_s13  ;;  %v2628_v56 = vcombine.low %v1619_v24, %v1622_v29  ;;  %v1657_v62 = vsel %vm3705_vm3, %v1655_v15, %v1656_v8  ;;  %v1433_v53 = vrot.slane %v1431_v40, 5  ;;  %v1441_v19 = vshll.u32 %v1369_v16, 16  ;;  %v3793_v29 = vld [vmem:[%s3673_s11 + $0x48] sm:$0xf] }
 0x269   : >> { %v3758_v9 = vcombine.low %v1654_v63, %v1657_v62  ;;  %v1629_v34 = vsel %vm3705_vm3, %v1627_v54, %v1628_v32  ;;  %v1429_v39 = vrot.slane %v1428_v58, 4  ;;  %v1398_v41 = vshrl.u32 %v3715_v30, 16 }
 0x26a   : >> { %1828 = vrot.lane.b32.xlu0 %v2628_v56, %s3028_s13  ;;  %v3764_v4 = vcombine.low %v1626_v27, %v1629_v34  ;;  %v1438_v17 = vor.u32 %v1437_v5, %v1433_v53  ;;  %v1443_v6 = vrot.slane %v1441_v19, 5  ;;  %v1401_v0 = vshll.u32 %v3715_v30, 16 }
 0x26b   : >> { %v1434_v40 = vsel %vm3754_vm4, %v1429_v39, %v1433_v53  ;;  %v1400_v2 = vrot.slane %v1398_v41, 4  ;;  %v1407_v7 = vshll.u32 %v3718_v1, 16  ;;  %v1411_v21 = vshrl.u32 %v3718_v1, 16 }
 0x26c   : >> { %1838 = vrot.lane.b32.xlu1 %v3758_v9, %s3028_s13  ;;  %v1439_v57 = vrot.slane %v1438_v17, 4  ;;  %v1403_v26 = vrot.slane %v1401_v0, 5  ;;  %v1417_v11 = vshll.u32 %v1366_v22, 16  ;;  %v1520_v5 = vrot.slane %v1518_v37, 4  ;;  %v3810_v0 = vld [vmem:[%s3673_s11 + $0x1c] sm:$0xf] }
 0x26d   : >> { %v1409_v3 = vrot.slane %v1407_v7, 5  ;;  %v1413_v13 = vrot.slane %v1411_v21, 4  ;;  %v1523_v25 = vrot.slane %v1521_v38, 5  ;;  %v1527_v14 = vshll.u32 %v3679_v33, 16 }
 0x26e   : >> { %1830 = vrot.lane.b32.xlu0 %v3764_v4, %s3028_s13  ;;  %v1444_v8 = vsel %vm3754_vm4, %v1439_v57, %v1443_v6  ;;  %v1404_v16 = vor.u32 %v1403_v26, %v1400_v2  ;;  %v1419_v10 = vrot.slane %v1417_v11, 5  ;;  %v1533_v22 = vrot.slane %v1531_v35, 4  ;;  %v3807_v6 = vld [vmem:[%s3673_s11 + $0x18] sm:$0xf]  ;;  %v1384_v26 = vld [vmem:[%s3673_s11 + $0x50] sm:$0x1] }
 0x26f   : >> { %v3784_v37 = vcombine.low %v1434_v40, %v1444_v8  ;;  %v1414_v52 = vor.u32 %v1413_v13, %v1409_v3  ;;  %v1524_v24 = vor.u32 %v1523_v25, %v1520_v5  ;;  %v1529_v20 = vrot.slane %v1527_v14, 5 }
 0x270   : >> { %v1405_v38 = vrot.slane %v1404_v16, 4  ;;  %v1537_v28 = vshll.u32 %v3730_v18, 16  ;;  %v1494_v61 = vshrl.u32 %v3693_v51, 16  ;;  %v1497_v63 = vshll.u32 %v3693_v51, 16  ;;  %v3798_v51 = vld [vmem:[%s3673_s11 + $0x4c] sm:$0xf] }
 0x271   : >> { %1790 = vrot.lane.b32.xlu1 %v3784_v37, %s3029_s15  ;;  %v1415_v33 = vrot.slane %v1414_v52, 4  ;;  %v1525_v15 = vrot.slane %v1524_v24, 4  ;;  %v1534_v35 = vor.u32 %v1533_v22, %v1529_v20  ;;  %v1503_v32 = vshll.u32 %v3698_v59, 16 }
 0x272   : >> { %v1410_v18 = vsel %vm3754_vm4, %v1405_v38, %v1409_v3  ;;  %v1539_v27 = vrot.slane %v1537_v28, 5  ;;  %v1496_v54 = vrot.slane %v1494_v61, 4  ;;  %v1499_v58 = vrot.slane %v1497_v63, 5 }
 0x273   : >> { %v1420_v56 = vsel %vm3754_vm4, %v1415_v33, %v1419_v10  ;;  %v1530_v62 = vsel %vm3754_vm4, %v1525_v15, %v1529_v20  ;;  %v1535_v53 = vrot.slane %v1534_v35, 4  ;;  %v1505_v19 = vrot.slane %v1503_v32, 5  ;;  %v3834_v20 = vld [vmem:[%s3673_s11 + $0x20] sm:$0x1] }
 0x274   : >> { %v2620_v34 = vcombine.low %v1410_v18, %v1420_v56  ;;  %v1500_v39 = vor.u32 %v1499_v58, %v1496_v54  ;;  %v1507_v41 = vshrl.u32 %v3698_v59, 16  ;;  %v1513_v17 = vshll.u32 %v3701_v23, 16 }
 0x275   : >> { %v1540_v40 = vsel %vm3754_vm4, %v1535_v53, %v1539_v27  ;;  %v1542_v2 = vshrl.u32 %v3793_v29, 16  ;;  %v1545_v7 = vshll.u32 %v3793_v29, 16  ;;  %v1555_v21 = vshrl.u32 %v3798_v51, 16 }
 0x276   : >> { %1788 = vrot.lane.b32.xlu0 %v2620_v34, %s3029_s15  ;;  %v3818_v57 = vcombine.low %v1530_v62, %v1540_v40  ;;  %v1501_v59 = vrot.slane %v1500_v39, 4  ;;  %v1509_v23 = vrot.slane %v1507_v41, 4  ;;  %v1515_v11 = vrot.slane %v1513_v17, 5  ;;  %v3851_v17 = vld [vmem:[%s3673_s11 + $0x54] sm:$0xf] }
 0x277   : >> { %v1446_v5 = vshrl.u32 %v3807_v6, 16  ;;  %v1449_v3 = vshll.u32 %v3807_v6, 16  ;;  %v1459_v13 = vshrl.u32 %v3810_v0, 16  ;;  %v3830_v8 = vcombine.low %v3793_v29, %v3798_v51 }
 0x278   : >> { %1798 = vrot.lane.b32.xlu1 %v3818_v57, %s3029_s15  ;;  %v1506_v25 = vsel %vm3754_vm4, %v1501_v59, %v1505_v19  ;;  %v1510_v14 = vor.u32 %v1509_v23, %v1505_v19  ;;  %v1544_v16 = vrot.slane %v1542_v2, 4  ;;  %v1547_v10 = vrot.slane %v1545_v7, 5 }
 0x279   : >> { %v1551_v22 = vshll.u32 %v3798_v51, 16  ;;  %v1557_v52 = vrot.slane %v1555_v21, 4  ;;  %v1561_v24 = vshll.u32 %v1384_v26, 16  ;;  %v1448_v28 = vrot.slane %v1446_v5, 4 }
 0x27a   : >> { %v1511_v38 = vrot.slane %v1510_v14, 4  ;;  %v1451_v61 = vrot.slane %v1449_v3, 5  ;;  %v1455_v63 = vshll.u32 %v3810_v0, 16  ;;  %v1548_v33 = vor.u32 %v1547_v10, %v1544_v16  ;;  %v3866_v3 = vld [vmem:[%s3673_s11 + $0x24] sm:$0xf] }
 0x27b   : >> { %v1553_v15 = vrot.slane %v1551_v22, 5  ;;  %v1461_v35 = vrot.slane %v1459_v13, 4  ;;  %v1465_v54 = vshll.u32 %v3834_v20, 16  ;;  %v1563_v53 = vrot.slane %v1561_v24, 5  ;;  %v3881_v22 = vld [vmem:[%s3673_s11 + $0x28] sm:$0xf] }
 0x27c   : >> { %v1516_v32 = vsel %vm3754_vm4, %v1511_v38, %v1515_v11  ;;  %1857 = vrot.lane.b32.xlu1 %v3830_v8, %s3027_s14  ;;  %v1452_v18 = vor.u32 %v1451_v61, %v1448_v28  ;;  %v1457_v27 = vrot.slane %v1455_v63, 5  ;;  %v1549_v56 = vrot.slane %v1548_v33, 4  ;;  %v3862_v11 = vld [vmem:[%s3673_s11 + $0x58] sm:$0xf] }
 0x27d   : >> { %v3842_v58 = vcombine.low %v1506_v25, %v1516_v32  ;;  %v1558_v62 = vor.u32 %v1557_v52, %v1553_v15  ;;  %v3846_v19 = vcombine.low %v3807_v6, %v3810_v0  ;;  %v2608_v39 = vrot.slane %v3793_v29, 9 }
 0x27e   : >> { %v1462_v34 = vor.u32 %v1461_v35, %v1457_v27  ;;  %v1660_v41 = vrot.slane %v3798_v51, 5  ;;  %v1554_v40 = vsel %vm3754_vm4, %v1549_v56, %v1553_v15  ;;  %v1453_v7 = vrot.slane %v1452_v18, 4 }
 0x27f   : >> { %1796 = vrot.lane.b32.xlu0 %v3842_v58, %s3029_s15  ;;  %v1559_v2 = vrot.slane %v1558_v62, 4  ;;  %v1467_v21 = vrot.slane %v1465_v54, 5  ;;  %v1663_v23 = vrot.slane %v1384_v26, 5  ;;  %v1566_v5 = vshrl.u32 %v3851_v17, 16  ;;  %v3901_v54 = vld [vmem:[%s3673_s11 + $0x5c] sm:$0x1] }
 0x280   : >> { %1874 = vrot.lane.b32.xlu1 %v3818_v57, %s3030_s18  ;;  %v1463_v29 = vrot.slane %v1462_v34, 4  ;;  %v1662_v59 = vrot.slane %v1660_v41, 4  ;;  %v1569_v25 = vshll.u32 %v3851_v17, 16  ;;  %v1458_v14 = vsel %vm3754_vm4, %v1453_v7, %v1457_v27 }
 0x281   : >> { %v1564_v51 = vsel %vm3754_vm4, %v1559_v2, %v1563_v53  ;;  %v1661_v16 = vsel %vm3705_vm3, %v2608_v39, %v1660_v41  ;;  %v1632_v10 = vrot.slane %v3810_v0, 5  ;;  %v1579_v24 = vshrl.u32 %v3862_v11, 16  ;;  %v3907_v53 = vld [vmem:[%s3673_s11 + $0x2c] sm:$0x1] }
 0x282   : >> { %v3868_v13 = vcombine.low %v1554_v40, %v1564_v51  ;;  %v1468_v26 = vsel %vm3754_vm4, %v1463_v29, %v1467_v21  ;;  %v1664_v52 = vsel %vm3705_vm3, %v1662_v59, %v1663_v23  ;;  %v1470_v38 = vshrl.u32 %v3866_v3, 16  ;;  %v3916_v21 = vld [vmem:[%s3673_s11 + $0x60] sm:$0xf] }
 0x283   : >> { %1849 = vrot.lane.b32.xlu0 %v3846_v19, %s3027_s14  ;;  %v1473_v28 = vshll.u32 %v3866_v3, 16  ;;  %v2604_v61 = vrot.slane %v3807_v6, 9  ;;  %v1635_v63 = vrot.slane %v3834_v20, 5  ;;  %v1568_v0 = vrot.slane %v1566_v5, 4 }
 0x284   : >> { %1876 = vrot.lane.b32.xlu1 %v3868_v13, %s3030_s18  ;;  %v3892_v33 = vcombine.low %v1458_v14, %v1468_v26  ;;  %v1483_v15 = vshrl.u32 %v3881_v22, 16  ;;  %v1571_v35 = vrot.slane %v1569_v25, 5  ;;  %v1575_v32 = vshll.u32 %v3862_v11, 16  ;;  %v3929_v25 = vld [vmem:[%s3673_s11 + $0x64] sm:$0xf] }
 0x285   : >> { %v3898_v18 = vcombine.low %v1661_v16, %v1664_v52  ;;  %v1634_v27 = vrot.slane %v1632_v10, 4  ;;  %v1581_v6 = vrot.slane %v1579_v24, 4  ;;  %v1479_v20 = vshll.u32 %v3881_v22, 16  ;;  %v1390_v52 = vld [vmem:[%s3673_s11 + $0x68] sm:$0x1] }
 0x286   : >> { %v1572_v56 = vor.u32 %v1571_v35, %v1568_v0  ;;  %v1577_v62 = vrot.slane %v1575_v32, 5  ;;  %v1472_v34 = vrot.slane %v1470_v38, 4  ;;  %v1485_v41 = vrot.slane %v1483_v15, 4 }
 0x287   : >> { %1866 = vrot.lane.b32.xlu0 %v3784_v37, %s3030_s18  ;;  %v1475_v37 = vrot.slane %v1473_v28, 5  ;;  %v3909_v39 = vrot.slane %v1479_v20, 5  ;;  %v1585_v2 = vshll.u32 %v3901_v54, 16  ;;  %v1489_v7 = vshll.u32 %v3907_v53, 16  ;;  %v3955_v20 = vld [vmem:[%s3673_s11 + $0x6c] sm:$0xf] }
 0x288   : >> { %1893 = vrot.lane.b32.xlu1 %v3758_v9, %s3031_s21  ;;  %v1582_v40 = vor.u32 %v1581_v6, %v1577_v62  ;;  %v1633_v29 = vsel %vm3705_vm3, %v2604_v61, %v1632_v10  ;;  %v1636_v59 = vsel %vm3705_vm3, %v1634_v27, %v1635_v63  ;;  %v1573_v23 = vrot.slane %v1572_v56, 4 }
 0x289   : >> { %v1476_v51 = vor.u32 %v1475_v37, %v1472_v34  ;;  %v3926_v5 = vcombine.low %v3851_v17, %v3862_v11  ;;  %v3933_v14 = vcombine.low %v3866_v3, %v3881_v22  ;;  %v1486_v26 = vor.u32 %v1485_v41, %v3909_v39 }
 0x28a   : >> { %v1673_v16 = vshrl.u32 %v3916_v21, 16  ;;  %v1676_v10 = vshll.u32 %v3916_v21, 16  ;;  %v3941_v24 = vcombine.low %v1633_v29, %v1636_v59  ;;  %v1583_v38 = vrot.slane %v1582_v40, 4 }
 0x28b   : >> { %1868 = vrot.lane.b32.xlu0 %v3892_v33, %s3030_s18  ;;  %v1587_v28 = vrot.slane %v1585_v2, 5  ;;  %v3943_v61 = vrot.slane %v1489_v7, 5  ;;  %v1578_v63 = vsel %vm3754_vm4, %v1573_v23, %v1577_v62  ;;  %v3949_v0 = vrot.slane %v1476_v51, 4  ;;  %v3960_v62 = vld [vmem:[%s3673_s11 + $0x70] sm:$0xf] }
 0x28c   : >> { %1895 = vrot.lane.b32.xlu1 %v3898_v18, %s3031_s21  ;;  %v1675_v35 = vrot.slane %v1673_v16, 4  ;;  %v1678_v32 = vrot.slane %v1676_v10, 5  ;;  %v1682_v27 = vshll.u32 %v3929_v25, 16  ;;  %v1692_v6 = vshll.u32 %v1390_v52, 16 }
 0x28d   : >> { %v1487_v56 = vrot.slane %v1486_v26, 4  ;;  %v2610_v37 = vrot.slane %v3916_v21, 9  ;;  %v1701_v41 = vrot.slane %v3929_v25, 5  ;;  %v1588_v40 = vsel %vm3754_vm4, %v1583_v38, %v1587_v28  ;;  %v1393_v38 = vld [vmem:[%s3673_s11 + $0x74] sm:$0x1] }
 0x28e   : >> { %v1679_v2 = vor.u32 %v1678_v32, %v1675_v35  ;;  %v1684_v7 = vrot.slane %v1682_v27, 5  ;;  %v1694_v29 = vrot.slane %v1692_v6, 5  ;;  %v1704_v51 = vrot.slane %v1390_v52, 5 }
 0x28f   : >> { %1885 = vrot.lane.b32.xlu0 %v3764_v4, %s3031_s21  ;;  %v1686_v4 = vshrl.u32 %v3929_v25, 16  ;;  %v1702_v59 = vsel %vm3705_vm3, %v2610_v37, %v1701_v41  ;;  %v1703_v23 = vrot.slane %v1701_v41, 4  ;;  %v1707_v26 = vshrl.u32 %v3955_v20, 16 }
 0x290   : >> { %1912 = vrot.lane.b32.xlu1 %v3830_v8, %s3032_s0  ;;  %v1680_v16 = vrot.slane %v1679_v2, 4  ;;  %v1720_v15 = vshrl.u32 %v3960_v62, 16  ;;  %v3974_v28 = vcombine.low %v1578_v63, %v1588_v40  ;;  %v1716_v27 = vshll.u32 %v3960_v62, 16 }
 0x291   : >> { %v1688_v34 = vrot.slane %v1686_v4, 4  ;;  %v1710_v4 = vshll.u32 %v3955_v20, 16  ;;  %v1705_v35 = vsel %vm3705_vm3, %v1703_v23, %v1704_v51  ;;  %v1709_v32 = vrot.slane %v1707_v26, 4 }
 0x292   : >> { %v1685_v52 = vsel %vm3754_vm4, %v1680_v16, %v1684_v7  ;;  %v1718_v63 = vrot.slane %v1716_v27, 5  ;;  %v1722_v41 = vrot.slane %v1720_v15, 4  ;;  %v1726_v40 = vshll.u32 %v1393_v38, 16 }
 0x293   : >> { %1887 = vrot.lane.b32.xlu0 %v3941_v24, %s3031_s21  ;;  %v1689_v10 = vor.u32 %v1688_v34, %v1684_v7  ;;  %v3983_v34 = vcombine.low %v1702_v59, %v1705_v35  ;;  %v1712_v37 = vrot.slane %v1710_v4, 5  ;;  %v2611_v2 = vrot.slane %v3955_v20, 9 }
 0x294   : >> { %1914 = vrot.lane.b32.xlu1 %v3926_v5, %s3032_s0  ;;  %v1735_v26 = vrot.slane %v3960_v62, 5  ;;  %v1738_v7 = vrot.slane %v1393_v38, 5  ;;  %v1723_v59 = vor.u32 %v1722_v41, %v1718_v63  ;;  %v1482_v38 = vsel %vm3754_vm4, %v3949_v0, %v3909_v39 }
 0x295   : >> { %v1690_v6 = vrot.slane %v1689_v10, 4  ;;  %v1713_v51 = vor.u32 %v1712_v37, %v1709_v32  ;;  %v1728_v10 = vrot.slane %v1726_v40, 5  ;;  %v1492_v32 = vsel %vm3754_vm4, %v1487_v56, %v3943_v61 }
 0x296   : >> { %v3997_v15 = vsel %vm3705_vm3, %v2611_v2, %v1735_v26  ;;  %v1737_v35 = vrot.slane %v1735_v26, 4  ;;  %v2609_v27 = vrot.slane %v3851_v17, 9  ;;  %v1670_v41 = vrot.slane %v3901_v54, 5 }
 0x297   : >> { %1904 = vrot.lane.b32.xlu0 %v3846_v19, %s3032_s0  ;;  %v1695_v23 = vsel %vm3754_vm4, %v1690_v6, %v1694_v29  ;;  %v1714_v4 = vrot.slane %v1713_v51, 4  ;;  %v2612_v29 = vcombine.low %v3715_v30, %v3718_v1  ;;  %v4298_v6 = vrot.slane %v3862_v11, 5 }
 0x298   : >> { %1931 = vrot.lane.b32.xlu1 %v3868_v13, %s3033_s24  ;;  %v3991_v16 = vcombine.low %v1685_v52, %v1695_v23  ;;  %v1724_v52 = vrot.slane %v1723_v59, 4  ;;  %v4018_v2 = vsel %vm3705_vm3, %v1737_v35, %v1738_v7  ;;  %v2643_v17 = vcombine.low %v3338_v42, %v3341_v43 }
 0x299   : >> { %v1669_v37 = vrot.slane %v4298_v6, 4  ;;  %v1719_v40 = vsel %vm3754_vm4, %v1714_v4, %v1718_v63  ;;  %v2641_v61 = vcombine.low %v3997_v15, %v4018_v2  ;;  %v2644_v0 = vcombine.low %v3344_v44, %v3347_v45 }
 0x29a   : >> { %v1729_v39 = vsel %vm3754_vm4, %v1724_v52, %v1728_v10  ;;  %v2623_v54 = vcombine.low %v1482_v38, %v1492_v32  ;;  %v1639_v12 = vrot.slane %v3881_v22, 5  ;;  %2786 = vmatprep.subr.bf16.mxu0 %v2643_v17  ;;  %v4299_v63 = vmov %v4298_v6  ;;  %2810 = vmatprep.subr.bf16.mxu1 %v2643_v17 }
 0x29b   : >> { %1906 = vrot.lane.b32.xlu0 %v3933_v14, %s3032_s0  ;;  %v4030_v56 = vcombine.low %v1719_v40, %v1729_v39  ;;  %v1668_v23 = vsel %vm3705_vm3, %v2609_v27, %v4299_v63  ;;  %v1671_v51 = vsel %vm3705_vm3, %v1669_v37, %v1670_v41  ;;  %2787 = vmatpush3.bf16.msra.mxu0 %v2643_v17  ;;  %v2605_v22 = vrot.slane %v3866_v3, 9 }
 0x29c   : >> { %1933 = vrot.lane.b32.xlu1 %v3974_v28, %s3033_s24  ;;  %2814 = vmatpush3.bf16.msra.mxu1 %v2643_v17  ;;  %v2645_v26 = vcombine.low %v3350_v46, %v3353_v47  ;;  %v2635_v11 = vcombine.low %v1668_v23, %v1671_v51  ;;  %v1641_v7 = vrot.slane %v1639_v12, 4  ;;  %v1642_v59 = vrot.slane %v3907_v53, 5 }
 0x29d   : >> { %2788 = vmatprep.subr.bf16.mxu0 %v2644_v0  ;;  %2811 = vmatprep.subr.bf16.mxu1 %v2644_v0  ;;  %v2646_v10 = vcombine.low %v3356_v48, %v3356_v48  ;;  %v2636_v60 = vcombine.low %v3916_v21, %v3929_v25 }
 0x29e   : >> { %v1643_v3 = vsel %vm3705_vm3, %v1641_v7, %v1642_v59 }
 0x29f   : >> { %1923 = vrot.lane.b32.xlu0 %v3892_v33, %s3033_s24  ;;  %2789 = vmatpush3.bf16.msra.mxu0 %v2644_v0  ;;  %v2148_v53 = vsel %vm1613_vm15, %v2646_v10, 0 }
 0x2a0   : >> { %1950 = vrot.lane.b32.xlu1 %v3898_v18, %s3034_s29  ;;  %2815 = vmatpush3.bf16.msra.mxu1 %v2644_v0 }
 0x2a1   : >> { %2790 = vmatprep.subr.bf16.mxu0 %v2645_v26  ;;  %2812 = vmatprep.subr.bf16.mxu1 %v2645_v26 }
 0x2a3   : >> { %1925 = vrot.lane.b32.xlu0 %v2623_v54, %s3033_s24  ;;  %2791 = vmatpush3.bf16.msra.mxu0 %v2645_v26 }
 0x2a4   : >> { %1800 = vrot.lane.b32.xlu1 %v3868_v13, %s3029_s15  ;;  %v1640_v13 = vsel %vm3705_vm3, %v2605_v22, %v1639_v12  ;;  %2816 = vmatpush3.bf16.msra.mxu1 %v2645_v26 }
 0x2a5   : >> { %2819 = vmatprep.subr.msk.bf16.mxu0 %vm1613_vm15, %v2646_v10  ;;  %v2631_v4 = vcombine.low %v1640_v13, %v1643_v3  ;;  %2820 = vmatprep.subr.msk.bf16.mxu1 %vm1613_vm15, %v2646_v10 }
 0x2a7   : >> { %1942 = vrot.lane.b32.xlu0 %v3941_v24, %s3034_s29  ;;  %2793 = vmatpush3.bf16.msra.mxu0 %v2148_v53 }
 0x2a8   : >> { %1952 = vrot.lane.b32.xlu1 %v2635_v11, %s3034_s29  ;;  %2817 = vmatpush3.bf16.msra.mxu1 %v2148_v53 }
 0x2ab   : >> { %1792 = vrot.lane.b32.xlu0 %v3892_v33, %s3029_s15  ;;  %v2639_v33 = vcombine.low %v3955_v20, %v3960_v62 }
 0x2ac   : >> { %1802 = vrot.lane.b32.xlu1 %v3974_v28, %s3029_s15 }
 0x2af   : >> { %1944 = vrot.lane.b32.xlu0 %v2631_v4, %s3034_s29 }
 0x2b0   : >> { %1840 = vrot.lane.b32.xlu1 %v3898_v18, %s3028_s13 }
 0x2b3   : >> { %1794 = vrot.lane.b32.xlu0 %v2623_v54, %s3029_s15 }
 0x2b4   : >> { %1842 = vrot.lane.b32.xlu1 %v2635_v11, %s3028_s13 }
 0x2b7   : >> { %1832 = vrot.lane.b32.xlu0 %v3941_v24, %s3028_s13 }
 0x2b8   : >> { %1859 = vrot.lane.b32.xlu1 %v3926_v5, %s3027_s14 }
 0x2bb   : >> { %1834 = vrot.lane.b32.xlu0 %v2631_v4, %s3028_s13 }
 0x2bc   : >> { %1861 = vrot.lane.b32.xlu1 %v2636_v60, %s3027_s14 }
 0x2bf   : >> { %1851 = vrot.lane.b32.xlu0 %v3933_v14, %s3027_s14 }
 0x2c0   : >> { %1878 = vrot.lane.b32.xlu1 %v3974_v28, %s3030_s18 }
 0x2c3   : >> { %1853 = vrot.lane.b32.xlu0 %v3724_v31, %s3027_s14 }
 0x2c4   : >> { %1880 = vrot.lane.b32.xlu1 %v3991_v16, %s3030_s18 }
 0x2c7   : >> { %1870 = vrot.lane.b32.xlu0 %v2623_v54, %s3030_s18 }
 0x2c8   : >> { %1897 = vrot.lane.b32.xlu1 %v2635_v11, %s3031_s21 }
 0x2cb   : >> { %1872 = vrot.lane.b32.xlu0 %v3842_v58, %s3030_s18 }
 0x2cc   : >> { %1899 = vrot.lane.b32.xlu1 %v3983_v34, %s3031_s21 }
 0x2cf   : >> { %1889 = vrot.lane.b32.xlu0 %v2631_v4, %s3031_s21 }
 0x2d0   : >> { %1916 = vrot.lane.b32.xlu1 %v2636_v60, %s3032_s0 }
 0x2d2   : >> { %v1856_v18 = vpop.permute.xlu1 %1855 }
 0x2d3   : >> { %1891 = vrot.lane.b32.xlu0 %v3740_v50, %s3031_s21  ;;  %v1848_v21 = vpop.permute.xlu0 %1847 }
 0x2d4   : >> { %1918 = vrot.lane.b32.xlu1 %v2639_v33, %s3032_s0 }
 0x2d7   : >> { %1908 = vrot.lane.b32.xlu0 %v3724_v31, %s3032_s0 }
 0x2d8   : >> { %1935 = vrot.lane.b32.xlu1 %v3991_v16, %s3033_s24 }
 0x2da   : >> { %v1837_v25 = vpop.permute.xlu1 %1836 }
 0x2db   : >> { %1910 = vrot.lane.b32.xlu0 %v3685_v36, %s3032_s0 }
 0x2dc   : >> { %1937 = vrot.lane.b32.xlu1 %v4030_v56, %s3033_s24  ;;  %v1829_v20 = vpop.permute.xlu0 %1828 }
 0x2de   : >> { %v1839_v24 = vpop.permute.xlu1 %1838 }
 0x2df   : >> { %1927 = vrot.lane.b32.xlu0 %v3842_v58, %s3033_s24 }
 0x2e0   : >> { %1954 = vrot.lane.b32.xlu1 %v3983_v34, %s3034_s29  ;;  %v4116_v28 = vpop.permute.xlu0 %1830 }
 0x2e3   : >> { %1929 = vrot.lane.b32.xlu0 %v3818_v57, %s3033_s24  ;;  %v1791_v62 = vpop.permute.xlu1 %1790 }
 0x2e4   : >> { %1956 = vrot.lane.b32.xlu1 %v2641_v61, %s3034_s29  ;;  %v1964_v60 = vsel %vm1958_vm5, %v3690_v55, %v1791_v62 }
 0x2e7   : >> { %1946 = vrot.lane.b32.xlu0 %v3740_v50, %s3034_s29 }
 0x2e8   : >> { %v1789_v58 = vpop.permute.xlu0 %1788 }
 0x2e9   : >> { %v1961_v56 = vsel %vm1958_vm5, %v2612_v29, %v1789_v58  ;;  %v1987_v58 = vsel %vm1983_vm6, %v1964_v60, %v4116_v28 }
 0x2ea   : >> { %v1799_v16 = vpop.permute.xlu1 %1798  ;;  %v1985_v51 = vsel %vm1983_vm6, %v1961_v56, %v1829_v20 }
 0x2eb   : >> { %1948 = vrot.lane.b32.xlu0 %v3758_v9, %s3034_s29  ;;  %v1976_v26 = vsel %vm1958_vm5, %v3685_v36, %v1799_v16  ;;  %v2002_v29 = vsel %vm2000_vm8, %v1985_v51, %v1848_v21 }
 0x2ec   : >> { %v1995_v1 = vsel %vm1983_vm6, %v1976_v26, %v1839_v24 }
 0x2ee   : >> { %v1858_v34 = vpop.permute.xlu1 %1857 }
 0x2ef   : >> { %v2012_v59 = vsel %vm2000_vm8, %v1995_v1, %v1858_v34 }
 0x2f1   : >> { %v1797_v35 = vpop.permute.xlu0 %1796 }
 0x2f2   : >> { %v1875_v38 = vpop.permute.xlu1 %1874  ;;  %v1973_v50 = vsel %vm1958_vm5, %v3724_v31, %v1797_v35 }
 0x2f3   : >> { %v1993_v61 = vsel %vm1983_vm6, %v1973_v50, %v1837_v25 }
 0x2f4   : >> { %v2010_v0 = vsel %vm2000_vm8, %v1993_v61, %v1856_v18 }
 0x2f5   : >> { %v1850_v57 = vpop.permute.xlu0 %1849  ;;  %v2027_v31 = vsel %vm2017_vm7, %v2010_v0, %v1875_v38 }
 0x2f6   : >> { %v1877_v32 = vpop.permute.xlu1 %1876  ;;  %v2004_v55 = vsel %vm2000_vm8, %v1987_v58, %v1850_v57 }
 0x2f7   : >> { %v2029_v3 = vsel %vm2017_vm7, %v2012_v59, %v1877_v32 }
 0x2f9   : >> { %v1867_v27 = vpop.permute.xlu0 %1866 }
 0x2fa   : >> { %v1894_v52 = vpop.permute.xlu1 %1893  ;;  %v2019_v10 = vsel %vm2017_vm7, %v2002_v29, %v1867_v27 }
 0x2fb   : >> { %v2044_v12 = vsel %vm2034_vm9, %v2027_v31, %v1894_v52 }
 0x2fd   : >> { %v1869_v15 = vpop.permute.xlu0 %1868 }
 0x2fe   : >> { %v1896_v6 = vpop.permute.xlu1 %1895  ;;  %v2021_v34 = vsel %vm2017_vm7, %v2004_v55, %v1869_v15 }
 0x2ff   : >> { %v2046_v53 = vsel %vm2034_vm9, %v2029_v3, %v1896_v6 }
 0x301   : >> { %v1886_v37 = vpop.permute.xlu0 %1885 }
 0x302   : >> { %v1913_v41 = vpop.permute.xlu1 %1912  ;;  %v2036_v36 = vsel %vm2034_vm9, %v2019_v10, %v1886_v37 }
 0x303   : >> { %v2061_v63 = vsel %vm2051_vm10, %v2044_v12, %v1913_v41 }
 0x305   : >> { %v1888_v40 = vpop.permute.xlu0 %1887 }
 0x306   : >> { %v1915_v2 = vpop.permute.xlu1 %1914  ;;  %v2038_v38 = vsel %vm2034_vm9, %v2021_v34, %v1888_v40 }
 0x307   : >> { %v2063_v33 = vsel %vm2051_vm10, %v2046_v53, %v1915_v2 }
 0x309   : >> { %v1905_v39 = vpop.permute.xlu0 %1904 }
 0x30a   : >> { %v1932_v9 = vpop.permute.xlu1 %1931  ;;  %v2053_v4 = vsel %vm2051_vm10, %v2036_v36, %v1905_v39 }
 0x30b   : >> { %v2078_v22 = vsel %vm2068_vm11, %v2061_v63, %v1932_v9 }
 0x30d   : >> { %v1907_v17 = vpop.permute.xlu0 %1906 }
 0x30e   : >> { %v1934_v54 = vpop.permute.xlu1 %1933  ;;  %v2055_v32 = vsel %vm2051_vm10, %v2038_v38, %v1907_v17 }
 0x30f   : >> { %v2080_v24 = vsel %vm2068_vm11, %v2063_v33, %v1934_v54 }
 0x311   : >> { %v1924_v23 = vpop.permute.xlu0 %1923 }
 0x312   : >> { %v1951_v11 = vpop.permute.xlu1 %1950  ;;  %v2070_v21 = vsel %vm2068_vm11, %v2053_v4, %v1924_v23 }
 0x313   : >> { %v2095_v30 = vsel %vm955_vm13, %v2078_v22, %v1951_v11 }
 0x314   : >> { %2802 = vmatprep.mubr.msk.bf16.mxu1 %vm2129_vm12, %v2095_v30 }
 0x315   : >> { %v1926_v7 = vpop.permute.xlu0 %1925 }
 0x316   : >> { %v1801_v13 = vpop.permute.xlu1 %1800  ;;  %v2072_v27 = vsel %vm2068_vm11, %v2055_v32, %v1926_v7 }
 0x317   : >> { %v1979_v11 = vsel %vm1958_vm5, %v3830_v8, %v1801_v13 }
 0x319   : >> { %v1943_v18 = vpop.permute.xlu0 %1942 }
 0x31a   : >> { %v2087_v25 = vsel %vm955_vm13, %v2070_v21, %v1943_v18  ;;  %v1953_v20 = vpop.permute.xlu1 %1952 }
 0x31b   : >> { %2794 = vmatprep.mubr.msk.bf16.mxu0 %vm2129_vm12, %v2087_v25  ;;  %v2097_v16 = vsel %vm955_vm13, %v2080_v24, %v1953_v20 }
 0x31c   : >> { %2803 = vmatmul.mubr.msk.bf16.vlgmr.msra.gmra.mrb[0].mxu1 %vm2129_vm12, %v2097_v16 }
 0x31d   : >> { %v1793_v62 = vpop.permute.xlu0 %1792 }
 0x31e   : >> { %v1803_v35 = vpop.permute.xlu1 %1802  ;;  %v1967_v60 = vsel %vm1958_vm5, %v3846_v19, %v1793_v62 }
 0x31f   : >> { %v1982_v59 = vsel %vm1958_vm5, %v3926_v5, %v1803_v35 }
 0x321   : >> { %v1945_v52 = vpop.permute.xlu0 %1944 }
 0x322   : >> { %v2089_v6 = vsel %vm955_vm13, %v2072_v27, %v1945_v52  ;;  %v1841_v37 = vpop.permute.xlu1 %1840 }
 0x323   : >> { %2795 = vmatmul.mubr.msk.bf16.vlgmr.msra.gmra.mrb[0].mxu0 %vm2129_vm12, %v2089_v6  ;;  %v1997_v22 = vsel %vm1983_vm6, %v1979_v11, %v1841_v37 }
 0x325   : >> { %v1795_v28 = vpop.permute.xlu0 %1794 }
 0x326   : >> { %v1843_v41 = vpop.permute.xlu1 %1842  ;;  %v1970_v55 = vsel %vm1958_vm5, %v3933_v14, %v1795_v28 }
 0x327   : >> { %v1999_v3 = vsel %vm1983_vm6, %v1982_v59, %v1843_v41 }
 0x329   : >> { %v1833_v2 = vpop.permute.xlu0 %1832 }
 0x32a   : >> { %v1860_v57 = vpop.permute.xlu1 %1859  ;;  %v1989_v5 = vsel %vm1983_vm6, %v1967_v60, %v1833_v2 }
 0x32b   : >> { %v2014_v1 = vsel %vm2000_vm8, %v1997_v22, %v1860_v57 }
 0x32d   : >> { %v1835_v50 = vpop.permute.xlu0 %1834 }
 0x32e   : >> { %v1862_v39 = vpop.permute.xlu1 %1861  ;;  %v1991_v35 = vsel %vm1983_vm6, %v1970_v55, %v1835_v50 }
 0x32f   : >> { %v2016_v8 = vsel %vm2000_vm8, %v1999_v3, %v1862_v39 }
 0x331   : >> { %v1852_v15 = vpop.permute.xlu0 %1851 }
 0x332   : >> { %v1879_v9 = vpop.permute.xlu1 %1878  ;;  %v2006_v25 = vsel %vm2000_vm8, %v1989_v5, %v1852_v15 }
 0x333   : >> { %v2031_v7 = vsel %vm2017_vm7, %v2014_v1, %v1879_v9 }
 0x335   : >> { %v1854_v61 = vpop.permute.xlu0 %1853 }
 0x336   : >> { %v1881_v40 = vpop.permute.xlu1 %1880  ;;  %v2008_v32 = vsel %vm2000_vm8, %v1991_v35, %v1854_v61 }
 0x337   : >> { %v2033_v33 = vsel %vm2017_vm7, %v2016_v8, %v1881_v40 }
 0x339   : >> { %v1871_v0 = vpop.permute.xlu0 %1870 }
 0x33a   : >> { %v1898_v17 = vpop.permute.xlu1 %1897  ;;  %v2023_v16 = vsel %vm2017_vm7, %v2006_v25, %v1871_v0 }
 0x33b   : >> { %v2048_v10 = vsel %vm2034_vm9, %v2031_v7, %v1898_v17 }
 0x33d   : >> { %v1873_v54 = vpop.permute.xlu0 %1872 }
 0x33e   : >> { %v1900_v56 = vpop.permute.xlu1 %1899  ;;  %v2025_v6 = vsel %vm2017_vm7, %v2008_v32, %v1873_v54 }
 0x33f   : >> { %v2050_v21 = vsel %vm2034_vm9, %v2033_v33, %v1900_v56 }
 0x341   : >> { %v1890_v31 = vpop.permute.xlu0 %1889 }
 0x342   : >> { %v1917_v12 = vpop.permute.xlu1 %1916  ;;  %v2040_v62 = vsel %vm2034_vm9, %v2023_v16, %v1890_v31 }
 0x343   : >> { %v2065_v36 = vsel %vm2051_vm10, %v2048_v10, %v1917_v12 }
 0x345   : >> { %v1892_v63 = vpop.permute.xlu0 %1891 }
 0x346   : >> { %v1919_v23 = vpop.permute.xlu1 %1918  ;;  %v2042_v37 = vsel %vm2034_vm9, %v2025_v6, %v1892_v63 }
 0x347   : >> { %v2067_v24 = vsel %vm2051_vm10, %v2050_v21, %v1919_v23 }
 0x349   : >> { %v1909_v51 = vpop.permute.xlu0 %1908 }
 0x34a   : >> { %v1936_v26 = vpop.permute.xlu1 %1935  ;;  %v2057_v38 = vsel %vm2051_vm10, %v2040_v62, %v1909_v51 }
 0x34b   : >> { %v2082_v13 = vsel %vm2068_vm11, %v2065_v36, %v1936_v26 }
 0x34d   : >> { %v1911_v30 = vpop.permute.xlu0 %1910 }
 0x34e   : >> { %v1938_v29 = vpop.permute.xlu1 %1937  ;;  %v2059_v28 = vsel %vm2051_vm10, %v2042_v37, %v1911_v30 }
 0x34f   : >> { %v2084_v58 = vsel %vm2068_vm11, %v2067_v24, %v1938_v29 }
 0x351   : >> { %v1928_v53 = vpop.permute.xlu0 %1927 }
 0x352   : >> { %v1955_v4 = vpop.permute.xlu1 %1954  ;;  %v2074_v27 = vsel %vm2068_vm11, %v2057_v38, %v1928_v53 }
 0x353   : >> { %v2099_v18 = vsel %vm955_vm13, %v2082_v13, %v1955_v4 }
 0x354   : >> { %2806 = vmatprep.mubr.msk.bf16.mxu1 %vm2129_vm12, %v2099_v18 }
 0x355   : >> { %v1930_v20 = vpop.permute.xlu0 %1929 }
 0x356   : >> { %v1957_v19 = vpop.permute.xlu1 %1956  ;;  %v2076_v41 = vsel %vm2068_vm11, %v2059_v28, %v1930_v20 }
 0x357   : >> { %v2101_v34 = vsel %vm955_vm13, %v2084_v58, %v1957_v19 }
 0x358   : >> { %2807 = vmatmul.mubr.msk.bf16.gmra.mrb[4].mxu1 %vm2129_vm12, %v2101_v34 }
 0x359   : >> { %v1947_v52 = vpop.permute.xlu0 %1946 }
 0x35a   : >> { %v2091_v14 = vsel %vm955_vm13, %v2074_v27, %v1947_v52 }
 0x35b   : >> { %2798 = vmatprep.mubr.msk.bf16.mxu0 %vm2129_vm12, %v2091_v14 }
 0x35d   : >> { %v1949_v2 = vpop.permute.xlu0 %1948 }
 0x35e   : >> { %v2093_v57 = vsel %vm955_vm13, %v2076_v41, %v1949_v2 }
 0x35f   : >> { %2799 = vmatmul.mubr.msk.bf16.gmra.mrb[4].mxu0 %vm2129_vm12, %v2093_v57 }
 0x3ef   : >> { %v2804_v50 = vpop.f32.mrb[0].mxu1 }
 0x3f0   : >> { %v2225_v39 = vadd.f32 %v2804_v50, %v3363_v49  ;;  %v2216_v15 = vpop.f32.mrb[1].mxu1 }
 0x3f1   : >> { %v2217_v9 = vadd.f32 %v3363_v49, %v2216_v15  ;;  %v2805_v61 = vpop.f32.mrb[2].mxu1 }
 0x3f2   : >> { %v2706_v40 = vpack.c.bf16 %v2225_v39, %v2225_v39  ;;  %v2228_v0 = vadd.f32 %v2805_v61, %v3363_v49  ;;  %v2219_v17 = vpop.f32.mrb[3].mxu1 }
 0x3f3   : >> { %v2704_v54 = vpack.c.bf16 %v2217_v9, %v2217_v9  ;;  %v2220_v56 = vadd.f32 %v3363_v49, %v2219_v17 }
 0x3f4   : >> { %2325 = vst.msk [vmem:[%s4208_s9 + $0x28] sm:$0xf] %vm2314_vm14, %v2706_v40  ;;  %v2707_v31 = vpack.c.bf16 %v2228_v0, %v2228_v0 }
 0x3f5   : >> { %2323 = vst.msk [vmem:[%s4208_s9 + $0x20] sm:$0xf] %vm2314_vm14, %v2704_v54  ;;  %v2705_v12 = vpack.c.bf16 %v2220_v56, %v2220_v56 }
 0x3f6   : >> { %v2796_v63 = vpop.f32.mrb[0].mxu0  ;;  %2326 = vst.msk [vmem:[%s4208_s9 + $0x2c] sm:$0xf] %vm2314_vm14, %v2707_v31 }
 0x3f7   : >> { %v2193_v23 = vadd.f32 %v2796_v63, %v3363_v49  ;;  %v2184_v51 = vpop.f32.mrb[1].mxu0  ;;  %2324 = vst.msk [vmem:[%s4208_s9 + $0x24] sm:$0xf] %vm2314_vm14, %v2705_v12 }
 0x3f8   : >> { %v2185_v26 = vadd.f32 %v3363_v49, %v2184_v51  ;;  %v2797_v11 = vpop.f32.mrb[2].mxu0 }
 0x3f9   : >> { %v2698_v22 = vpack.c.bf16 %v2193_v23, %v2193_v23  ;;  %v2196_v30 = vadd.f32 %v2797_v11, %v3363_v49  ;;  %v2187_v1 = vpop.f32.mrb[3].mxu0 }
 0x3fa   : >> { %v2696_v29 = vpack.c.bf16 %v2185_v26, %v2185_v26  ;;  %v2188_v7 = vadd.f32 %v3363_v49, %v2187_v1 }
 0x3fb   : >> { %2317 = vst.msk [vmem:[%s4208_s9 + $0x8] sm:$0xf] %vm2314_vm14, %v2698_v22  ;;  %v2699_v59 = vpack.c.bf16 %v2196_v30, %v2196_v30 }
 0x3fc   : >> { %2315 = vst.msk [vmem:[%s4208_s9] sm:$0xf] %vm2314_vm14, %v2696_v29  ;;  %v2697_v10 = vpack.c.bf16 %v2188_v7, %v2188_v7 }
 0x3fd   : >> { %2318 = vst.msk [vmem:[%s4208_s9 + $0xc] sm:$0xf] %vm2314_vm14, %v2699_v59 }
 0x3fe   : >> { %2316 = vst.msk [vmem:[%s4208_s9 + $0x4] sm:$0xf] %vm2314_vm14, %v2697_v10 }
 0x42b   : >> { %v2808_v3 = vpop.f32.mrb[4].mxu1 }
 0x42c   : >> { %v2241_v36 = vadd.f32 %v2808_v3, %v3363_v49  ;;  %v2232_v53 = vpop.f32.mrb[5].mxu1 }
 0x42d   : >> { %v2233_v8 = vadd.f32 %v3363_v49, %v2232_v53  ;;  %v2809_v13 = vpop.f32.mrb[6].mxu1 }
 0x42e   : >> { %v2710_v4 = vpack.c.bf16 %v2241_v36, %v2241_v36  ;;  %v2244_v60 = vadd.f32 %v2809_v13, %v3363_v49  ;;  %v2235_v33 = vpop.f32.mrb[7].mxu1 }
 0x42f   : >> { %v2708_v18 = vpack.c.bf16 %v2233_v8, %v2233_v8  ;;  %v2236_v5 = vadd.f32 %v3363_v49, %v2235_v33 }
 0x430   : >> { %2329 = vst.msk [vmem:[%s4208_s9 + $0x38] sm:$0xf] %vm2314_vm14, %v2710_v4  ;;  %v2711_v21 = vpack.c.bf16 %v2244_v60, %v2244_v60 }
 0x431   : >> { %2327 = vst.msk [vmem:[%s4208_s9 + $0x30] sm:$0xf] %vm2314_vm14, %v2708_v18  ;;  %v2709_v25 = vpack.c.bf16 %v2236_v5, %v2236_v5 }
 0x432   : >> { %v2800_v24 = vpop.f32.mrb[4].mxu0  ;;  %2330 = vst.msk [vmem:[%s4208_s9 + $0x3c] sm:$0xf] %vm2314_vm14, %v2711_v21 }
 0x433   : >> { %v2209_v20 = vadd.f32 %v2800_v24, %v3363_v49  ;;  %v2200_v16 = vpop.f32.mrb[5].mxu0  ;;  %2328 = vst.msk [vmem:[%s4208_s9 + $0x34] sm:$0xf] %vm2314_vm14, %v2709_v25 }
 0x434   : >> { %v2201_v58 = vadd.f32 %v3363_v49, %v2200_v16  ;;  %v2801_v19 = vpop.f32.mrb[6].mxu0  ;;  %1358 = sbr.rel (!%p1356_p9) target bundleno = 599 (0x257), region = 129 }
 0x435   : >> { %v2702_v55 = vpack.c.bf16 %v2209_v20, %v2209_v20  ;;  %v2212_v62 = vadd.f32 %v2801_v19, %v3363_v49  ;;  %v2203_v34 = vpop.f32.mrb[7].mxu0 }
 0x436   : >> { %v2700_v35 = vpack.c.bf16 %v2201_v58, %v2201_v58  ;;  %v2204_v38 = vadd.f32 %v3363_v49, %v2203_v34 }
 0x437   : >> { %2321 = vst.msk [vmem:[%s4208_s9 + $0x18] sm:$0xf] %vm2314_vm14, %v2702_v55  ;;  %v2703_v32 = vpack.c.bf16 %v2212_v62, %v2212_v62 }
 0x438   : >> { %2319 = vst.msk [vmem:[%s4208_s9 + $0x10] sm:$0xf] %vm2314_vm14, %v2700_v35  ;;  %v2701_v27 = vpack.c.bf16 %v2204_v38, %v2204_v38 }
 0x439   : >> { %2322 = vst.msk [vmem:[%s4208_s9 + $0x1c] sm:$0xf] %vm2314_vm14, %v2703_v32 }
 0x43a   : >> { %2320 = vst.msk [vmem:[%s4208_s9 + $0x14] sm:$0xf] %vm2314_vm14, %v2701_v27 }
 0x43b PF: > { %s17_s28 = sadd.s32 1, %s3016_s28   ;;  %s4300_s12 = sld [smem:[#allocation3_spill]] }
 0x43c   : > { %p14_p10 = scmp.ge.s32.totalorder %s17_s28, 10   ;;  %s4301_s16 = sld [smem:[#allocation4_spill]] }
 0x43d   : > { %s4302_s24 = smov %s3008_s26  ;;  %s4303_s25 = smov %s3012_s27 }
 0x43e   :  { %16 = sbr.rel (!%p14_p10) target bundleno = 3 (0x3), region = 140 }
 0x441   : > { %s4304_s26 = smov %s4300_s12 }
 0x442   : > { %s4305_s27 = smov %s4301_s16 }

// kernel: wdsr_forward.5
= control target key start
LH: loop header
LB: loop body
LE: loop exit
PB: predicated region body
PF: predicated region fallthrough
CT: control target
= control target key end

     0   :  { %s3147_s18 = smov 0   ;;  %s5407_s0 = inlined_call_operand.vmem [shape: bf16[2,16,16,8], index: 0, kind: input, shape index: {}]   ;;  %s5408_s1 = inlined_call_operand.vmem [shape: bf16[2,16,16,75], index: 1, kind: input, shape index: {}]   ;;  %s5409_s2 = inlined_call_operand.vmem [shape: bf16[200,12], index: 2, kind: input, shape index: {}]   ;;  %s5410_s3 = inlined_call_operand.vmem [shape: bf16[75,12], index: 3, kind: input, shape index: {}]   ;;  %s5411_s4 = inlined_call_operand.vmem [shape: f32[1,12], index: 4, kind: input, shape index: {}]   ;;  %s5412_s5 = inlined_call_operand.vmem [shape: f32[2,16,16,12], index: 5, kind: output, shape index: {}]  }
   0x1 LB: > { %s2803_s19 = sadd.s32 4294967295, %s3093_s18   ;;  %p2807_p0 = scmp.ge.s32.totalorder %s3093_s18, 1  ;;  %s3093_s18 = sphi %s3147_s18, %s15_s18  }
   0x2   : > { %p197_p1 = scmp.lt.s32.totalorder %s3093_s18, 3 }
   0x4   : > { %p198_p2 = pnand %p2807_p0, %p197_p1 }
   0x5   : > { %vm246_vm0 = vcmask (!%p198_p2), 60416   ;;  %v3158_v0 = vld [vmem:[%s5409_s2] sm:$0xf] (!%p198_p2)  ;;  %v3163_v1 = vld [vmem:[%s5409_s2 + $0x4] sm:$0xf] (!%p198_p2)  ;;  %v3099_v2 = vmov (!%p198_p2), 0  }
   0x6   : > { %201 = sbr.rel (%p198_p2) target bundleno = 832 (0x340), region = 40  ;;  %5517 = vst [vmem:[#allocation3_spill] sm:$0xff] (!%p198_p2), %v3158_v0  ;;  %5518 = vst [vmem:[#allocation4_spill] sm:$0xff] (!%p198_p2), %v3163_v1  ;;  %v3248_v3 = vld [vmem:[%s5409_s2 + $0x8] sm:$0xf] (!%p198_p2)  ;;  %vm249_vm1 = vcmask (!%p198_p2), 58368  }
   0x7   : > { %254 = vst.msk [vmem:[#allocation2 + $0x18] sm:$0xf] (!%p198_p2), %vm246_vm0, %v3099_v2  ;;  %247 = vst.msk [vmem:[#allocation2] sm:$0xf] (!%p198_p2), %vm246_vm0, %v3099_v2  ;;  %v3253_v4 = vld [vmem:[%s5409_s2 + $0xc] sm:$0xf] (!%p198_p2) }
   0x8   : > { %248 = vst.msk [vmem:[#allocation2 + $0x4] sm:$0xf] (!%p198_p2), %vm246_vm0, %v3099_v2  ;;  %251 = vst.msk [vmem:[#allocation2 + $0xc] sm:$0xf] (!%p198_p2), %vm246_vm0, %v3099_v2  ;;  %v3258_v5 = vld [vmem:[%s5409_s2 + $0x10] sm:$0xf] (!%p198_p2) }
   0x9   : > { %252 = vst.msk [vmem:[#allocation2 + $0x10] sm:$0xf] (!%p198_p2), %vm246_vm0, %v3099_v2  ;;  %255 = vst.msk [vmem:[#allocation2 + $0x1c] sm:$0xf] (!%p198_p2), %vm246_vm0, %v3099_v2  ;;  %v3263_v6 = vld [vmem:[%s5409_s2 + $0x14] sm:$0xf] (!%p198_p2) }
   0xa   : > { %257 = vst.msk [vmem:[#allocation2 + $0x24] sm:$0xf] (!%p198_p2), %vm246_vm0, %v3099_v2  ;;  %258 = vst.msk [vmem:[#allocation2 + $0x28] sm:$0xf] (!%p198_p2), %vm246_vm0, %v3099_v2  ;;  %v3268_v7 = vld [vmem:[%s5409_s2 + $0x18] sm:$0xf] (!%p198_p2) }
   0xb   : > { %260 = vst.msk [vmem:[#allocation2 + $0x30] sm:$0xf] (!%p198_p2), %vm246_vm0, %v3099_v2  ;;  %261 = vst.msk [vmem:[#allocation2 + $0x34] sm:$0xf] (!%p198_p2), %vm246_vm0, %v3099_v2  ;;  %v3273_v8 = vld [vmem:[%s5409_s2 + $0x1c] sm:$0xf] (!%p198_p2) }
   0xc   : > { %263 = vst.msk [vmem:[#allocation2 + $0x3c] sm:$0xf] (!%p198_p2), %vm246_vm0, %v3099_v2  ;;  %264 = vst.msk [vmem:[#allocation2 + $0x40] sm:$0xf] (!%p198_p2), %vm246_vm0, %v3099_v2  ;;  %v3278_v9 = vld [vmem:[%s5409_s2 + $0x20] sm:$0xf] (!%p198_p2) }
   0xd   : > { %266 = vst.msk [vmem:[#allocation2 + $0x48] sm:$0xf] %vm246_vm0, %v3099_v2  ;;  %267 = vst.msk [vmem:[#allocation2 + $0x4c] sm:$0xf] %vm246_vm0, %v3099_v2  ;;  %v3283_v10 = vld [vmem:[%s5409_s2 + $0x24] sm:$0xf] }
   0xe   : > { %269 = vst.msk [vmem:[#allocation2 + $0x54] sm:$0xf] %vm246_vm0, %v3099_v2  ;;  %270 = vst.msk [vmem:[#allocation2 + $0x58] sm:$0xf] %vm246_vm0, %v3099_v2  ;;  %v3288_v11 = vld [vmem:[%s5409_s2 + $0x28] sm:$0xf] }
   0xf   : > { %272 = vst.msk [vmem:[#allocation2 + $0x60] sm:$0xf] %vm246_vm0, %v3099_v2  ;;  %273 = vst.msk [vmem:[#allocation2 + $0x64] sm:$0xf] %vm246_vm0, %v3099_v2  ;;  %v3293_v12 = vld [vmem:[%s5409_s2 + $0x2c] sm:$0xf] }
  0x10   : > { %275 = vst.msk [vmem:[#allocation2 + $0x6c] sm:$0xf] %vm246_vm0, %v3099_v2  ;;  %276 = vst.msk [vmem:[#allocation2 + $0x70] sm:$0xf] %vm246_vm0, %v3099_v2  ;;  %v3298_v13 = vld [vmem:[%s5409_s2 + $0x30] sm:$0xf] }
  0x11   : > { %278 = vst.msk [vmem:[#allocation2 + $0x78] sm:$0xf] %vm246_vm0, %v3099_v2  ;;  %279 = vst.msk [vmem:[#allocation2 + $0x7c] sm:$0xf] %vm246_vm0, %v3099_v2  ;;  %v3303_v14 = vld [vmem:[%s5409_s2 + $0x34] sm:$0xf] }
  0x12   : > { %281 = vst.msk [vmem:[#allocation2 + $0x84] sm:$0xf] %vm246_vm0, %v3099_v2  ;;  %282 = vst.msk [vmem:[#allocation2 + $0x88] sm:$0xf] %vm246_vm0, %v3099_v2  ;;  %v3308_v15 = vld [vmem:[%s5409_s2 + $0x38] sm:$0xf] }
  0x13   : > { %284 = vst.msk [vmem:[#allocation2 + $0x90] sm:$0xf] %vm246_vm0, %v3099_v2  ;;  %285 = vst.msk [vmem:[#allocation2 + $0x94] sm:$0xf] %vm246_vm0, %v3099_v2  ;;  %v3313_v16 = vld [vmem:[%s5409_s2 + $0x3c] sm:$0xf] }
  0x14   : > { %287 = vst.msk [vmem:[#allocation2 + $0x9c] sm:$0xf] %vm246_vm0, %v3099_v2  ;;  %288 = vst.msk [vmem:[#allocation2 + $0xa0] sm:$0xf] %vm246_vm0, %v3099_v2  ;;  %v3318_v17 = vld [vmem:[%s5409_s2 + $0x40] sm:$0xf] }
  0x15   : > { %290 = vst.msk [vmem:[#allocation2 + $0xa8] sm:$0xf] %vm246_vm0, %v3099_v2  ;;  %291 = vst.msk [vmem:[#allocation2 + $0xac] sm:$0xf] %vm246_vm0, %v3099_v2  ;;  %v3323_v18 = vld [vmem:[%s5409_s2 + $0x44] sm:$0xf] }
  0x16   : > { %293 = vst.msk [vmem:[#allocation2 + $0xb4] sm:$0xf] %vm246_vm0, %v3099_v2  ;;  %294 = vst.msk [vmem:[#allocation2 + $0xb8] sm:$0xf] %vm246_vm0, %v3099_v2  ;;  %v3328_v19 = vld [vmem:[%s5409_s2 + $0x48] sm:$0xf] }
  0x17   : > { %296 = vst.msk [vmem:[#allocation2 + $0xc0] sm:$0xf] %vm246_vm0, %v3099_v2  ;;  %297 = vst.msk [vmem:[#allocation2 + $0xc4] sm:$0xf] %vm246_vm0, %v3099_v2  ;;  %v3333_v20 = vld [vmem:[%s5409_s2 + $0x4c] sm:$0xf] }
  0x18   : > { %299 = vst.msk [vmem:[#allocation2 + $0xcc] sm:$0xf] %vm246_vm0, %v3099_v2  ;;  %300 = vst.msk [vmem:[#allocation2 + $0xd0] sm:$0xf] %vm246_vm0, %v3099_v2  ;;  %v3338_v21 = vld [vmem:[%s5409_s2 + $0x50] sm:$0xf] }
  0x19   : > { %302 = vst.msk [vmem:[#allocation2 + $0xd8] sm:$0xf] %vm246_vm0, %v3099_v2  ;;  %303 = vst.msk [vmem:[#allocation2 + $0xdc] sm:$0xf] %vm246_vm0, %v3099_v2  ;;  %v3343_v22 = vld [vmem:[%s5409_s2 + $0x54] sm:$0xf] }
  0x1a   : > { %305 = vst.msk [vmem:[#allocation2 + $0xe4] sm:$0xf] %vm246_vm0, %v3099_v2  ;;  %306 = vst.msk [vmem:[#allocation2 + $0xe8] sm:$0xf] %vm246_vm0, %v3099_v2  ;;  %v3348_v23 = vld [vmem:[%s5409_s2 + $0x58] sm:$0xf] }
  0x1b   : > { %5519 = vst [vmem:[#allocation5_spill] sm:$0xff] %v3248_v3  ;;  %5520 = vst [vmem:[#allocation6_spill] sm:$0xff] %v3253_v4  ;;  %v3353_v24 = vld [vmem:[%s5409_s2 + $0x5c] sm:$0xf]  ;;  %v3358_v25 = vld [vmem:[%s5409_s2 + $0x60] sm:$0xf] }
  0x1c   : > { %5521 = vst [vmem:[#allocation7_spill] sm:$0xff] %v3258_v5  ;;  %5522 = vst [vmem:[#allocation8_spill] sm:$0xff] %v3263_v6  ;;  %v3363_v26 = vld [vmem:[%s5410_s3] sm:$0xf]  ;;  %v3368_v27 = vld [vmem:[%s5410_s3 + $0x4] sm:$0xf] }
  0x1d   : > { %5523 = vst [vmem:[#allocation9_spill] sm:$0xff] %v3268_v7  ;;  %5524 = vst [vmem:[#allocation10_spill] sm:$0xff] %v3273_v8  ;;  %v3373_v28 = vld [vmem:[%s5410_s3 + $0x8] sm:$0xf]  ;;  %v3378_v29 = vld [vmem:[%s5410_s3 + $0xc] sm:$0xf] }
  0x1e   : > { %5525 = vst [vmem:[#allocation11_spill] sm:$0xff] %v3278_v9  ;;  %5526 = vst [vmem:[#allocation12_spill] sm:$0xff] %v3283_v10  ;;  %v3383_v30 = vld [vmem:[%s5410_s3 + $0x10] sm:$0xf]  ;;  %v3388_v31 = vld [vmem:[%s5410_s3 + $0x14] sm:$0xf] }
  0x1f   : > { %5527 = vst [vmem:[#allocation13_spill] sm:$0xff] %v3288_v11  ;;  %5528 = vst [vmem:[#allocation14_spill] sm:$0xff] %v3293_v12  ;;  %v3393_v32 = vld [vmem:[%s5410_s3 + $0x18] sm:$0xf]  ;;  %v3398_v33 = vld [vmem:[%s5410_s3 + $0x1c] sm:$0xf] }
  0x20   : > { %5529 = vst [vmem:[#allocation15_spill] sm:$0xff] %v3298_v13  ;;  %5530 = vst [vmem:[#allocation16_spill] sm:$0xff] %v3303_v14  ;;  %v3403_v34 = vld [vmem:[%s5410_s3 + $0x20] sm:$0xf]  ;;  %v3408_v35 = vld [vmem:[%s5410_s3 + $0x24] sm:$0x3] }
  0x21   : > { %5531 = vst [vmem:[#allocation17_spill] sm:$0xff] %v3308_v15  ;;  %5532 = vst [vmem:[#allocation18_spill] sm:$0xff] %v3313_v16  ;;  %v3413_v36 = vld [vmem:[%s5411_s4] ss:$0 sm:$0xff]  ;;  %p3417_p3 = scmp.lt.s32.totalorder %s2803_s19, 1  ;;  %vm504_vm2 = vcmask 60417  }
  0x22   : > { %5533 = vst [vmem:[#allocation19_spill] sm:$0xff] %v3318_v17  ;;  %5534 = vst [vmem:[#allocation20_spill] sm:$0xff] %v3323_v18  ;;  %vm372_vm3 = vcmask 1040384   ;;  %vm373_vm4 = vcmask 1044484   ;;  %vm507_vm6 = vcmask 57344   ;;  %s3596_s9 = smov 0  }
  0x23   : > { %5535 = vst [vmem:[#allocation21_spill] sm:$0xff] %v3328_v19  ;;  %5536 = vst [vmem:[#allocation22_spill] sm:$0xff] %v3333_v20  ;;  %s5793_s19 = smov (!%p3417_p3, %s2803_s19), 1 }
  0x24   : > { %5537 = vst [vmem:[#allocation23_spill] sm:$0xff] %v3338_v21  ;;  %5538 = vst [vmem:[#allocation24_spill] sm:$0xff] %v3343_v22  ;;  %s2949_s24 = sshll.u32 %s5793_s19, 7  ;;  %s2951_s25 = sshll.u32 %s5793_s19, 8 }
  0x25   : > { %5539 = vst [vmem:[#allocation25_spill] sm:$0xff] %v3348_v23  ;;  %5540 = vst [vmem:[#allocation26_spill] sm:$0xff] %v3353_v24  ;;  %s3468_s28 = scalar_lea.vmem %s5407_s0, %s2949_s24  ;;  %s3473_s6 = scalar_lea.vmem %s5408_s1, %s2949_s24 }
  0x26   : > { %5541 = vst [vmem:[#allocation27_spill] sm:$0xff] %v3358_v25  ;;  %5542 = vst [vmem:[#allocation28_spill] sm:$0xff] %v3363_v26  ;;  %s3478_s8 = scalar_lea.vmem %s5412_s5, %s2951_s25  ;;  %v308_v37 = vld [vmem:[%s3468_s28] sm:$0xf]  ;;  %v309_v38 = vld [vmem:[%s3468_s28 + $0x4] sm:$0xf] }
  0x27   : > { %5543 = vst [vmem:[#allocation29_spill] sm:$0xff] %v3368_v27  ;;  %5544 = vst [vmem:[#allocation30_spill] sm:$0xff] %v3373_v28  ;;  %v310_v39 = vld [vmem:[%s3468_s28 + $0x8] sm:$0xf]  ;;  %v375_v40 = vrot.slane %v308_v37, 7  ;;  %v377_v41 = vrot.slane %v309_v38, 7 }
  0x28   : > { %5545 = vst [vmem:[#allocation31_spill] sm:$0xff] %v3378_v29  ;;  %5546 = vst [vmem:[#allocation32_spill] sm:$0xff] %v3383_v30  ;;  %v380_v42 = vrot.slane %v310_v39, 7  ;;  %v311_v43 = vld [vmem:[%s3468_s28 + $0xc] sm:$0xf] }
  0x29   : > { %5547 = vst [vmem:[#allocation33_spill] sm:$0xff] %v3388_v31  ;;  %5548 = vst [vmem:[#allocation34_spill] sm:$0xff] %v3393_v32  ;;  %v382_v45 = vrot.slane %v311_v43, 7  ;;  %v312_v46 = vld [vmem:[%s3468_s28 + $0x10] sm:$0xf]  ;;  %v376_v48 = vrot.slane %v375_v40, 4 }
  0x2a   : > { %5549 = vst [vmem:[#allocation35_spill] sm:$0xff] %v3398_v33  ;;  %5550 = vst [vmem:[#allocation36_spill] sm:$0xff] %v3403_v34  ;;  %v313_v47 = vld [vmem:[%s3468_s28 + $0x14] sm:$0xf]  ;;  %v379_v49 = vrot.slane %v377_v41, 4  ;;  %v381_v50 = vrot.slane %v380_v42, 4 }
  0x2b   : > { %5551 = vst [vmem:[#allocation37_spill] sm:$0xff] %v3408_v35  ;;  %5552 = vst [vmem:[#allocation38_spill] sm:$0xff] %v3413_v36  ;;  %v385_v51 = vrot.slane %v312_v46, 7  ;;  %v314_v52 = vld [vmem:[%s3468_s28 + $0x18] sm:$0xf]  ;;  %v384_v53 = vrot.slane %v382_v45, 4 }
  0x2c   : > { %256 = vst.msk [vmem:[#allocation2 + $0x20] sm:$0x3] %vm249_vm1, %v3099_v2  ;;  %250 = vst.msk [vmem:[#allocation2 + $0x8] sm:$0x3] %vm249_vm1, %v3099_v2  ;;  %v387_v54 = vrot.slane %v313_v47, 7  ;;  %v390_v55 = vrot.slane %v314_v52, 7 }
  0x2d   : > { %253 = vst.msk [vmem:[#allocation2 + $0x14] sm:$0x3] %vm249_vm1, %v3099_v2  ;;  %259 = vst.msk [vmem:[#allocation2 + $0x2c] sm:$0x3] %vm249_vm1, %v3099_v2  ;;  %v315_v56 = vld [vmem:[%s3468_s28 + $0x1c] sm:$0xf] }
  0x2e   : > { %262 = vst.msk [vmem:[#allocation2 + $0x38] sm:$0x3] %vm249_vm1, %v3099_v2  ;;  %265 = vst.msk [vmem:[#allocation2 + $0x44] sm:$0x3] %vm249_vm1, %v3099_v2  ;;  %v386_v59 = vrot.slane %v385_v51, 4  ;;  %v392_v60 = vrot.slane %v315_v56, 7 }
  0x2f   : > { %268 = vst.msk [vmem:[#allocation2 + $0x50] sm:$0x3] %vm249_vm1, %v3099_v2  ;;  %271 = vst.msk [vmem:[#allocation2 + $0x5c] sm:$0x3] %vm249_vm1, %v3099_v2  ;;  %v316_v61 = vld [vmem:[%s3468_s28 + $0x20] sm:$0xf] }
  0x30   : > { %274 = vst.msk [vmem:[#allocation2 + $0x68] sm:$0x3] %vm249_vm1, %v3099_v2  ;;  %277 = vst.msk [vmem:[#allocation2 + $0x74] sm:$0x3] %vm249_vm1, %v3099_v2  ;;  %v317_v62 = vld [vmem:[%s3468_s28 + $0x24] sm:$0xf] }
  0x31   : > { %280 = vst.msk [vmem:[#allocation2 + $0x80] sm:$0x3] %vm249_vm1, %v3099_v2  ;;  %283 = vst.msk [vmem:[#allocation2 + $0x8c] sm:$0x3] %vm249_vm1, %v3099_v2  ;;  %v389_v63 = vrot.slane %v387_v54, 4  ;;  %v395_v37 = vrot.slane %v316_v61, 7 }
  0x32   : > { %286 = vst.msk [vmem:[#allocation2 + $0x98] sm:$0x3] %vm249_vm1, %v3099_v2  ;;  %289 = vst.msk [vmem:[#allocation2 + $0xa4] sm:$0x3] %vm249_vm1, %v3099_v2  ;;  %v397_v38 = vrot.slane %v317_v62, 7 }
  0x33   : > { %292 = vst.msk [vmem:[#allocation2 + $0xb0] sm:$0x3] %vm249_vm1, %v3099_v2  ;;  %295 = vst.msk [vmem:[#allocation2 + $0xbc] sm:$0x3] %vm249_vm1, %v3099_v2  ;;  %v318_v39 = vld [vmem:[%s3468_s28 + $0x28] sm:$0xf] }
  0x34   : > { %298 = vst.msk [vmem:[#allocation2 + $0xc8] sm:$0x3] %vm249_vm1, %v3099_v2  ;;  %301 = vst.msk [vmem:[#allocation2 + $0xd4] sm:$0x3] %vm249_vm1, %v3099_v2  ;;  %v319_v43 = vld [vmem:[%s3468_s28 + $0x2c] sm:$0xf] }
  0x35   : > { %304 = vst.msk [vmem:[#allocation2 + $0xe0] sm:$0x3] %vm249_vm1, %v3099_v2  ;;  %307 = vst.msk [vmem:[#allocation2 + $0xec] sm:$0x3] %vm249_vm1, %v3099_v2  ;;  %v391_v2 = vrot.slane %v390_v55, 4  ;;  %v396_v47 = vrot.slane %v395_v37, 4 }
  0x36   : > { %vm3484_vm5 = vmor %vm372_vm3, %vm373_vm4  ;;  %505 = vst.msk [vmem:[#allocation2 + $0x18] sm:$0xe] %vm504_vm2, %v375_v40 }
  0x37   : > { %509 = vst.msk [vmem:[#allocation2 + $0x24] sm:$0xe] %vm504_vm2, %v380_v42  ;;  %v378_v57 = vsel %vm3484_vm5, %v376_v48, %v377_v41  ;;  %v383_v58 = vsel %vm3484_vm5, %v381_v50, %v382_v45  ;;  %512 = vst.msk [vmem:[#allocation2 + $0x30] sm:$0xe] %vm504_vm2, %v385_v51  ;;  %v388_v40 = vsel %vm3484_vm5, %v386_v59, %v387_v54  ;;  %v394_v41 = vrot.slane %v392_v60, 4 }
  0x38   : > { %508 = vst.msk [vmem:[#allocation2 + $0x20] sm:$0x1] %vm507_vm6, %v379_v49  ;;  %511 = vst.msk [vmem:[#allocation2 + $0x2c] sm:$0x1] %vm507_vm6, %v384_v53  ;;  %v400_v42 = vrot.slane %v318_v39, 7  ;;  %v393_v46 = vsel %vm3484_vm5, %v391_v2, %v392_v60  ;;  %v399_v48 = vrot.slane %v397_v38, 4 }
  0x39   : > { %506 = vst.msk [vmem:[#allocation2 + $0x1c] sm:$0xf] %vm246_vm0, %v378_v57  ;;  %510 = vst.msk [vmem:[#allocation2 + $0x28] sm:$0xf] %vm246_vm0, %v383_v58  ;;  %v320_v45 = vld [vmem:[%s3468_s28 + $0x30] sm:$0xf] }
  0x3a   : > { %515 = vst.msk [vmem:[#allocation2 + $0x3c] sm:$0xe] %vm504_vm2, %v390_v55  ;;  %518 = vst.msk [vmem:[#allocation2 + $0x48] sm:$0xe] %vm504_vm2, %v395_v37  ;;  %v402_v49 = vrot.slane %v319_v43, 7  ;;  %v401_v51 = vrot.slane %v400_v42, 4  ;;  %v398_v55 = vsel %vm3484_vm5, %v396_v47, %v397_v38 }
  0x3b   : > { %513 = vst.msk [vmem:[#allocation2 + $0x34] sm:$0xf] %vm246_vm0, %v388_v40  ;;  %v321_v50 = vld [vmem:[%s3468_s28 + $0x34] sm:$0xf]  ;;  %516 = vst.msk [vmem:[#allocation2 + $0x40] sm:$0xf] %vm246_vm0, %v393_v46 }
  0x3c   : > { %514 = vst.msk [vmem:[#allocation2 + $0x38] sm:$0x1] %vm507_vm6, %v389_v63  ;;  %517 = vst.msk [vmem:[#allocation2 + $0x44] sm:$0x1] %vm507_vm6, %v394_v41  ;;  %v405_v52 = vrot.slane %v320_v45, 7  ;;  %v407_v53 = vrot.slane %v321_v50, 7  ;;  %v403_v60 = vsel %vm3484_vm5, %v401_v51, %v402_v49 }
  0x3d   : > { %521 = vst.msk [vmem:[#allocation2 + $0x54] sm:$0xe] %vm504_vm2, %v400_v42  ;;  %v322_v54 = vld [vmem:[%s3468_s28 + $0x38] sm:$0xf]  ;;  %v404_v56 = vrot.slane %v402_v49, 4 }
  0x3e   : > { %520 = vst.msk [vmem:[#allocation2 + $0x50] sm:$0x1] %vm507_vm6, %v399_v48  ;;  %v410_v57 = vrot.slane %v322_v54, 7  ;;  %v323_v58 = vld [vmem:[%s3468_s28 + $0x3c] sm:$0xf]  ;;  %v406_v61 = vrot.slane %v405_v52, 4 }
  0x3f   : > { %v324_v59 = vld [vmem:[%s3468_s28 + $0x40] sm:$0xf]  ;;  %519 = vst.msk [vmem:[#allocation2 + $0x4c] sm:$0xf] %vm246_vm0, %v398_v55  ;;  %v409_v62 = vrot.slane %v407_v53, 4  ;;  %v412_v63 = vrot.slane %v323_v58, 7 }
  0x40   : > { %524 = vst.msk [vmem:[#allocation2 + $0x60] sm:$0xe] %vm504_vm2, %v405_v52  ;;  %v325_v2 = vld [vmem:[%s3468_s28 + $0x44] sm:$0xf]  ;;  %v411_v37 = vrot.slane %v410_v57, 4  ;;  %v415_v38 = vrot.slane %v324_v59, 7  ;;  %v408_v41 = vsel %vm3484_vm5, %v406_v61, %v407_v53 }
  0x41   : > { %522 = vst.msk [vmem:[#allocation2 + $0x58] sm:$0xf] %vm246_vm0, %v403_v60  ;;  %v417_v39 = vrot.slane %v325_v2, 7  ;;  %v326_v40 = vld [vmem:[%s3468_s28 + $0x48] sm:$0xf]  ;;  %v414_v42 = vrot.slane %v412_v63, 4 }
  0x42   : > { %523 = vst.msk [vmem:[#allocation2 + $0x5c] sm:$0x1] %vm507_vm6, %v404_v56  ;;  %526 = vst.msk [vmem:[#allocation2 + $0x68] sm:$0x1] %vm507_vm6, %v409_v62  ;;  %v420_v43 = vrot.slane %v326_v40, 7  ;;  %v413_v47 = vsel %vm3484_vm5, %v411_v37, %v412_v63  ;;  %v416_v48 = vrot.slane %v415_v38, 4 }
  0x43   : > { %527 = vst.msk [vmem:[#allocation2 + $0x6c] sm:$0xe] %vm504_vm2, %v410_v57  ;;  %v327_v45 = vld [vmem:[%s3468_s28 + $0x4c] sm:$0xf]  ;;  %v328_v46 = vld [vmem:[%s3468_s28 + $0x50] sm:$0xf] }
  0x44   : > { %525 = vst.msk [vmem:[#allocation2 + $0x64] sm:$0xf] %vm246_vm0, %v408_v41  ;;  %v419_v49 = vrot.slane %v417_v39, 4  ;;  %v422_v50 = vrot.slane %v327_v45, 7  ;;  %v329_v51 = vld [vmem:[%s3468_s28 + $0x54] sm:$0xf]  ;;  %v418_v56 = vsel %vm3484_vm5, %v416_v48, %v417_v39 }
  0x45   : > { %530 = vst.msk [vmem:[#allocation2 + $0x78] sm:$0xe] %vm504_vm2, %v415_v38  ;;  %v421_v52 = vrot.slane %v420_v43, 4  ;;  %533 = vst.msk [vmem:[#allocation2 + $0x84] sm:$0xe] %vm504_vm2, %v420_v43  ;;  %v425_v53 = vrot.slane %v328_v46, 7 }
  0x46   : > { %528 = vst.msk [vmem:[#allocation2 + $0x70] sm:$0xf] %vm246_vm0, %v413_v47  ;;  %v427_v54 = vrot.slane %v329_v51, 7  ;;  %v330_v55 = vld [vmem:[%s3468_s28 + $0x58] sm:$0xf]  ;;  %v424_v57 = vrot.slane %v422_v50, 4 }
  0x47   : > { %529 = vst.msk [vmem:[#allocation2 + $0x74] sm:$0x1] %vm507_vm6, %v414_v42  ;;  %532 = vst.msk [vmem:[#allocation2 + $0x80] sm:$0x1] %vm507_vm6, %v419_v49  ;;  %v430_v58 = vrot.slane %v330_v55, 7  ;;  %v423_v61 = vsel %vm3484_vm5, %v421_v52, %v422_v50  ;;  %v426_v62 = vrot.slane %v425_v53, 4 }
  0x48   : > { %v331_v59 = vld [vmem:[%s3468_s28 + $0x5c] sm:$0xf]  ;;  %v332_v60 = vld [vmem:[%s3468_s28 + $0x60] sm:$0xf]  ;;  %531 = vst.msk [vmem:[#allocation2 + $0x7c] sm:$0xf] %vm246_vm0, %v418_v56 }
  0x49   : > { %536 = vst.msk [vmem:[#allocation2 + $0x90] sm:$0xe] %vm504_vm2, %v425_v53  ;;  %v429_v63 = vrot.slane %v427_v54, 4  ;;  %v432_v2 = vrot.slane %v331_v59, 7  ;;  %v333_v37 = vld [vmem:[%s3468_s28 + $0x64] sm:$0xf]  ;;  %v428_v42 = vsel %vm3484_vm5, %v426_v62, %v427_v54 }
  0x4a   : > { %534 = vst.msk [vmem:[#allocation2 + $0x88] sm:$0xf] %vm246_vm0, %v423_v61  ;;  %v431_v38 = vrot.slane %v430_v58, 4  ;;  %v435_v39 = vrot.slane %v332_v60, 7  ;;  %v437_v40 = vrot.slane %v333_v37, 7 }
  0x4b   : > { %535 = vst.msk [vmem:[#allocation2 + $0x8c] sm:$0x1] %vm507_vm6, %v424_v57  ;;  %v334_v41 = vld [vmem:[%s3468_s28 + $0x68] sm:$0xf]  ;;  %538 = vst.msk [vmem:[#allocation2 + $0x98] sm:$0x1] %vm507_vm6, %v429_v63 }
  0x4c   : > { %539 = vst.msk [vmem:[#allocation2 + $0x9c] sm:$0xe] %vm504_vm2, %v430_v58  ;;  %v434_v43 = vrot.slane %v432_v2, 4  ;;  %v440_v45 = vrot.slane %v334_v41, 7  ;;  %v335_v46 = vld [vmem:[%s3468_s28 + $0x6c] sm:$0xf]  ;;  %v433_v48 = vsel %vm3484_vm5, %v431_v38, %v432_v2 }
  0x4d   : > { %v336_v47 = vld [vmem:[%s3468_s28 + $0x70] sm:$0xf]  ;;  %537 = vst.msk [vmem:[#allocation2 + $0x94] sm:$0xf] %vm246_vm0, %v428_v42  ;;  %v436_v49 = vrot.slane %v435_v39, 4  ;;  %v439_v50 = vrot.slane %v437_v40, 4 }
  0x4e   : > { %542 = vst.msk [vmem:[#allocation2 + $0xa8] sm:$0xe] %vm504_vm2, %v435_v39  ;;  %v442_v51 = vrot.slane %v335_v46, 7  ;;  %v337_v52 = vld [vmem:[%s3468_s28 + $0x74] sm:$0xf]  ;;  %v441_v53 = vrot.slane %v440_v45, 4 }
  0x4f   : > { %540 = vst.msk [vmem:[#allocation2 + $0xa0] sm:$0xf] %vm246_vm0, %v433_v48  ;;  %v445_v54 = vrot.slane %v336_v47, 7  ;;  %v447_v55 = vrot.slane %v337_v52, 7  ;;  %v338_v56 = vld [vmem:[%s3468_s28 + $0x78] sm:$0xf]  ;;  %v438_v57 = vsel %vm3484_vm5, %v436_v49, %v437_v40 }
  0x50   : > { %541 = vst.msk [vmem:[#allocation2 + $0xa4] sm:$0x1] %vm507_vm6, %v434_v43  ;;  %544 = vst.msk [vmem:[#allocation2 + $0xb0] sm:$0x1] %vm507_vm6, %v439_v50  ;;  %v444_v58 = vrot.slane %v442_v51, 4  ;;  %v450_v59 = vrot.slane %v338_v56, 7  ;;  %v443_v61 = vsel %vm3484_vm5, %v441_v53, %v442_v51 }
  0x51   : > { %545 = vst.msk [vmem:[#allocation2 + $0xb4] sm:$0xe] %vm504_vm2, %v440_v45  ;;  %v339_v60 = vld [vmem:[%s3468_s28 + $0x7c] sm:$0xf]  ;;  %v446_v62 = vrot.slane %v445_v54, 4  ;;  %v449_v63 = vrot.slane %v447_v55, 4 }
  0x52   : > { %543 = vst.msk [vmem:[#allocation2 + $0xac] sm:$0xf] %vm246_vm0, %v438_v57  ;;  %v452_v2 = vrot.slane %v339_v60, 7  ;;  %546 = vst.msk [vmem:[#allocation2 + $0xb8] sm:$0xf] %vm246_vm0, %v443_v61  ;;  %v451_v37 = vrot.slane %v450_v59, 4 }
  0x53   : > { %548 = vst.msk [vmem:[#allocation2 + $0xc0] sm:$0xe] %vm504_vm2, %v445_v54  ;;  %551 = vst.msk [vmem:[#allocation2 + $0xcc] sm:$0xe] %vm504_vm2, %v450_v59  ;;  %v448_v38 = vsel %vm3484_vm5, %v446_v62, %v447_v55 }
  0x54   : > { %547 = vst.msk [vmem:[#allocation2 + $0xbc] sm:$0x1] %vm507_vm6, %v444_v58  ;;  %550 = vst.msk [vmem:[#allocation2 + $0xc8] sm:$0x1] %vm507_vm6, %v449_v63  ;;  %v454_v39 = vrot.slane %v452_v2, 4  ;;  %v453_v40 = vsel %vm3484_vm5, %v451_v37, %v452_v2 }
  0x55   : > { %549 = vst.msk [vmem:[#allocation2 + $0xc4] sm:$0xf] %vm246_vm0, %v448_v38  ;;  %552 = vst.msk [vmem:[#allocation2 + $0xd0] sm:$0xf] %vm246_vm0, %v453_v40 }
  0x56   : > { %553 = vst.msk [vmem:[#allocation2 + $0xd4] sm:$0x1] %vm507_vm6, %v454_v39 }
  0x57 LB: >> { %vm855_vm7 = vcmask 1042432   ;;  %vm856_vm8 = vcmask 1046532   ;;  %s2952_s10 = smul.u32 96, %s3097_s9  ;;  %v5556_v41 = vmov 0  ;;  %vm636_vm10 = vsmask.f32 3328  ;;  %s3097_s9 = sphi %s3596_s9, %s595_s9  }
  0x58   : >> { %vm3602_vm9 = vmor %vm855_vm7, %vm856_vm8  ;;  %vm637_vm11 = vsmask.f32 7440  ;;  %s3100_s12 = smov 16   ;;  %s3101_s13 = smov 8   ;;  %vm914_vm13 = vsmask.f32 2304 }
  0x59   : >> { %v5557_v41 = vsel %vm3602_vm9, 4294967295, %v5556_v41  ;;  %s3606_s11 = scalar_lea.vmem [#allocation2], %s2952_s10  ;;  %vm3676_vm12 = vmor %vm636_vm10, %vm637_vm11  ;;  %vm915_vm14 = vsmask.f32 6416  ;;  %vm1037_vm0 = vcmask 1041408   ;;  %vm1038_vm1 = vcmask 1045508  }
  0x5a   : >> { %5558 = vst [vmem:[#allocation39_spill] sm:$0xff] %v5557_v41  ;;  %vm3961_vm15 = vmor %vm914_vm13, %vm915_vm14  ;;  %s3102_s14 = smov 24   ;;  %s3103_s15 = smov 40   ;;  %v5628_v1 = vld [vmem:[#allocation4_spill] sm:$0xff]  ;;  %v5629_v0 = vld [vmem:[#allocation3_spill] sm:$0xff]  ;;  %vm2388_vm3 = vcmask 1044480  }
  0x5b   : >> { %vm4024_vm2 = vmor %vm1037_vm0, %vm1038_vm1  ;;  %s3104_s16 = smov 32   ;;  %s3105_s17 = smov 56   ;;  %v5630_v4 = vld [vmem:[#allocation6_spill] sm:$0xff]  ;;  %v5631_v3 = vld [vmem:[#allocation5_spill] sm:$0xff]  ;;  %vm2389_vm4 = vcmask 1045504   ;;  %vm5505_vm5 = vcmask 613376  }
  0x5c   : >> { %s3106_s20 = smov 48   ;;  %s3107_s21 = smov 64   ;;  %v5632_v6 = vld [vmem:[#allocation8_spill] sm:$0xff]  ;;  %v5633_v5 = vld [vmem:[#allocation7_spill] sm:$0xff]  ;;  %v5634_v8 = vld [vmem:[#allocation10_spill] sm:$0xff]  ;;  %vm2583_vm6 = vcmask 1043456  }
  0x5d   : >> { %v3609_v44 = vld [vmem:[%s3606_s11 + $0xc] sm:$0xf]  ;;  %v3612_v42 = vld [vmem:[%s3606_s11 + $0x10] sm:$0xf]  ;;  %v3615_v43 = vld [vmem:[%s3606_s11 + $0x14] sm:$0x3] }
  0x5e   : >> { %v2818_v45 = vrot.slane %v3609_v44, 9  ;;  %v867_v46 = vrot.slane %v3612_v42, 5  ;;  %v870_v47 = vrot.slane %v3615_v43, 5  ;;  %v3621_v48 = vld [vmem:[%s3606_s11] sm:$0xf]  ;;  %s3108_s22 = smov 72  }
  0x5f   : >> { %v3625_v50 = vld [vmem:[%s3606_s11 + $0x4] sm:$0xf]  ;;  %v3628_v51 = vld [vmem:[%s3606_s11 + $0x8] sm:$0x3]  ;;  %v2817_v52 = vrot.slane %v3621_v48, 9  ;;  %v5417_v53 = vshrl.u32 %v3621_v48, 16 }
  0x60   : >> { %v868_v54 = vsel %vm3602_vm9, %v2818_v45, %v867_v46  ;;  %v869_v55 = vrot.slane %v867_v46, 4  ;;  %v860_v56 = vrot.slane %v3625_v50, 5  ;;  %v863_v57 = vrot.slane %v3628_v51, 5  ;;  %v3637_v58 = vld [vmem:[%s3606_s11 + $0x18] sm:$0xf]  ;;  %s3109_s23 = smov 80  }
  0x61   : >> { %v3640_v59 = vld [vmem:[%s3606_s11 + $0x1c] sm:$0xf]  ;;  %v3643_v60 = vld [vmem:[%s3606_s11 + $0x20] sm:$0x3]  ;;  %v5415_v61 = vshrl.u32 %v3637_v58, 16  ;;  %v5414_v62 = vshll.u32 %v3637_v58, 16 }
  0x62   : >> { %v871_v63 = vsel %vm3602_vm9, %v869_v55, %v870_v47  ;;  %v861_v2 = vsel %vm3602_vm9, %v2817_v52, %v860_v56  ;;  %v862_v37 = vrot.slane %v860_v56, 4  ;;  %v5413_v38 = vshll.u32 %v3640_v59, 16  ;;  %v3667_v55 = vld [vmem:[%s3606_s11 + $0x24] sm:$0xf]  ;;  %v3699_v23 = vld [vmem:[%s3606_s11 + $0x2c] sm:$0x3] }
  0x63   : >> { %v3652_v39 = vcombine.low %v868_v54, %v871_v63  ;;  %v690_v40 = vrot.slane %v5415_v61, 4  ;;  %v693_v45 = vrot.slane %v5414_v62, 5  ;;  %v5416_v46 = vshrl.u32 %v3640_v59, 16  ;;  %v3760_v20 = vld [vmem:[%s3606_s11 + $0x30] sm:$0xf]  ;;  %s3110_s24 = smov 88  }
  0x64   : >> { %v864_v49 = vsel %vm3602_vm9, %v862_v37, %v863_v57  ;;  %v699_v47 = vrot.slane %v5413_v38, 5  ;;  %v5419_v52 = vshll.u32 %v3643_v60, 16  ;;  %v642_v54 = vrot.slane %v5417_v53, 4  ;;  %v3689_v53 = vld [vmem:[%s3606_s11 + $0x28] sm:$0xf]  ;;  %s2954_s25 = sshll.u32 %s3097_s9, 6 }
  0x65   : >> { %5559 = vst [vmem:[#allocation40_spill] sm:$0xff] %v3652_v39  ;;  %1410 = vrot.lane.b32.xlu1 %v3652_v39, %s3100_s12  ;;  %v2857_v56 = vcombine.low %v861_v2, %v864_v49  ;;  %v694_v63 = vor.u32 %v693_v45, %v690_v40  ;;  %v703_v57 = vrot.slane %v5416_v46, 4  ;;  %v5421_v37 = vshll.u32 %v3621_v48, 16  ;;  %v3799_v15 = vld [vmem:[%s3606_s11 + $0x58] sm:$0xf]  ;;  %s4202_s26 = scalar_lea.vmem %s3473_s6, %s2954_s25  ;;  %s3112_s27 = smov 96  }
  0x66   : >> { %v5560_v38 = vmov 0  ;;  %v709_v62 = vrot.slane %v5419_v52, 5  ;;  %v5422_v61 = vshll.u32 %v3625_v50, 16  ;;  %v5423_v49 = vshrl.u32 %v3625_v50, 16  ;;  %v3823_v14 = vld [vmem:[%s3606_s11 + $0x48] sm:$0xf] }
  0x67   : >> { %v5561_v38 = vsel %vm3676_vm12, 4294967295, %v5560_v38  ;;  %v5424_v2 = vshll.u32 %v3628_v51, 16  ;;  %1408 = vrot.lane.b32.xlu0 %v2857_v56, %s3100_s12  ;;  %v695_v40 = vrot.slane %v694_v63, 4  ;;  %v704_v45 = vor.u32 %v703_v57, %v699_v47  ;;  %v3832_v35 = vld [vmem:[%s3606_s11 + $0x4c] sm:$0xf]  ;;  %s3113_s28 = smov 104  }
  0x68   : >> { %5562 = vst [vmem:[#allocation41_spill] sm:$0xff] %v5561_v38  ;;  %v645_v46 = vrot.slane %v5421_v37, 5  ;;  %v5426_v36 = vshrl.u32 %v3667_v55, 16  ;;  %v651_v52 = vrot.slane %v5422_v61, 5  ;;  %v655_v39 = vrot.slane %v5423_v49, 4  ;;  %v5635_v7 = vld [vmem:[#allocation9_spill] sm:$0xff] }
  0x69   : >> { %v661_v25 = vrot.slane %v5424_v2, 5  ;;  %v5425_v56 = vshll.u32 %v3667_v55, 16  ;;  %v700_v63 = vsel %vm3676_vm12, %v695_v40, %v699_v47  ;;  %v705_v57 = vrot.slane %v704_v45, 4  ;;  %v5636_v27 = vld [vmem:[#allocation29_spill] sm:$0xff]  ;;  %v5637_v26 = vld [vmem:[#allocation28_spill] sm:$0xff]  ;;  %v5639_v9 = vld [vmem:[#allocation11_spill] sm:$0xff] }
  0x6a   : >> { %v646_v37 = vor.u32 %v645_v46, %v642_v54  ;;  %v714_v24 = vrot.slane %v5426_v36, 4  ;;  %v656_v21 = vor.u32 %v655_v39, %v651_v52  ;;  %v5428_v49 = vshll.u32 %v3689_v53, 16  ;;  %v5638_v10 = vld [vmem:[#allocation12_spill] sm:$0xff]  ;;  %v5640_v29 = vld [vmem:[#allocation31_spill] sm:$0xff]  ;;  %v5641_v28 = vld [vmem:[#allocation30_spill] sm:$0xff]  ;;  %s3114_s29 = smov 112  }
  0x6b   : >> { %v717_v61 = vrot.slane %v5425_v56, 5  ;;  %v5429_v2 = vshrl.u32 %v3689_v53, 16  ;;  %v710_v22 = vsel %vm3676_vm12, %v705_v57, %v709_v62  ;;  %v5427_v47 = vshll.u32 %v3699_v23, 16  ;;  %s3116_s30 = smov 120   ;;  %s2955_s19 = sshll.u32 %s3097_s9, 7 }
  0x6c   : >> { %v647_v19 = vrot.slane %v646_v37, 4  ;;  %v5563_v46 = vshrl.u32 %v3609_v44, 16  ;;  %v3715_v40 = vcombine.low %v700_v63, %v710_v22  ;;  %v657_v39 = vrot.slane %v656_v21, 4  ;;  %v3727_v22 = vld [vmem:[%s3606_s11 + $0x3c] sm:$0xf]  ;;  %s5289_s7 = scalar_lea.vmem %s3478_s8, %s2955_s19  ;;  %s595_s9 = sadd.s32 1, %s3097_s9  }
  0x6d   : >> { %v718_v45 = vor.u32 %v717_v61, %v714_v24  ;;  %v723_v56 = vrot.slane %v5428_v49, 5  ;;  %v727_v62 = vrot.slane %v5429_v2, 4  ;;  %v733_v37 = vrot.slane %v5427_v47, 5  ;;  %v3739_v49 = vld [vmem:[%s3606_s11 + $0x40] sm:$0xf]  ;;  %p592_p4 = scmp.ge.s32.totalorder %s595_s9, 2  }
  0x6e   : >> { %v666_v54 = vrot.slane %v5563_v46, 4  ;;  %5564 = vst [vmem:[#allocation42_spill] sm:$0xff] %v3715_v40  ;;  %v652_v36 = vsel %vm3676_vm12, %v647_v19, %v651_v52  ;;  %v5430_v57 = vshll.u32 %v3609_v44, 16  ;;  %1372 = vrot.lane.b32.xlu1 %v3715_v40, %s3101_s13  ;;  %v662_v21 = vsel %vm3676_vm12, %v657_v39, %v661_v25 }
  0x6f   : >> { %v719_v24 = vrot.slane %v718_v45, 4  ;;  %v5431_v19 = vshll.u32 %v3612_v42, 16  ;;  %v5432_v61 = vshrl.u32 %v3612_v42, 16  ;;  %v2849_v52 = vcombine.low %v652_v36, %v662_v21  ;;  %v3748_v45 = vld [vmem:[%s3606_s11 + $0x44] sm:$0x3] }
  0x70   : >> { %v728_v63 = vor.u32 %v727_v62, %v723_v56  ;;  %v669_v46 = vrot.slane %v5430_v57, 5  ;;  %v5436_v47 = vshll.u32 %v3615_v43, 16  ;;  %v5435_v36 = vshrl.u32 %v3727_v22, 16 }
  0x71   : >> { %v724_v2 = vsel %vm3676_vm12, %v719_v24, %v723_v56  ;;  %v675_v25 = vrot.slane %v5431_v19, 5  ;;  %v679_v39 = vrot.slane %v5432_v61, 4  ;;  %1368 = vrot.lane.b32.xlu0 %v2849_v52, %s3101_s13  ;;  %v5437_v56 = vshll.u32 %v3727_v22, 16 }
  0x72   : >> { %v729_v62 = vrot.slane %v728_v63, 4  ;;  %v670_v21 = vor.u32 %v669_v46, %v666_v54  ;;  %v685_v57 = vrot.slane %v5436_v47, 5  ;;  %v762_v19 = vrot.slane %v5435_v36, 4 }
  0x73   : >> { %v680_v24 = vor.u32 %v679_v39, %v675_v25  ;;  %v5439_v61 = vshll.u32 %v3739_v49, 16  ;;  %v765_v63 = vrot.slane %v5437_v56, 5  ;;  %v5438_v46 = vshll.u32 %v3748_v45, 16  ;;  %v3768_v39 = vld [vmem:[%s3606_s11 + $0x34] sm:$0xf] }
  0x74   : >> { %v734_v52 = vsel %vm3676_vm12, %v729_v62, %v733_v37  ;;  %v671_v54 = vrot.slane %v670_v21, 4  ;;  %v5566_v17 = vshrl.u32 %v3739_v49, 16  ;;  %v3781_v56 = vld [vmem:[%s3606_s11 + $0x38] sm:$0x3]  ;;  %v5453_v32 = vshll.u32 %v3832_v35, 16 }
  0x75   : >> { %v3770_v36 = vcombine.low %v724_v2, %v734_v52  ;;  %v681_v47 = vrot.slane %v680_v24, 4  ;;  %v771_v40 = vrot.slane %v5439_v61, 5  ;;  %v766_v62 = vor.u32 %v765_v63, %v762_v19  ;;  %v3791_v19 = vld [vmem:[%s3606_s11 + $0x54] sm:$0xf] }
  0x76   : >> { %v775_v18 = vrot.slane %v5566_v17, 4  ;;  %v676_v37 = vsel %vm3676_vm12, %v671_v54, %v675_v25  ;;  %v781_v21 = vrot.slane %v5438_v46, 5  ;;  %v5442_v2 = vshrl.u32 %v3760_v20, 16 }
  0x77   : >> { %5565 = vst [vmem:[#allocation43_spill] sm:$0xff] %v3770_v36  ;;  %1374 = vrot.lane.b32.xlu1 %v3770_v36, %s3101_s13  ;;  %v686_v24 = vsel %vm3676_vm12, %v681_v47, %v685_v57  ;;  %v5440_v17 = vshll.u32 %v3760_v20, 16  ;;  %v5441_v25 = vshll.u32 %v3768_v39, 16  ;;  %v767_v63 = vrot.slane %v766_v62, 4 }
  0x78   : >> { %v776_v52 = vor.u32 %v775_v18, %v771_v40  ;;  %v3793_v54 = vcombine.low %v676_v37, %v686_v24  ;;  %v738_v46 = vrot.slane %v5442_v2, 4  ;;  %v5444_v61 = vshrl.u32 %v3768_v39, 16  ;;  %v3813_v24 = vld [vmem:[%s3606_s11 + $0x5c] sm:$0x3] }
  0x79   : >> { %v741_v18 = vrot.slane %v5440_v17, 5  ;;  %v747_v57 = vrot.slane %v5441_v25, 5  ;;  %v5448_v16 = vshll.u32 %v3781_v56, 16  ;;  %v772_v37 = vsel %vm3676_vm12, %v767_v63, %v771_v40 }
  0x7a   : >> { %5567 = vst [vmem:[#allocation44_spill] sm:$0xff] %v3793_v54  ;;  %v777_v47 = vrot.slane %v776_v52, 4  ;;  %1370 = vrot.lane.b32.xlu0 %v3793_v54, %s3101_s13  ;;  %v751_v62 = vrot.slane %v5444_v61, 4  ;;  %v5445_v52 = vshrl.u32 %v3791_v19, 16  ;;  %v5446_v17 = vshll.u32 %v3791_v19, 16 }
  0x7b   : >> { %v742_v2 = vor.u32 %v741_v18, %v738_v46  ;;  %v757_v13 = vrot.slane %v5448_v16, 5  ;;  %v5447_v54 = vshll.u32 %v3799_v15, 16  ;;  %v5450_v18 = vshll.u32 %v3813_v24, 16  ;;  %v3849_v16 = vld [vmem:[%s3606_s11 + $0x50] sm:$0x3] }
  0x7c   : >> { %v782_v25 = vsel %vm3676_vm12, %v777_v47, %v781_v21  ;;  %v752_v63 = vor.u32 %v751_v62, %v747_v57  ;;  %v810_v61 = vrot.slane %v5445_v52, 4  ;;  %v813_v34 = vrot.slane %v5446_v17, 5 }
  0x7d   : >> { %v3825_v40 = vcombine.low %v772_v37, %v782_v25  ;;  %v743_v46 = vrot.slane %v742_v2, 4  ;;  %v819_v21 = vrot.slane %v5447_v54, 5  ;;  %v5449_v47 = vshrl.u32 %v3799_v15, 16 }
  0x7e   : >> { %v753_v25 = vrot.slane %v752_v63, 4  ;;  %v814_v37 = vor.u32 %v813_v34, %v810_v61  ;;  %v5456_v62 = vshrl.u32 %v3823_v14, 16  ;;  %v5454_v52 = vshll.u32 %v3823_v14, 16 }
  0x7f   : >> { %5568 = vst [vmem:[#allocation45_spill] sm:$0xff] %v3825_v40  ;;  %1378 = vrot.lane.b32.xlu1 %v3825_v40, %s3101_s13  ;;  %v748_v17 = vsel %vm3676_vm12, %v743_v46, %v747_v57  ;;  %v823_v2 = vrot.slane %v5449_v47, 4  ;;  %v829_v54 = vrot.slane %v5450_v18, 5  ;;  %v795_v18 = vrot.slane %v5453_v32, 5 }
  0x80   : >> { %v758_v34 = vsel %vm3676_vm12, %v753_v25, %v757_v13  ;;  %v815_v61 = vrot.slane %v814_v37, 4  ;;  %v786_v63 = vrot.slane %v5456_v62, 4  ;;  %v789_v57 = vrot.slane %v5454_v52, 5 }
  0x81   : >> { %v3858_v46 = vcombine.low %v748_v17, %v758_v34  ;;  %v824_v47 = vor.u32 %v823_v2, %v819_v21  ;;  %v5455_v40 = vshrl.u32 %v3832_v35, 16  ;;  %v5457_v13 = vshll.u32 %v3849_v16, 16 }
  0x82   : >> { %v820_v33 = vsel %vm3676_vm12, %v815_v61, %v819_v21  ;;  %v790_v11 = vor.u32 %v789_v57, %v786_v63  ;;  %v2820_v25 = vrot.slane %v3667_v55, 9  ;;  %v881_v2 = vrot.slane %v3689_v53, 5 }
  0x83   : >> { %5569 = vst [vmem:[#allocation46_spill] sm:$0xff] %v3858_v46  ;;  %1376 = vrot.lane.b32.xlu0 %v3858_v46, %s3101_s13  ;;  %v825_v37 = vrot.slane %v824_v47, 4  ;;  %v799_v17 = vrot.slane %v5455_v40, 4  ;;  %v884_v34 = vrot.slane %v3699_v23, 5  ;;  %v805_v21 = vrot.slane %v5457_v13, 5 }
  0x84   : >> { %v791_v32 = vrot.slane %v790_v11, 4  ;;  %v2819_v61 = vrot.slane %v3637_v58, 9  ;;  %v874_v63 = vrot.slane %v3640_v59, 5  ;;  %v882_v47 = vsel %vm3602_vm9, %v2820_v25, %v881_v2 }
  0x85   : >> { %v830_v57 = vsel %vm3676_vm12, %v825_v37, %v829_v54  ;;  %v800_v52 = vor.u32 %v799_v17, %v795_v18  ;;  %v883_v40 = vrot.slane %v881_v2, 4  ;;  %v877_v54 = vrot.slane %v3643_v60, 5 }
  0x86   : >> { %v3881_v62 = vcombine.low %v820_v33, %v830_v57  ;;  %v796_v11 = vsel %vm3676_vm12, %v791_v32, %v795_v18  ;;  %v875_v13 = vsel %vm3602_vm9, %v2819_v61, %v874_v63  ;;  %v876_v12 = vrot.slane %v874_v63, 4 }
  0x87   : >> { %v801_v30 = vrot.slane %v800_v52, 4  ;;  %v885_v31 = vsel %vm3602_vm9, %v883_v40, %v884_v34  ;;  %v2822_v37 = vrot.slane %v3727_v22, 9  ;;  %v895_v32 = vrot.slane %v3739_v49, 5 }
  0x88   : >> { %5570 = vst [vmem:[#allocation47_spill] sm:$0xff] %v3881_v62  ;;  %1382 = vrot.lane.b32.xlu1 %v3881_v62, %s3101_s13  ;;  %v3893_v33 = vcombine.low %v882_v47, %v885_v31  ;;  %v898_v18 = vrot.slane %v3748_v45, 5  ;;  %v2821_v52 = vrot.slane %v3760_v20, 9  ;;  %v878_v25 = vsel %vm3602_vm9, %v876_v12, %v877_v54 }
  0x89   : >> { %v806_v40 = vsel %vm3676_vm12, %v801_v30, %v805_v21  ;;  %v888_v17 = vrot.slane %v3768_v39, 5  ;;  %v891_v2 = vrot.slane %v3781_v56, 5  ;;  %v3906_v31 = vcombine.low %v875_v13, %v878_v25 }
  0x8a   : >> { %v3904_v34 = vcombine.low %v796_v11, %v806_v40  ;;  %v896_v61 = vsel %vm3602_vm9, %v2822_v37, %v895_v32  ;;  %v897_v63 = vrot.slane %v895_v32, 4  ;;  %v2824_v30 = vrot.slane %v3791_v19, 9 }
  0x8b   : >> { %5571 = vst [vmem:[#allocation48_spill] sm:$0xff] %v3906_v31  ;;  %v889_v57 = vsel %vm3602_vm9, %v2821_v52, %v888_v17  ;;  %v890_v47 = vrot.slane %v888_v17, 4  ;;  %v909_v12 = vrot.slane %v3799_v15, 5  ;;  %v912_v21 = vrot.slane %v3813_v24, 5 }
  0x8c   : >> { %1380 = vrot.lane.b32.xlu0 %v3904_v34, %s3101_s13  ;;  %1414 = vrot.lane.b32.xlu1 %v3893_v33, %s3100_s12  ;;  %v899_v13 = vsel %vm3602_vm9, %v897_v63, %v898_v18  ;;  %v2823_v11 = vrot.slane %v3823_v14, 9  ;;  %v902_v54 = vrot.slane %v3832_v35, 5  ;;  %v905_v63 = vrot.slane %v3849_v16, 5 }
  0x8d   : >> { %v3923_v37 = vcombine.low %v896_v61, %v899_v13  ;;  %v892_v32 = vsel %vm3602_vm9, %v890_v47, %v891_v2  ;;  %v910_v52 = vsel %vm3602_vm9, %v2824_v30, %v909_v12  ;;  %v911_v40 = vrot.slane %v909_v12, 4 }
  0x8e   : >> { %v3929_v25 = vcombine.low %v889_v57, %v892_v32  ;;  %v903_v18 = vsel %vm3602_vm9, %v2823_v11, %v902_v54  ;;  %v904_v17 = vrot.slane %v902_v54, 4  ;;  %v5574_v61 = vshrl.u32 %v3609_v44, 16 }
  0x8f   : >> { %5572 = vst [vmem:[#allocation49_spill] sm:$0xff] %v3923_v37  ;;  %v913_v38 = vsel %vm3602_vm9, %v911_v40, %v912_v21  ;;  %v5575_v2 = vshll.u32 %v3609_v44, 16  ;;  %v5576_v30 = vshrl.u32 %v3612_v42, 16  ;;  %v5578_v11 = vshll.u32 %v3612_v42, 16 }
  0x90   : >> { %5573 = vst [vmem:[#allocation50_spill] sm:$0xff] %v3929_v25  ;;  %v932_v13 = vrot.slane %v5574_v61, 5  ;;  %1412 = vrot.lane.b32.xlu0 %v3906_v31, %s3100_s12  ;;  %1418 = vrot.lane.b32.xlu1 %v3923_v37, %s3100_s12  ;;  %v3946_v57 = vcombine.low %v910_v52, %v913_v38  ;;  %v906_v21 = vsel %vm3602_vm9, %v904_v17, %v905_v63  ;;  %v941_v44 = vshrl.u32 %v3615_v43, 16 }
  0x91   : >> { %v933_v47 = vrot.slane %v5575_v2, 6  ;;  %v936_v12 = vrot.slane %v5576_v30, 5  ;;  %v937_v54 = vrot.slane %v5578_v11, 6  ;;  %v3953_v32 = vcombine.low %v903_v18, %v906_v21 }
  0x92   : >> { %5577 = vst [vmem:[#allocation51_spill] sm:$0xff] %v3946_v57  ;;  %v5579_v61 = vshll.u32 %v3615_v43, 16  ;;  %v5580_v30 = vshrl.u32 %v3621_v48, 16  ;;  %v943_v42 = vrot.slane %v941_v44, 5  ;;  %v5583_v17 = vshll.u32 %v3621_v48, 16 }
  0x93   : >> { %v934_v40 = vor.u32 %v933_v47, %v932_v13  ;;  %v938_v52 = vor.u32 %v937_v54, %v936_v12  ;;  %v5584_v18 = vshrl.u32 %v3625_v50, 16  ;;  %v5585_v47 = vshll.u32 %v3625_v50, 16 }
  0x94   : >> { %v944_v2 = vrot.slane %v5579_v61, 6  ;;  %v917_v31 = vrot.slane %v5580_v30, 5  ;;  %v918_v63 = vrot.slane %v5583_v17, 6  ;;  %v926_v11 = vshrl.u32 %v3628_v51, 16  ;;  %1416 = vrot.lane.b32.xlu0 %v3929_v25, %s3100_s12  ;;  %1422 = vrot.lane.b32.xlu1 %v3946_v57, %s3100_s12 }
  0x95   : >> { %v921_v13 = vrot.slane %v5584_v18, 5  ;;  %v935_v43 = vrot.slane %v934_v40, 4  ;;  %v922_v21 = vrot.slane %v5585_v47, 6  ;;  %v5586_v61 = vshll.u32 %v3628_v51, 16 }
  0x96   : >> { %v940_v48 = vrot.slane %v938_v52, 4  ;;  %v945_v12 = vor.u32 %v944_v2, %v943_v42  ;;  %v919_v54 = vor.u32 %v918_v63, %v917_v31  ;;  %v5587_v44 = vshrl.u32 %v3667_v55, 16 }
  0x97   : >> { %v929_v30 = vrot.slane %v5586_v61, 6  ;;  %v939_v50 = vsel %vm3961_vm15, %v935_v43, %v938_v52  ;;  %v923_v17 = vor.u32 %v922_v21, %v921_v13  ;;  %v928_v18 = vrot.slane %v926_v11, 5 }
  0x98   : >> { %v962_v40 = vrot.slane %v5587_v44, 5  ;;  %v5588_v51 = vshll.u32 %v3667_v55, 16  ;;  %v946_v61 = vsel %vm3961_vm15, %v940_v48, %v945_v12  ;;  %v920_v41 = vrot.slane %v919_v54, 4  ;;  %1420 = vrot.lane.b32.xlu0 %v3953_v32, %s3100_s12 }
  0x99   : >> { %v5589_v57 = vshrl.u32 %v3689_v53, 16  ;;  %v5590_v31 = vshll.u32 %v3689_v53, 16  ;;  %v3990_v42 = vcombine.low %v939_v50, %v946_v61  ;;  %v925_v63 = vrot.slane %v923_v17, 4 }
  0x9a   : >> { %v963_v47 = vrot.slane %v5588_v51, 6  ;;  %v930_v44 = vor.u32 %v929_v30, %v928_v18  ;;  %v924_v13 = vsel %vm3961_vm15, %v920_v41, %v923_v17  ;;  %v971_v21 = vshrl.u32 %v3699_v23, 16 }
  0x9b   : >> { %v966_v62 = vrot.slane %v5589_v57, 5  ;;  %v967_v2 = vrot.slane %v5590_v31, 6  ;;  %v5591_v11 = vshll.u32 %v3699_v23, 16  ;;  %1450 = vrot.lane.b32.xlu1 %v3990_v42, %s3102_s14  ;;  %v5592_v12 = vshrl.u32 %v3637_v58, 16 }
  0x9c   : >> { %v964_v52 = vor.u32 %v963_v47, %v962_v40  ;;  %v931_v30 = vsel %vm3961_vm15, %v925_v63, %v930_v44  ;;  %v5593_v40 = vshll.u32 %v3637_v58, 16  ;;  %v973_v17 = vrot.slane %v971_v21, 5 }
  0x9d   : >> { %v968_v43 = vor.u32 %v967_v2, %v966_v62  ;;  %v974_v57 = vrot.slane %v5591_v11, 6  ;;  %v947_v54 = vrot.slane %v5592_v12, 5  ;;  %v2865_v62 = vcombine.low %v924_v13, %v931_v30 }
  0x9e   : >> { %v965_v48 = vrot.slane %v964_v52, 4  ;;  %v948_v41 = vrot.slane %v5593_v40, 6  ;;  %v5594_v18 = vshrl.u32 %v3640_v59, 16  ;;  %v5595_v31 = vshll.u32 %v3640_v59, 16 }
  0x9f   : >> { %v970_v50 = vrot.slane %v968_v43, 4  ;;  %v956_v63 = vshrl.u32 %v3643_v60, 16  ;;  %1448 = vrot.lane.b32.xlu0 %v2865_v62, %s3102_s14  ;;  %v975_v44 = vor.u32 %v974_v57, %v973_v17  ;;  %v5596_v52 = vshll.u32 %v3643_v60, 16 }
  0xa0   : >> { %v951_v51 = vrot.slane %v5594_v18, 5  ;;  %v969_v47 = vsel %vm3961_vm15, %v965_v48, %v968_v43  ;;  %v949_v61 = vor.u32 %v948_v41, %v947_v54  ;;  %v952_v2 = vrot.slane %v5595_v31, 6 }
  0xa1   : >> { %v959_v13 = vrot.slane %v5596_v52, 6  ;;  %v4019_v21 = vcombine.low %v3667_v55, %v3689_v53  ;;  %v2827_v11 = vrot.slane %v3637_v58, 10  ;;  %v958_v48 = vrot.slane %v956_v63, 5 }
  0xa2   : >> { %v950_v30 = vrot.slane %v949_v61, 4  ;;  %v953_v43 = vor.u32 %v952_v2, %v951_v51  ;;  %v1056_v57 = vrot.slane %v3640_v59, 6  ;;  %v976_v54 = vsel %vm3961_vm15, %v970_v50, %v975_v44 }
  0xa3   : >> { %v1059_v40 = vrot.slane %v3643_v60, 6  ;;  %v2828_v41 = vrot.slane %v3667_v55, 10  ;;  %v1063_v58 = vrot.slane %v3689_v53, 6  ;;  %v4034_v62 = vcombine.low %v969_v47, %v976_v54 }
  0xa4   : >> { %v954_v17 = vsel %vm3961_vm15, %v950_v30, %v953_v43  ;;  %v955_v18 = vrot.slane %v953_v43, 4  ;;  %v960_v51 = vor.u32 %v959_v13, %v958_v48  ;;  %v1057_v61 = vsel %vm4024_vm2, %v2827_v11, %v1056_v57 }
  0xa5   : >> { %v1058_v59 = vrot.slane %v1056_v57, 4  ;;  %v1064_v50 = vsel %vm4024_vm2, %v2828_v41, %v1063_v58  ;;  %v1065_v31 = vrot.slane %v1063_v58, 4  ;;  %1454 = vrot.lane.b32.xlu1 %v4034_v62, %s3102_s14  ;;  %v1066_v60 = vrot.slane %v3699_v23, 6 }
  0xa6   : >> { %v961_v53 = vsel %vm3961_vm15, %v955_v18, %v960_v51  ;;  %v5599_v55 = vshrl.u32 %v3727_v22, 16  ;;  %v5600_v2 = vshll.u32 %v3727_v22, 16  ;;  %v5602_v13 = vshrl.u32 %v3739_v49, 16 }
  0xa7   : >> { %v4051_v44 = vcombine.low %v954_v17, %v961_v53  ;;  %v1060_v52 = vsel %vm4024_vm2, %v1058_v59, %v1059_v40  ;;  %v5603_v30 = vshll.u32 %v3739_v49, 16  ;;  %v1067_v23 = vsel %vm4024_vm2, %v1065_v31, %v1066_v60 }
  0xa8   : >> { %v992_v47 = vrot.slane %v5599_v55, 5  ;;  %v993_v63 = vrot.slane %v5600_v2, 6  ;;  %v996_v11 = vrot.slane %v5602_v13, 5  ;;  %v1001_v57 = vshrl.u32 %v3748_v45, 16 }
  0xa9   : >> { %5601 = vst [vmem:[#allocation52_spill] sm:$0xff] %v4051_v44  ;;  %v997_v43 = vrot.slane %v5603_v30, 6  ;;  %1452 = vrot.lane.b32.xlu0 %v4051_v44, %s3102_s14  ;;  %v4064_v54 = vcombine.low %v1057_v61, %v1060_v52  ;;  %v4066_v41 = vcombine.low %v1064_v50, %v1067_v23  ;;  %v5605_v58 = vshll.u32 %v3748_v45, 16  ;;  %1511 = vrot.lane.b32.xlu1 %v4019_v21, %s3103_s15 }
  0xaa   : >> { %v994_v48 = vor.u32 %v993_v63, %v992_v47  ;;  %v1003_v51 = vrot.slane %v1001_v57, 5  ;;  %v2830_v59 = vrot.slane %v3727_v22, 10  ;;  %v1077_v31 = vrot.slane %v3739_v49, 6 }
  0xab   : >> { %5604 = vst [vmem:[#allocation53_spill] sm:$0xff] %v4064_v54  ;;  %v998_v40 = vor.u32 %v997_v43, %v996_v11  ;;  %v1004_v17 = vrot.slane %v5605_v58, 6  ;;  %v4076_v61 = vcombine.low %v3760_v20, %v3768_v39  ;;  %v1080_v50 = vrot.slane %v3748_v45, 6 }
  0xac   : >> { %v995_v18 = vrot.slane %v994_v48, 4  ;;  %v5607_v60 = vshrl.u32 %v3760_v20, 16  ;;  %v1078_v63 = vsel %vm4024_vm2, %v2830_v59, %v1077_v31  ;;  %v1079_v52 = vrot.slane %v1077_v31, 4 }
  0xad   : >> { %v1000_v53 = vrot.slane %v998_v40, 4  ;;  %5606 = vst [vmem:[#allocation54_spill] sm:$0xff] %v4076_v61  ;;  %v1005_v2 = vor.u32 %v1004_v17, %v1003_v51  ;;  %1492 = vrot.lane.b32.xlu0 %v4064_v54, %s3104_s16  ;;  %v5608_v13 = vshll.u32 %v3760_v20, 16  ;;  %v5609_v45 = vshrl.u32 %v3768_v39, 16  ;;  %1549 = vrot.lane.b32.xlu1 %v3893_v33, %s3105_s17 }
  0xae   : >> { %v977_v55 = vrot.slane %v5607_v60, 5  ;;  %v999_v47 = vsel %vm3961_vm15, %v995_v18, %v998_v40  ;;  %v5610_v43 = vshll.u32 %v3768_v39, 16  ;;  %v986_v48 = vshrl.u32 %v3781_v56, 16 }
  0xaf   : >> { %v978_v11 = vrot.slane %v5608_v13, 6  ;;  %v981_v30 = vrot.slane %v5609_v45, 5  ;;  %v1006_v57 = vsel %vm3961_vm15, %v1000_v53, %v1005_v2  ;;  %v1081_v40 = vsel %vm4024_vm2, %v1079_v52, %v1080_v50 }
  0xb0   : >> { %v982_v23 = vrot.slane %v5610_v43, 6  ;;  %v5611_v58 = vshll.u32 %v3781_v56, 16  ;;  %v5612_v18 = vshrl.u32 %v3823_v14, 16  ;;  %v4104_v59 = vcombine.low %v999_v47, %v1006_v57 }
  0xb1   : >> { %v4106_v31 = vcombine.low %v1078_v63, %v1081_v40  ;;  %v979_v60 = vor.u32 %v978_v11, %v977_v55  ;;  %v988_v45 = vrot.slane %v986_v48, 5  ;;  %v5615_v43 = vshll.u32 %v3823_v14, 16  ;;  %1530 = vrot.lane.b32.xlu0 %v3770_v36, %s3106_s20  ;;  %1568 = vrot.lane.b32.xlu1 %v4034_v62, %s3107_s21 }
  0xb2   : >> { %v989_v17 = vrot.slane %v5611_v58, 6  ;;  %v1007_v51 = vrot.slane %v5612_v18, 5  ;;  %5613 = vst [vmem:[#allocation55_spill] sm:$0xff] %v4104_v59  ;;  %v983_v13 = vor.u32 %v982_v23, %v981_v30  ;;  %v5616_v53 = vshrl.u32 %v3832_v35, 16 }
  0xb3   : >> { %5614 = vst [vmem:[#allocation56_spill] sm:$0xff] %v4106_v31  ;;  %v1008_v54 = vrot.slane %v5615_v43, 6  ;;  %v5617_v50 = vshll.u32 %v3832_v35, 16  ;;  %v980_v47 = vrot.slane %v979_v60, 4  ;;  %v1016_v63 = vshrl.u32 %v3849_v16, 16 }
  0xb4   : >> { %v1011_v2 = vrot.slane %v5616_v53, 5  ;;  %v985_v57 = vrot.slane %v983_v13, 4  ;;  %v5618_v55 = vshll.u32 %v3849_v16, 16  ;;  %v990_v30 = vor.u32 %v989_v17, %v988_v45 }
  0xb5   : >> { %v1012_v52 = vrot.slane %v5617_v50, 6  ;;  %v1009_v23 = vor.u32 %v1008_v54, %v1007_v51  ;;  %v2831_v40 = vrot.slane %v3823_v14, 10  ;;  %v984_v58 = vsel %vm3961_vm15, %v980_v47, %v983_v13  ;;  %1994 = vrot.lane.b32.xlu0 %v3923_v37, %s3101_s13  ;;  %1587 = vrot.lane.b32.xlu1 %v4066_v41, %s3108_s22 }
  0xb6   : >> { %v1019_v11 = vrot.slane %v5618_v55, 6  ;;  %v1018_v18 = vrot.slane %v1016_v63, 5  ;;  %v1084_v60 = vrot.slane %v3832_v35, 6  ;;  %v1087_v43 = vrot.slane %v3849_v16, 6 }
  0xb7   : >> { %v1013_v48 = vor.u32 %v1012_v52, %v1011_v2  ;;  %v991_v53 = vsel %vm3961_vm15, %v985_v57, %v990_v30  ;;  %v1010_v50 = vrot.slane %v1009_v23, 4  ;;  %v2829_v36 = vrot.slane %v3760_v20, 10 }
  0xb8   : >> { %v4131_v54 = vcombine.low %v984_v58, %v991_v53  ;;  %v1020_v17 = vor.u32 %v1019_v11, %v1018_v18  ;;  %v1085_v51 = vsel %vm4024_vm2, %v2831_v40, %v1084_v60  ;;  %v1086_v13 = vrot.slane %v1084_v60, 4 }
  0xb9   : >> { %v1015_v55 = vrot.slane %v1013_v48, 4  ;;  %v1014_v16 = vsel %vm3961_vm15, %v1010_v50, %v1013_v48  ;;  %v1070_v45 = vrot.slane %v3768_v39, 6  ;;  %v1073_v20 = vrot.slane %v3781_v56, 6  ;;  %2013 = vrot.lane.b32.xlu0 %v4104_v59, %s3100_s12  ;;  %1606 = vrot.lane.b32.xlu1 %v4076_v61, %s3109_s23 }
  0xba   : >> { %5619 = vst [vmem:[#allocation57_spill] sm:$0xff] %v4131_v54  ;;  %v4143_v2 = vcombine.low %v3727_v22, %v3739_v49  ;;  %v1088_v47 = vsel %vm4024_vm2, %v1086_v13, %v1087_v43  ;;  %v4151_v57 = vcombine.low %v3791_v19, %v3799_v15  ;;  %v5621_v63 = vshrl.u32 %v3791_v19, 16 }
  0xbb   : >> { %v1021_v52 = vsel %vm3961_vm15, %v1015_v55, %v1020_v17  ;;  %v4157_v56 = vcombine.low %v1085_v51, %v1088_v47  ;;  %v1071_v49 = vsel %vm4024_vm2, %v2829_v36, %v1070_v45  ;;  %v1072_v22 = vrot.slane %v1070_v45, 4 }
  0xbc   : >> { %5620 = vst [vmem:[#allocation58_spill] sm:$0xff] %v4143_v2  ;;  %v1022_v11 = vrot.slane %v5621_v63, 5  ;;  %v4155_v39 = vcombine.low %v1014_v16, %v1021_v52  ;;  %v5622_v30 = vshll.u32 %v3791_v19, 16  ;;  %v5623_v48 = vshrl.u32 %v3799_v15, 16 }
  0xbd   : >> { %v5624_v58 = vshll.u32 %v3799_v15, 16  ;;  %v1031_v60 = vshrl.u32 %v3813_v24, 16  ;;  %v1074_v36 = vsel %vm4024_vm2, %v1072_v22, %v1073_v20  ;;  %v5625_v43 = vshll.u32 %v3813_v24, 16  ;;  %2032 = vrot.lane.b32.xlu0 %v4106_v31, %s3102_s14  ;;  %1625 = vrot.lane.b32.xlu1 %v3858_v46, %s3110_s24 }
  0xbe   : >> { %v1023_v23 = vrot.slane %v5622_v30, 6  ;;  %v1026_v40 = vrot.slane %v5623_v48, 5  ;;  %v4176_v50 = vcombine.low %v1071_v49, %v1074_v36  ;;  %v4180_v13 = vcombine.low %v3823_v14, %v3832_v35  ;;  %v5642_v36 = vld [vmem:[#allocation33_spill] sm:$0xff] }
  0xbf   : >> { %v1027_v18 = vrot.slane %v5624_v58, 6  ;;  %v1034_v53 = vrot.slane %v5625_v43, 6  ;;  %v1033_v51 = vrot.slane %v1031_v60, 5  ;;  %v2832_v16 = vrot.slane %v3791_v19, 10  ;;  %v5643_v43 = vld [vmem:[#allocation32_spill] sm:$0xff] }
  0xc0   : >> { %5626 = vst [vmem:[#allocation59_spill] sm:$0xff] %v4176_v50  ;;  %v1024_v55 = vor.u32 %v1023_v23, %v1022_v11  ;;  %5627 = vst [vmem:[#allocation60_spill] sm:$0xff] %v4180_v13  ;;  %v1091_v45 = vrot.slane %v3799_v15, 6  ;;  %v1094_v63 = vrot.slane %v3813_v24, 6  ;;  %v5472_v49 = vmov 0  }
  0xc1   : >> { %v1028_v17 = vor.u32 %v1027_v18, %v1026_v40  ;;  %v1035_v47 = vor.u32 %v1034_v53, %v1033_v51  ;;  %2995 = vmatprep.subr.bf16.mxu1 %v5472_v49  ;;  %2051 = vrot.lane.b32.xlu0 %v4180_v13, %s3104_s16  ;;  %v4212_v30 = vcombine.low %v5629_v0, %v5628_v1  ;;  %vm1713_vm7 = vcmask 64512  }
  0xc2   : >> { %v1025_v20 = vrot.slane %v1024_v55, 4  ;;  %v1092_v14 = vsel %vm4024_vm2, %v2832_v16, %v1091_v45  ;;  %v1093_v35 = vrot.slane %v1091_v45, 4  ;;  %1494 = vrot.lane.b32.xlu1 %v4066_v41, %s3104_s16  ;;  %v4217_v23 = vcombine.low %v5631_v3, %v5630_v4  ;;  %v5644_v55 = vld [vmem:[#allocation14_spill] sm:$0xff]  ;;  %v3065_v16 = vld [vmem:[%s4202_s26] sm:$0xff]  }
  0xc3   : >> { %v1030_v52 = vrot.slane %v1028_v17, 4  ;;  %3008 = vmatpush1.bf16.msra.mxu1 %v4212_v30  ;;  %v4227_v48 = vcombine.low %v5633_v5, %v5632_v6  ;;  %v4237_v40 = vcombine.low %v5635_v7, %v5634_v8  ;;  %v2911_v58 = vcombine.low %v5637_v26, %v5636_v27  ;;  %2979 = vmatprep.mubr.msk.bf16.mxu0 %vm5505_vm5, %v3065_v16  ;;  %v5655_v16 = vld [vmem:[#allocation19_spill] sm:$0xff] }
  0xc4   : >> { %v1029_v15 = vsel %vm3961_vm15, %v1025_v20, %v1028_v17  ;;  %v1095_v24 = vsel %vm4024_vm2, %v1093_v35, %v1094_v63  ;;  %2996 = vmatprep.subr.bf16.mxu1 %v5472_v49  ;;  %v4249_v18 = vcombine.low %v5639_v9, %v5638_v10  ;;  %v2912_v60 = vcombine.low %v5641_v28, %v5640_v29  ;;  %v5645_v17 = vld [vmem:[#allocation13_spill] sm:$0xff]  ;;  %v5649_v35 = vld [vmem:[#allocation36_spill] sm:$0xff]  ;;  %v4427_v9 = vld [vmem:[%s3606_s11 + $0x68] sm:$0x3] }
  0xc5   : >> { %v1036_v19 = vsel %vm3961_vm15, %v1030_v52, %v1035_v47  ;;  %v4206_v22 = vcombine.low %v1092_v14, %v1095_v24  ;;  %2070 = vrot.lane.b32.xlu0 %v3904_v34, %s3103_s15  ;;  %2969 = vmatprep.subr.bf16.mxu0 %v2911_v58  ;;  %v2913_v53 = vcombine.low %v5643_v43, %v5642_v36  ;;  %v3115_v45 = vmov 65535   ;;  %v5646_v52 = vld [vmem:[#allocation35_spill] sm:$0xff]  ;;  %v5647_v47 = vld [vmem:[#allocation34_spill] sm:$0xff]  ;;  %v5648_v14 = vld [vmem:[#allocation37_spill] sm:$0xff] }
  0xc6   : >> { %v4196_v11 = vcombine.low %v1029_v15, %v1036_v19  ;;  %2089 = vrot.lane.b32.xlu1 %v3953_v32, %s3106_s20  ;;  %2970 = vmatpush3.bf16.msra.mxu0 %v2911_v58  ;;  %v4263_v51 = vcombine.low %v5645_v17, %v5644_v55  ;;  %v2390_v20 = vsel %vm2388_vm3, 4294967295, %v3115_v45  ;;  %v2914_v63 = vcombine.low %v5647_v47, %v5646_v52  ;;  %v5650_v19 = vld [vmem:[#allocation16_spill] sm:$0xff]  ;;  %v5651_v24 = vld [vmem:[#allocation15_spill] sm:$0xff]  ;;  %v5652_v43 = vld [vmem:[#allocation18_spill] sm:$0xff] }
  0xc7   : >> { %3009 = vmatpush1.bf16.msra.mxu1 %v4217_v23  ;;  %2971 = vmatprep.subr.bf16.mxu0 %v2912_v60  ;;  %v2915_v15 = vcombine.low %v5649_v35, %v5648_v14  ;;  %v4278_v58 = vcombine.low %v5651_v24, %v5650_v19  ;;  %v2391_v36 = vsel %vm2389_vm4, %v2390_v20, 0  ;;  %v5653_v55 = vld [vmem:[#allocation17_spill] sm:$0xff]  ;;  %v3066_v20 = vld [vmem:[%s4202_s26 + $0x8] sm:$0xff]   ;;  %v3067_v52 = vld [vmem:[%s4202_s26 + $0x10] sm:$0xff]   ;;  %v1116_v28 = vshll.u32 %v4427_v9, 16 }
  0xc8   : >> { %2997 = vmatprep.subr.bf16.mxu1 %v5472_v49  ;;  %v4289_v17 = vcombine.low %v5653_v55, %v5652_v43  ;;  %v5656_v47 = vld [vmem:[#allocation22_spill] sm:$0xff]  ;;  %v5660_v19 = vld [vmem:[#allocation23_spill] sm:$0xff]  ;;  %v5664_v55 = vld [vmem:[#allocation25_spill] sm:$0xff]  ;;  %vm1738_vm8 = vcmask 130048   ;;  %vm1755_vm10 = vcmask 195584   ;;  %vm5506_vm11 = vcmask 261120  }
  0xc9   : >> { %1644 = vrot.lane.b32.xlu0 %v3929_v25, %s3112_s27  ;;  %vm5507_vm13 = vcmask 326656   ;;  %vm1806_vm14 = vcmask 392192   ;;  %vm1823_vm0 = vcmask 457728   ;;  %vm1840_vm1 = vcmask 523264  }
  0xca   : >> { %1663 = vrot.lane.b32.xlu1 %v4131_v54, %s3113_s28  ;;  %2972 = vmatpush3.bf16.msra.mxu0 %v2912_v60  ;;  %v2393_v60 = vand.u32 %v2915_v15, %v2391_v36  ;;  %v5659_v15 = vld [vmem:[#allocation24_spill] sm:$0xff]  ;;  %v5661_v36 = vld [vmem:[#allocation47_spill] sm:$0xff]  ;;  %vm1857_vm3 = vcmask 588800   ;;  %vm5508_vm4 = vcmask 654336  }
  0xcb   : >> { %3010 = vmatpush1.bf16.msra.mxu1 %v4227_v48  ;;  %2973 = vmatprep.subr.bf16.mxu0 %v2913_v53  ;;  %v4327_v24 = vcombine.low %v5660_v19, %v5659_v15 }
  0xcc   : >> { %2998 = vmatprep.subr.bf16.mxu1 %v5472_v49 }
  0xcd   : >> { %1513 = vrot.lane.b32.xlu0 %v4076_v61, %s3103_s15 }
  0xce   : >> { %1532 = vrot.lane.b32.xlu1 %v3858_v46, %s3106_s20  ;;  %2974 = vmatpush3.bf16.msra.mxu0 %v2913_v53  ;;  %v5654_v53 = vld [vmem:[#allocation20_spill] sm:$0xff] }
  0xcf   : >> { %3011 = vmatpush1.bf16.msra.mxu1 %v4237_v40  ;;  %2975 = vmatprep.subr.bf16.mxu0 %v2914_v63  ;;  %v4299_v45 = vcombine.low %v5655_v16, %v5654_v53  ;;  %v5665_v16 = vld [vmem:[#allocation45_spill] sm:$0xff] }
  0xd0   : >> { %2999 = vmatprep.subr.bf16.mxu1 %v5472_v49 }
  0xd1   : >> { %2108 = vrot.lane.b32.xlu0 %v4155_v39, %s3105_s17 }
  0xd2   : >> { %2127 = vrot.lane.b32.xlu1 %v4157_v56, %s3107_s21  ;;  %2976 = vmatpush3.bf16.msra.mxu0 %v2914_v63  ;;  %v5657_v63 = vld [vmem:[#allocation21_spill] sm:$0xff] }
  0xd3   : >> { %3012 = vmatpush1.bf16.msra.mxu1 %v4249_v18  ;;  %2977 = vmatprep.subr.bf16.mxu0 %v2393_v60  ;;  %v4312_v14 = vcombine.low %v5657_v63, %v5656_v47 }
  0xd4   : >> { %3000 = vmatprep.subr.bf16.mxu1 %v5472_v49 }
  0xd5   : >> { %1682 = vrot.lane.b32.xlu0 %v4176_v50, %s3114_s29 }
  0xd6   : >> { %1701 = vrot.lane.b32.xlu1 %v4143_v2, %s3116_s30  ;;  %2978 = vmatpush3.bf16.msra.mxu0 %v2393_v60  ;;  %v3068_v60 = vld [vmem:[%s4202_s26 + $0x18] sm:$0xff]  }
  0xd7   : >> { %3013 = vmatpush1.bf16.msra.mxu1 %v4263_v51  ;;  %2587 = vmatprep.subr.bf16.mxu0 %v5472_v49  ;;  %v4320_v35 = vpop.permute.xlu1 %1410 }
  0xd8   : >> { %3001 = vmatprep.subr.bf16.mxu1 %v5472_v49  ;;  %5658 = vst [vmem:[#allocation61_spill] sm:$0xff] %v4320_v35  ;;  %v5677_v35 = vmov 0  }
  0xd9   : >> { %1551 = vrot.lane.b32.xlu0 %v3929_v25, %s3105_s17  ;;  %2980 = vmatmul.mubr.msk.bf16.vlgmr.msra.gmra.mrb[0].mxu0 %vm5505_vm5, %v3066_v20  ;;  %v4336_v43 = vpop.permute.xlu0 %1408  ;;  %v4583_v25 = vld [vmem:[%s3606_s11 + $0x4] sm:$0xf] }
  0xda   : >> { %1570 = vrot.lane.b32.xlu1 %v4131_v54, %s3107_s21  ;;  %2983 = vmatprep.mubr.msk.bf16.mxu0 %vm5505_vm5, %v3067_v52  ;;  %5662 = vst [vmem:[#allocation47_spill] sm:$0xff] %v4336_v43  ;;  %v5666_v52 = vld [vmem:[#allocation27_spill] sm:$0xff]  ;;  %5688 = vst [vmem:[#allocation76_spill] sm:$0xff] %v4583_v25 }
  0xdb   : >> { %3014 = vmatpush1.bf16.msra.mxu1 %v4278_v58  ;;  %2588 = vmatpush1.bf16.msra.mxu0 %v4212_v30  ;;  %v5663_v30 = vld [vmem:[#allocation26_spill] sm:$0xff]  ;;  %v2936_v47 = vcombine.low %v5666_v52, %v5666_v52 }
  0xdc   : >> { %3002 = vmatprep.subr.bf16.mxu1 %v5472_v49  ;;  %2589 = vmatprep.subr.bf16.mxu0 %v5472_v49  ;;  %v4342_v53 = vcombine.low %v5664_v55, %v5663_v30  ;;  %v4397_v30 = vld [vmem:[%s3606_s11 + $0x60] sm:$0xf]  ;;  %v4400_v55 = vld [vmem:[%s3606_s11 + $0x64] sm:$0xf] }
  0xdd   : >> { %1996 = vrot.lane.b32.xlu0 %v3953_v32, %s3101_s13  ;;  %v4363_v63 = vsel %vm2583_vm6, %v2936_v47, 0  ;;  %v1100_v52 = vshll.u32 %v4397_v30, 16  ;;  %v1106_v47 = vshll.u32 %v4400_v55, 16  ;;  %v1110_v0 = vshrl.u32 %v4400_v55, 16 }
  0xde   : >> { %1589 = vrot.lane.b32.xlu1 %v4176_v50, %s3108_s22  ;;  %v4438_v10 = vcombine.low %v4397_v30, %v4400_v55  ;;  %vm5512_vm6 = vcmask 719872  }
  0xdf   : >> { %3015 = vmatpush1.bf16.msra.mxu1 %v4289_v17  ;;  %2590 = vmatpush1.bf16.msra.mxu0 %v4217_v23  ;;  %v1102_v4 = vrot.slane %v1100_v52, 5  ;;  %v1108_v5 = vrot.slane %v1106_v47, 5  ;;  %v1112_v6 = vrot.slane %v1110_v0, 4 }
  0xe0   : >> { %3003 = vmatprep.subr.bf16.mxu1 %v5472_v49  ;;  %2591 = vmatprep.subr.bf16.mxu0 %v5472_v49  ;;  %v4347_v20 = vpop.permute.xlu1 %1372 }
  0xe1   : >> { %2015 = vrot.lane.b32.xlu0 %v4155_v39, %s3100_s12  ;;  %2984 = vmatmul.mubr.msk.bf16.gmra.mrb[4].mxu0 %vm5505_vm5, %v3068_v60  ;;  %v1113_v27 = vor.u32 %v1112_v6, %v1108_v5  ;;  %v1118_v6 = vrot.slane %v1116_v28, 5 }
  0xe2   : >> { %1608 = vrot.lane.b32.xlu1 %v4143_v2, %s3109_s23 }
  0xe3   : >> { %3016 = vmatpush1.bf16.msra.mxu1 %v4299_v45  ;;  %2592 = vmatpush1.bf16.msra.mxu0 %v4227_v48  ;;  %v4360_v23 = vpop.permute.xlu0 %1368  ;;  %v5668_v48 = vld [vmem:[#allocation51_spill] sm:$0xff] }
  0xe4   : >> { %3004 = vmatprep.subr.bf16.mxu1 %v5472_v49  ;;  %2593 = vmatprep.subr.bf16.mxu0 %v5472_v49  ;;  %5667 = vst [vmem:[#allocation45_spill] sm:$0xff] %v4360_v23  ;;  %v1139_v23 = vshrl.u32 %v4427_v9, 16 }
  0xe5   : >> { %2034 = vrot.lane.b32.xlu0 %v4157_v56, %s3102_s14 }
  0xe6   : >> { %1456 = vrot.lane.b32.xlu1 %v4131_v54, %s3102_s14 }
  0xe7   : >> { %3017 = vmatpush1.bf16.msra.mxu1 %v4312_v14  ;;  %2594 = vmatpush1.bf16.msra.mxu0 %v4237_v40 }
  0xe8   : >> { %3005 = vmatprep.subr.bf16.mxu1 %v5472_v49  ;;  %2595 = vmatprep.subr.bf16.mxu0 %v5472_v49 }
  0xe9   : >> { %2053 = vrot.lane.b32.xlu0 %v4151_v57, %s3104_s16  ;;  %v4367_v15 = vpop.permute.xlu1 %1374 }
  0xea   : >> { %2072 = vrot.lane.b32.xlu1 %v5661_v36, %s3103_s15 }
  0xeb   : >> { %3018 = vmatpush1.bf16.msra.mxu1 %v4327_v24  ;;  %2596 = vmatpush1.bf16.msra.mxu0 %v4249_v18 }
  0xec   : >> { %3006 = vmatprep.subr.bf16.mxu1 %v5472_v49  ;;  %v4376_v19 = vpop.permute.xlu0 %1370  ;;  %2597 = vmatprep.subr.bf16.mxu0 %v5472_v49 }
  0xed   : >> { %1627 = vrot.lane.b32.xlu0 %v5665_v16, %s3110_s24  ;;  %5669 = vst [vmem:[#allocation51_spill] sm:$0xff] %v4376_v19 }
  0xee   : >> { %1646 = vrot.lane.b32.xlu1 %v3923_v37, %s3112_s27 }
  0xef   : >> { %3019 = vmatpush1.bf16.msra.mxu1 %v4342_v53  ;;  %2598 = vmatpush1.bf16.msra.mxu0 %v4263_v51  ;;  %v1097_v51 = vshrl.u32 %v4397_v30, 16 }
  0xf0   : >> { %3007 = vmatprep.subr.bf16.mxu1 %v5472_v49  ;;  %2599 = vmatprep.subr.bf16.mxu0 %v5472_v49 }
  0xf1   : >> { %1496 = vrot.lane.b32.xlu0 %v4176_v50, %s3104_s16  ;;  %v4382_v40 = vpop.permute.xlu1 %1378  ;;  %v1099_v3 = vrot.slane %v1097_v51, 4 }
  0xf2   : >> { %1515 = vrot.lane.b32.xlu1 %v4143_v2, %s3103_s15  ;;  %5670 = vst [vmem:[#allocation62_spill] sm:$0xff] %v4382_v40  ;;  %v1130_v2 = vrot.slane %v1097_v51, 5  ;;  %v1131_v40 = vrot.slane %v1100_v52, 6  ;;  %v1141_v52 = vrot.slane %v1139_v23, 5 }
  0xf3   : >> { %3020 = vmatpush1.bf16.msra.mxu1 %v4363_v63  ;;  %2600 = vmatpush1.bf16.msra.mxu0 %v4278_v58  ;;  %v1103_v26 = vor.u32 %v1102_v4, %v1099_v3  ;;  %v1114_v4 = vrot.slane %v1113_v27, 4 }
  0xf4   : >> { %2601 = vmatprep.subr.bf16.mxu0 %v5472_v49 }
  0xf5   : >> { %2091 = vrot.lane.b32.xlu0 %v5668_v48, %s3106_s20  ;;  %v4390_v60 = vpop.permute.xlu0 %1376  ;;  %v1104_v3 = vrot.slane %v1103_v26, 4  ;;  %v1134_v26 = vrot.slane %v1110_v0, 5 }
  0xf6   : >> { %2110 = vrot.lane.b32.xlu1 %v4196_v11, %s3105_s17  ;;  %5671 = vst [vmem:[#allocation63_spill] sm:$0xff] %v4390_v60 }
  0xf7   : >> { %2602 = vmatpush1.bf16.msra.mxu0 %v4289_v17  ;;  %v1125_v17 = vrot.slane %v4400_v55, 5  ;;  %v1109_v43 = vsel %vm3676_vm12, %v1104_v3, %v1108_v5  ;;  %v1132_v5 = vor.u32 %v1131_v40, %v1130_v2 }
  0xf8   : >> { %2603 = vmatprep.subr.bf16.mxu0 %v5472_v49 }
  0xf9   : >> { %1665 = vrot.lane.b32.xlu0 %v4104_v59, %s3113_s28  ;;  %v1127_v19 = vrot.slane %v1125_v17, 4 }
  0xfa   : >> { %1684 = vrot.lane.b32.xlu1 %v4106_v31, %s3114_s29  ;;  %v4394_v18 = vpop.permute.xlu1 %1382 }
  0xfb   : >> { %5672 = vst [vmem:[#allocation64_spill] sm:$0xff] %v4394_v18  ;;  %2604 = vmatpush1.bf16.msra.mxu0 %v4299_v45  ;;  %v1128_v18 = vrot.slane %v4427_v9, 5 }
  0xfc   : >> { %2605 = vmatprep.subr.bf16.mxu0 %v5472_v49  ;;  %v2833_v49 = vrot.slane %v4397_v30, 9 }
  0xfd   : >> { %1534 = vrot.lane.b32.xlu0 %v5665_v16, %s3106_s20 }
  0xfe   : >> { %1553 = vrot.lane.b32.xlu1 %v3923_v37, %s3105_s17  ;;  %v4412_v1 = vpop.permute.xlu0 %1380  ;;  %v4414_v58 = vpop.permute.xlu1 %1414 }
  0xff   : >> { %5673 = vst [vmem:[#allocation65_spill] sm:$0xff] %v4412_v1  ;;  %2606 = vmatpush1.bf16.msra.mxu0 %v4312_v14  ;;  %v3075_v1 = vld [vmem:[%s3606_s11 + $0x18] sm:$0xf] }
 0x100   : >> { %2607 = vmatprep.subr.bf16.mxu0 %v5677_v35 }
 0x101   : >> { %2129 = vrot.lane.b32.xlu0 %v4206_v22, %s3107_s21 }
 0x102   : >> { %1998 = vrot.lane.b32.xlu1 %v5668_v48, %s3101_s13  ;;  %v4422_v7 = vpop.permute.xlu0 %1412  ;;  %v4424_v8 = vpop.permute.xlu1 %1418 }
 0x103   : >> { %5674 = vst [vmem:[#allocation66_spill] sm:$0xff] %v4424_v8  ;;  %2608 = vmatpush1.bf16.msra.mxu0 %v4327_v24  ;;  %v1129_v8 = vsel %vm3602_vm9, %v1127_v19, %v1128_v18 }
 0x104   : >> { %2609 = vmatprep.subr.bf16.mxu0 %v5677_v35 }
 0x105   : >> { %1703 = vrot.lane.b32.xlu0 %v4180_v13, %s3116_s30 }
 0x106   : >> { %2017 = vrot.lane.b32.xlu1 %v4196_v11, %s3100_s12  ;;  %v4441_v29 = vpop.permute.xlu0 %1416  ;;  %v4444_v45 = vpop.permute.xlu1 %1422 }
 0x107   : >> { %5675 = vst [vmem:[#allocation67_spill] sm:$0xff] %v4441_v29  ;;  %5676 = vst [vmem:[#allocation68_spill] sm:$0xff] %v4444_v45  ;;  %v1126_v45 = vsel %vm3602_vm9, %v2833_v49, %v1125_v17  ;;  %v1119_v49 = vsel %vm3676_vm12, %v1114_v4, %v1118_v6  ;;  %v1135_v17 = vrot.slane %v1106_v47, 6  ;;  %2610 = vmatpush1.bf16.msra.mxu0 %v4342_v53  ;;  %v1142_v47 = vrot.slane %v1116_v28, 6  ;;  %v3071_v4 = vld [vmem:[%s4202_s26 + $0x28] sm:$0xff]  }
 0x108   : >> { %2611 = vmatprep.subr.bf16.mxu0 %v5677_v35  ;;  %v4478_v19 = vcombine.low %v1109_v43, %v1119_v49  ;;  %v4480_v18 = vcombine.low %v1126_v45, %v1129_v8  ;;  %v1147_v53 = vrot.slane %v4400_v55, 6  ;;  %v1133_v8 = vrot.slane %v1132_v5, 4  ;;  %v3070_v45 = vld [vmem:[%s4202_s26 + $0x20] sm:$0xff]  }
 0x109   : >> { %1572 = vrot.lane.b32.xlu0 %v4104_v59, %s3107_s21  ;;  %v1136_v51 = vor.u32 %v1135_v17, %v1134_v26  ;;  %v1143_v2 = vor.u32 %v1142_v47, %v1141_v52  ;;  %v2834_v28 = vrot.slane %v4397_v30, 10  ;;  %v1150_v55 = vrot.slane %v4427_v9, 6  ;;  %2987 = vmatprep.mubr.msk.bf16.mxu0 %vm5505_vm5, %v3070_v45  ;;  %v4531_v47 = vld [vmem:[%s3606_s11 + $0x6c] sm:$0xf] }
 0x10a   : >> { %2036 = vrot.lane.b32.xlu1 %v4206_v22, %s3102_s14  ;;  %v4453_v37 = vpop.permute.xlu0 %1420  ;;  %5683 = vst [vmem:[#allocation71_spill] sm:$0xff] %v4478_v19  ;;  %5684 = vst [vmem:[#allocation72_spill] sm:$0xff] %v4480_v18  ;;  %v1149_v23 = vrot.slane %v1147_v53, 4  ;;  %2988 = vmatmul.mubr.msk.bf16.gmra.mrb[8].mxu0 %vm5505_vm5, %v3071_v4  ;;  %v1042_v29 = vrot.slane %v4583_v25, 6  ;;  %vm5511_vm5 = vcmask 785408  }
 0x10b   : >> { %5678 = vst [vmem:[#allocation69_spill] sm:$0xff] %v4453_v37  ;;  %2612 = vmatpush1.bf16.msra.mxu0 %v4363_v63  ;;  %v1138_v43 = vrot.slane %v1136_v51, 4  ;;  %v1137_v3 = vsel %vm3961_vm15, %v1133_v8, %v1136_v51  ;;  %v1148_v9 = vsel %vm4024_vm2, %v2834_v28, %v1147_v53  ;;  %v4534_v53 = vld [vmem:[%s3606_s11 + $0x70] sm:$0xf] }
 0x10c   : >> { %v1151_v26 = vsel %vm4024_vm2, %v1149_v23, %v1150_v55  ;;  %v1162_v28 = vshll.u32 %v4534_v53, 16  ;;  %v1166_v23 = vshrl.u32 %v4534_v53, 16  ;;  %v1181_v25 = vrot.slane %v4534_v53, 5 }
 0x10d   : >> { %1591 = vrot.lane.b32.xlu0 %v4106_v31, %s3108_s22  ;;  %v4465_v27 = vpop.permute.xlu1 %1450  ;;  %v1144_v30 = vsel %vm3961_vm15, %v1138_v43, %v1143_v2  ;;  %v4524_v5 = vcombine.low %v1148_v9, %v1151_v26  ;;  %v1153_v43 = vshrl.u32 %v4531_v47, 16  ;;  %v1156_v2 = vshll.u32 %v4531_v47, 16 }
 0x10e   : >> { %2055 = vrot.lane.b32.xlu1 %v4438_v10, %s3104_s16  ;;  %5680 = vst [vmem:[#allocation39_spill] sm:$0xff] %v4465_v27  ;;  %v4520_v17 = vcombine.low %v1137_v3, %v1144_v30  ;;  %v1164_v4 = vrot.slane %v1162_v28, 5  ;;  %v1168_v9 = vrot.slane %v1166_v23, 4  ;;  %v4557_v27 = vld [vmem:[%s3606_s11 + $0x74] sm:$0x3]  ;;  %v1191_v46 = vrot.slane %v1162_v28, 6 }
 0x10f   : >> { %5686 = vst [vmem:[#allocation74_spill] sm:$0xff] %v4524_v5  ;;  %v1155_v3 = vrot.slane %v1153_v43, 4  ;;  %v1158_v30 = vrot.slane %v1156_v2, 5  ;;  %v1172_v37 = vshll.u32 %v4557_v27, 16  ;;  %v1187_v24 = vrot.slane %v1156_v2, 6 }
 0x110   : >> { %5685 = vst [vmem:[#allocation73_spill] sm:$0xff] %v4520_v17 }
 0x111   : >> { %1610 = vrot.lane.b32.xlu0 %v4180_v13, %s3109_s23  ;;  %v4476_v0 = vpop.permute.xlu0 %1448 }
 0x112   : >> { %1629 = vrot.lane.b32.xlu1 %v3904_v34, %s3110_s24  ;;  %5682 = vst [vmem:[#allocation70_spill] sm:$0xff] %v4476_v0  ;;  %v1169_v0 = vor.u32 %v1168_v9, %v1164_v4 }
 0x115   : >> { %1458 = vrot.lane.b32.xlu0 %v4104_v59, %s3102_s14  ;;  %v1159_v59 = vor.u32 %v1158_v30, %v1155_v3  ;;  %v1170_v3 = vrot.slane %v1169_v0, 4  ;;  %v1174_v30 = vrot.slane %v1172_v37, 5 }
 0x116   : >> { %1498 = vrot.lane.b32.xlu1 %v4106_v31, %s3104_s16 }
 0x117   : >> { %v4486_v35 = vpop.permute.xlu1 %1454  ;;  %v1160_v44 = vrot.slane %v1159_v59, 4 }
 0x119   : >> { %2074 = vrot.lane.b32.xlu0 %v4478_v19, %s3103_s15  ;;  %v1165_v0 = vsel %vm3676_vm12, %v1160_v44, %v1164_v4  ;;  %v4603_v19 = vld [vmem:[%s3606_s11] sm:$0xf]  ;;  %v1044_v4 = vrot.slane %v1042_v29, 4 }
 0x11a   : >> { %2093 = vrot.lane.b32.xlu1 %v4480_v18, %s3106_s20  ;;  %5689 = vst [vmem:[#allocation77_spill] sm:$0xff] %v4603_v19 }
 0x11b   : >> { %v4492_v40 = vpop.permute.xlu0 %1452  ;;  %v4496_v63 = vpop.permute.xlu1 %1511 }
 0x11d   : >> { %1648 = vrot.lane.b32.xlu0 %v3953_v32, %s3112_s27 }
 0x11e   : >> { %1667 = vrot.lane.b32.xlu1 %v4155_v39, %s3113_s28 }
 0x11f   : >> { %v4508_v6 = vpop.permute.xlu0 %1492  ;;  %v4515_v49 = vpop.permute.xlu1 %1549 }
 0x121   : >> { %1517 = vrot.lane.b32.xlu0 %v4180_v13, %s3103_s15 }
 0x122   : >> { %1536 = vrot.lane.b32.xlu1 %v3904_v34, %s3106_s20 }
 0x123   : >> { %v4526_v51 = vpop.permute.xlu0 %1530  ;;  %v4528_v52 = vpop.permute.xlu1 %1568 }
 0x125   : >> { %2112 = vrot.lane.b32.xlu0 %v4520_v17, %s3105_s17 }
 0x126   : >> { %2131 = vrot.lane.b32.xlu1 %v4524_v5, %s3107_s21 }
 0x127   : >> { %v4540_v8 = vpop.permute.xlu0 %1994  ;;  %v4546_v55 = vpop.permute.xlu1 %1587 }
 0x129   : >> { %1686 = vrot.lane.b32.xlu0 %v4157_v56, %s3114_s29 }
 0x12a   : >> { %1705 = vrot.lane.b32.xlu1 %v4151_v57, %s3116_s30 }
 0x12b   : >> { %v4552_v45 = vpop.permute.xlu0 %2013  ;;  %v4554_v26 = vpop.permute.xlu1 %1606 }
 0x12d   : >> { %1555 = vrot.lane.b32.xlu0 %v3953_v32, %s3105_s17  ;;  %v3076_v32 = vld [vmem:[%s3606_s11 + $0x1c] sm:$0xf] }
 0x12e   : >> { %1574 = vrot.lane.b32.xlu1 %v4155_v39, %s3107_s21  ;;  %v4574_v50 = vcombine.low %v3075_v1, %v3076_v32  ;;  %v1175_v32 = vsel %vm3676_vm12, %v1170_v3, %v1174_v30  ;;  %v3079_v3 = vld [vmem:[%s3606_s11 + $0x8] sm:$0x3] }
 0x12f   : >> { %v4563_v31 = vpop.permute.xlu0 %2032  ;;  %v4566_v13 = vpop.permute.xlu1 %1625  ;;  %v1045_v30 = vrot.slane %v3079_v3, 6  ;;  %v4616_v28 = vcombine.low %v1165_v0, %v1175_v32  ;;  %v2147_v0 = vsel %vm1713_vm7, %v5665_v16, %v4540_v8 }
 0x130   : >> { %5687 = vst [vmem:[#allocation75_spill] sm:$0xff] %v4574_v50  ;;  %v1722_v1 = vsel %vm1713_vm7, %v4574_v50, %v4347_v20  ;;  %v2825_v20 = vrot.slane %v4603_v19, 10  ;;  %v1186_v19 = vrot.slane %v1153_v43, 5  ;;  %v1195_v50 = vshrl.u32 %v4557_v27, 16 }
 0x131   : >> { %2000 = vrot.lane.b32.xlu0 %v4480_v18, %s3101_s13  ;;  %v4600_v18 = vcombine.low %v4531_v47, %v4534_v53  ;;  %v1046_v2 = vsel %vm4024_vm2, %v1044_v4, %v1045_v30 }
 0x132   : >> { %1593 = vrot.lane.b32.xlu1 %v4157_v56, %s3108_s22  ;;  %v1043_v43 = vsel %vm4024_vm2, %v2825_v20, %v1042_v29  ;;  %v2168_v29 = vsel %vm1738_vm8, %v2147_v0, %v4552_v45 }
 0x133   : >> { %v4576_v54 = vpop.permute.xlu0 %2051  ;;  %v2184_v8 = vsel %vm1755_vm10, %v2168_v29, %v4563_v31  ;;  %v1206_v29 = vrot.slane %v4557_v27, 6 }
 0x134   : >> { %v4578_v9 = vpop.permute.xlu1 %1494 }
 0x135   : >> { %2019 = vrot.lane.b32.xlu0 %v4520_v17, %s3100_s12  ;;  %v1744_v17 = vsel %vm1738_vm8, %v1722_v1, %v4422_v7  ;;  %v2835_v7 = vrot.slane %v4531_v47, 9 }
 0x136   : >> { %1612 = vrot.lane.b32.xlu1 %v4151_v57, %s3109_s23  ;;  %v1761_v44 = vsel %vm1755_vm10, %v1744_v17, %v4492_v40  ;;  %v1183_v40 = vrot.slane %v1181_v25, 4  ;;  %v1184_v17 = vrot.slane %v4557_v27, 5 }
 0x137   : >> { %v2071_v59 = vpop.permute.xlu0 %2070  ;;  %v1778_v1 = vsel %vm5506_vm11, %v1761_v44, %v4508_v6  ;;  %v1197_v44 = vrot.slane %v1195_v50, 5 }
 0x138   : >> { %v2090_v60 = vpop.permute.xlu1 %2089  ;;  %v1795_v6 = vsel %vm5507_vm13, %v1778_v1, %v4496_v63  ;;  %v1182_v63 = vsel %vm3602_vm9, %v2835_v7, %v1181_v25  ;;  %v1185_v20 = vsel %vm3602_vm9, %v1183_v40, %v1184_v17 }
 0x139   : >> { %2038 = vrot.lane.b32.xlu0 %v4524_v5, %s3102_s14  ;;  %v1190_v5 = vrot.slane %v1166_v23, 5  ;;  %v1812_v23 = vsel %vm1806_vm14, %v1795_v6, %v4526_v51  ;;  %v4658_v31 = vcombine.low %v1182_v63, %v1185_v20  ;;  %v1203_v6 = vrot.slane %v4534_v53, 6 }
 0x13a   : >> { %1460 = vrot.lane.b32.xlu1 %v4155_v39, %s3102_s14  ;;  %v1198_v39 = vrot.slane %v1172_v37, 6  ;;  %v1188_v37 = vor.u32 %v1187_v24, %v1186_v19  ;;  %v1829_v25 = vsel %vm1823_vm0, %v1812_v23, %v4515_v49  ;;  %v2200_v24 = vsel %vm5506_vm11, %v2184_v8, %v4576_v54  ;;  %v3081_v23 = vld [vmem:[%s3606_s11 + $0x10] sm:$0xf] }
 0x13b   : >> { %v1645_v61 = vpop.permute.xlu0 %1644  ;;  %v1192_v51 = vor.u32 %v1191_v46, %v1190_v5  ;;  %v2873_v46 = vcombine.low %v1043_v43, %v1046_v2  ;;  %v1846_v50 = vsel %vm1840_vm1, %v1829_v25, %v4528_v52  ;;  %v2216_v19 = vsel %vm5507_vm13, %v2200_v24, %v2071_v59  ;;  %v3080_v2 = vld [vmem:[%s3606_s11 + $0xc] sm:$0xf] }
 0x13c   : >> { %v1664_v3 = vpop.permute.xlu1 %1663  ;;  %v1189_v5 = vrot.slane %v1188_v37, 4  ;;  %v1863_v49 = vsel %vm1857_vm3, %v1846_v50, %v4546_v55  ;;  %v2232_v54 = vsel %vm1806_vm14, %v2216_v19, %v2090_v60  ;;  %v1199_v7 = vor.u32 %v1198_v39, %v1197_v44 }
 0x13d   : >> { %2057 = vrot.lane.b32.xlu0 %v4600_v18, %s3104_s16  ;;  %v1194_v30 = vrot.slane %v1192_v51, 4  ;;  %v1880_v1 = vsel %vm5508_vm4, %v1863_v49, %v4554_v26  ;;  %vm1925_vm11 = vcmask 850944   ;;  %vm5510_vm13 = vcmask 916480  }
 0x13e   : >> { %2076 = vrot.lane.b32.xlu1 %v4616_v28, %s3103_s15  ;;  %vm5509_vm4 = vcmask 982016   ;;  %v4690_v0 = vcombine.low %v3080_v2, %v3081_v23  ;;  %v2836_v53 = vrot.slane %v4531_v47, 10  ;;  %v1205_v37 = vrot.slane %v1203_v6, 4 }
 0x13f   : >> { %v4639_v32 = vpop.permute.xlu0 %1513  ;;  %v1200_v17 = vsel %vm3961_vm15, %v1194_v30, %v1199_v7  ;;  %v1049_v49 = vrot.slane %v3081_v23, 6  ;;  %v2826_v7 = vrot.slane %v3080_v2, 10 }
 0x140   : >> { %v4645_v4 = vpop.permute.xlu1 %1532  ;;  %v1204_v44 = vsel %vm4024_vm2, %v2836_v53, %v1203_v6  ;;  %v1207_v8 = vsel %vm4024_vm2, %v1205_v37, %v1206_v29  ;;  %v4753_v6 = vld [vmem:[%s3606_s11 + $0x7c] sm:$0xf] }
 0x141   : >> { %1631 = vrot.lane.b32.xlu0 %v5661_v36, %s3110_s24  ;;  %v4712_v27 = vcombine.low %v1204_v44, %v1207_v8  ;;  %v1218_v53 = vshll.u32 %v4753_v6, 16  ;;  %v1222_v37 = vshrl.u32 %v4753_v6, 16 }
 0x142   : >> { %1500 = vrot.lane.b32.xlu1 %v4157_v56, %s3104_s16  ;;  %v1897_v56 = vsel %vm5512_vm6, %v1880_v1, %v4566_v13  ;;  %v1193_v13 = vsel %vm3961_vm15, %v1189_v5, %v1192_v51  ;;  %v1051_v1 = vrot.slane %v1049_v49, 4 }
 0x143   : >> { %v2109_v45 = vpop.permute.xlu0 %2108  ;;  %v1914_v60 = vsel %vm5511_vm5, %v1897_v56, %v1645_v61 }
 0x144   : >> { %v2248_v52 = vsel %vm1823_vm0, %v2232_v54, %v2109_v45  ;;  %v2128_v59 = vpop.permute.xlu1 %2127  ;;  %v1931_v26 = vsel %vm1925_vm11, %v1914_v60, %v1664_v3  ;;  %v4686_v3 = vcombine.low %v1193_v13, %v1200_v17  ;;  %v5691_v45 = vld [vmem:[#allocation40_spill] sm:$0xff] }
 0x145   : >> { %1488 = vrot.lane.b32.xlu0 %v2873_v46, %s3104_s16  ;;  %v2264_v55 = vsel %vm1840_vm1, %v2248_v52, %v2128_v59  ;;  %v5690_v46 = vld [vmem:[#allocation44_spill] sm:$0xff]  ;;  %v3082_v52 = vld [vmem:[%s3606_s11 + $0x14] sm:$0x3] }
 0x146   : >> { %2095 = vrot.lane.b32.xlu1 %v4658_v31, %s3106_s20  ;;  %2939 = vmatprep.mubr.msk.bf16.mxu1 %vm1857_vm3, %v2264_v55  ;;  %v1052_v59 = vrot.slane %v3082_v52, 6  ;;  %v1050_v55 = vsel %vm4024_vm2, %v2826_v7, %v1049_v49  ;;  %v4800_v52 = vld [vmem:[%s3606_s11 + $0x80] sm:$0x3] }
 0x147   : >> { %v1683_v40 = vpop.permute.xlu0 %1682 }
 0x148   : >> { %v1948_v61 = vsel %vm5510_vm13, %v1931_v26, %v1683_v40  ;;  %v1702_v39 = vpop.permute.xlu1 %1701  ;;  %v1053_v60 = vsel %vm4024_vm2, %v1051_v1, %v1052_v59  ;;  %vm5693_vm13 = vcmask 326656  }
 0x149   : >> { %1650 = vrot.lane.b32.xlu0 %v5668_v48, %s3112_s27  ;;  %v1967_v43 = vsel %vm5509_vm4, %v1948_v61, %v1702_v39  ;;  %v4747_v40 = vcombine.low %v1050_v55, %v1053_v60  ;;  %v1725_v61 = vsel %vm1713_vm7, %v4019_v21, %v4367_v15  ;;  %vm5692_vm4 = vcmask 261120  }
 0x14a   : >> { %1519 = vrot.lane.b32.xlu1 %v4151_v57, %s3103_s15  ;;  %2636 = vmatmul.mubr.bf16.vlgmr.msra.gmra.mrb[0].mxu1 %v1967_v43  ;;  %v1746_v2 = vsel %vm1738_vm8, %v1725_v61, %v4414_v58 }
 0x14b   : >> { %v4692_v63 = vpop.permute.xlu0 %1551  ;;  %v1763_v29 = vsel %vm1755_vm10, %v1746_v2, %v4486_v35 }
 0x14c   : >> { %v4696_v20 = vpop.permute.xlu1 %1570  ;;  %v1780_v15 = vsel %vm5692_vm4, %v1763_v29, %v4578_v9 }
 0x14d   : >> { %1507 = vrot.lane.b32.xlu0 %v4690_v0, %s3103_s15  ;;  %v1797_v58 = vsel %vm5693_vm13, %v1780_v15, %v4639_v32  ;;  %v1220_v32 = vrot.slane %v1218_v53, 5  ;;  %vm5694_vm13 = vmmov %vm5692_vm4  ;;  %vm5695_vm4 = vcmask 326656  }
 0x14e   : >> { %2114 = vrot.lane.b32.xlu1 %v4686_v3, %s3105_s17 }
 0x14f   : >> { %v1997_v51 = vpop.permute.xlu0 %1996 }
 0x150   : >> { %v4706_v25 = vpop.permute.xlu1 %1589  ;;  %v2150_v8 = vsel %vm1713_vm7, %v3904_v34, %v1997_v51  ;;  %v1814_v34 = vsel %vm1806_vm14, %v1797_v58, %v4645_v4 }
 0x151   : >> { %1669 = vrot.lane.b32.xlu0 %v4196_v11, %s3113_s28 }
 0x152   : >> { %1538 = vrot.lane.b32.xlu1 %v5661_v36, %s3106_s20 }
 0x153   : >> { %v2016_v47 = vpop.permute.xlu0 %2015 }
 0x154   : >> { %v4714_v24 = vpop.permute.xlu1 %1608 }
 0x155   : >> { %1526 = vrot.lane.b32.xlu0 %v5690_v46, %s3106_s20  ;;  %v2170_v46 = vsel %vm1738_vm8, %v2150_v8, %v2016_v47  ;;  %v1224_v47 = vrot.slane %v1222_v37, 4 }
 0x156   : >> { %2133 = vrot.lane.b32.xlu1 %v4712_v27, %s3107_s21 }
 0x157   : >> { %v2035_v50 = vpop.permute.xlu0 %2034  ;;  %v1225_v2 = vor.u32 %v1224_v47, %v1220_v32 }
 0x158   : >> { %v4720_v19 = vpop.permute.xlu1 %1456  ;;  %v2186_v51 = vsel %vm1755_vm10, %v2170_v46, %v2035_v50 }
 0x159   : >> { %1688 = vrot.lane.b32.xlu0 %v4206_v22, %s3114_s29  ;;  %v1226_v46 = vrot.slane %v1225_v2, 4  ;;  %v5704_v2 = vld [vmem:[#allocation46_spill] sm:$0xff] }
 0x15a   : >> { %1557 = vrot.lane.b32.xlu1 %v5668_v48, %s3105_s17 }
 0x15b   : >> { %v2054_v5 = vpop.permute.xlu0 %2053 }
 0x15c   : >> { %v2073_v54 = vpop.permute.xlu1 %2072  ;;  %v2202_v7 = vsel %vm5694_vm13, %v2186_v51, %v2054_v5  ;;  %vm5697_vm13 = vcmask 654336  }
 0x15d   : >> { %1545 = vrot.lane.b32.xlu0 %v5691_v45, %s3105_s17  ;;  %v1831_v45 = vsel %vm1823_vm0, %v1814_v34, %v4692_v63  ;;  %v2218_v50 = vsel %vm5695_vm4, %v2202_v7, %v2073_v54  ;;  %v5696_v63 = vld [vmem:[#allocation75_spill] sm:$0xff]  ;;  %v1228_v54 = vshll.u32 %v4800_v52, 16  ;;  %vm5699_vm4 = vcmask 916480  }
 0x15e   : >> { %1990 = vrot.lane.b32.xlu1 %v3893_v33, %s3101_s13  ;;  %v1848_v4 = vsel %vm1840_vm1, %v1831_v45, %v4696_v20  ;;  %v5702_v7 = vld [vmem:[#allocation71_spill] sm:$0xff] }
 0x15f   : >> { %v1628_v30 = vpop.permute.xlu0 %1627  ;;  %v1865_v59 = vsel %vm1857_vm3, %v1848_v4, %v4706_v25 }
 0x160   : >> { %v1647_v56 = vpop.permute.xlu1 %1646  ;;  %v1882_v60 = vsel %vm5697_vm13, %v1865_v59, %v4714_v24  ;;  %vm5700_vm13 = vcmask 982016  }
 0x161   : >> { %1707 = vrot.lane.b32.xlu0 %v4438_v10, %s3116_s30  ;;  %v1899_v29 = vsel %vm5512_vm6, %v1882_v60, %v1628_v30  ;;  %v1240_v60 = vrot.slane %v4800_v52, 5 }
 0x162   : >> { %1564 = vrot.lane.b32.xlu1 %v3990_v42, %s3107_s21  ;;  %v4750_v42 = vld [vmem:[%s3606_s11 + $0x78] sm:$0xf] }
 0x163   : >> { %v4735_v48 = vpop.permute.xlu0 %1496  ;;  %v1209_v39 = vshrl.u32 %v4750_v42, 16  ;;  %v1212_v43 = vshll.u32 %v4750_v42, 16 }
 0x164   : >> { %v4741_v26 = vpop.permute.xlu1 %1515 }
 0x165   : >> { %2002 = vrot.lane.b32.xlu0 %v4658_v31, %s3101_s13  ;;  %v1211_v35 = vrot.slane %v1209_v39, 4  ;;  %v1214_v9 = vrot.slane %v1212_v43, 5 }
 0x166   : >> { %2009 = vrot.lane.b32.xlu1 %v4034_v62, %s3100_s12 }
 0x167   : >> { %v2092_v13 = vpop.permute.xlu0 %2091  ;;  %v1215_v5 = vor.u32 %v1214_v9, %v1211_v35  ;;  %v1230_v35 = vrot.slane %v1228_v54, 5 }
 0x168   : >> { %v2111_v17 = vpop.permute.xlu1 %2110  ;;  %v2234_v55 = vsel %vm1806_vm14, %v2218_v50, %v2092_v13  ;;  %v1916_v13 = vsel %vm5511_vm5, %v1899_v29, %v1647_v56  ;;  %v4833_v56 = vcombine.low %v4750_v42, %v4753_v6  ;;  %v1237_v50 = vrot.slane %v4753_v6, 5 }
 0x169   : >> { %1576 = vrot.lane.b32.xlu0 %v4196_v11, %s3107_s21  ;;  %v2250_v61 = vsel %vm1823_vm0, %v2234_v55, %v2111_v17  ;;  %v5698_v17 = vld [vmem:[#allocation54_spill] sm:$0xff]  ;;  %v1216_v30 = vrot.slane %v1215_v5, 4  ;;  %v1231_v47 = vsel %vm3676_vm12, %v1226_v46, %v1230_v35 }
 0x16a   : >> { %1583 = vrot.lane.b32.xlu1 %v4747_v40, %s3108_s22  ;;  %v5703_v55 = vld [vmem:[#allocation42_spill] sm:$0xff]  ;;  %v1239_v5 = vrot.slane %v1237_v50, 4 }
 0x16b   : >> { %v1666_v23 = vpop.permute.xlu0 %1665  ;;  %v1221_v51 = vsel %vm3676_vm12, %v1216_v30, %v1220_v32  ;;  %v2837_v32 = vrot.slane %v4750_v42, 9  ;;  %v1251_v30 = vshrl.u32 %v4800_v52, 16 }
 0x16c   : >> { %v1685_v44 = vpop.permute.xlu1 %1684  ;;  %v1933_v24 = vsel %vm1925_vm11, %v1916_v13, %v1666_v23  ;;  %v4847_v4 = vcombine.low %v1221_v51, %v1231_v47  ;;  %v1242_v13 = vrot.slane %v1209_v39, 5  ;;  %v5705_v39 = vld [vmem:[#allocation72_spill] sm:$0xff] }
 0x16d   : >> { %2021 = vrot.lane.b32.xlu0 %v4686_v3, %s3100_s12  ;;  %v1950_v8 = vsel %vm5699_vm4, %v1933_v24, %v1685_v44  ;;  %v1238_v29 = vsel %vm3602_vm9, %v2837_v32, %v1237_v50  ;;  %v1253_v47 = vrot.slane %v1251_v30, 5  ;;  %v5707_v32 = vld [vmem:[#allocation63_spill] sm:$0xff]  ;;  %vm5710_vm4 = vcmask 261120  }
 0x16e   : >> { %2028 = vrot.lane.b32.xlu1 %v4066_v41, %s3102_s14 }
 0x16f   : >> { %v4788_v49 = vpop.permute.xlu0 %1534 }
 0x170   : >> { %v4797_v1 = vpop.permute.xlu1 %1553 }
 0x171   : >> { %1595 = vrot.lane.b32.xlu0 %v4206_v22, %s3108_s22 }
 0x172   : >> { %1602 = vrot.lane.b32.xlu1 %v5696_v63, %s3109_s23 }
 0x173   : >> { %v2130_v20 = vpop.permute.xlu0 %2129 }
 0x174   : >> { %v2266_v15 = vsel %vm1840_vm1, %v2250_v61, %v2130_v20  ;;  %v4818_v25 = vpop.permute.xlu1 %1998 }
 0x175   : >> { %2040 = vrot.lane.b32.xlu0 %v4712_v27, %s3102_s14  ;;  %2940 = vmatprep.mubr.msk.bf16.mxu1 %vm1857_vm3, %v2266_v15  ;;  %v1241_v15 = vsel %vm3602_vm9, %v1239_v5, %v1240_v60  ;;  %v2153_v30 = vsel %vm1713_vm7, %v5661_v36, %v4818_v25 }
 0x176   : >> { %2047 = vrot.lane.b32.xlu1 %v5698_v17, %s3104_s16  ;;  %v4881_v35 = vcombine.low %v1238_v29, %v1241_v15 }
 0x177   : >> { %v1704_v58 = vpop.permute.xlu0 %1703 }
 0x178   : >> { %v1970_v9 = vsel %vm5700_vm13, %v1950_v8, %v1704_v58  ;;  %v2018_v34 = vpop.permute.xlu1 %2017  ;;  %v1243_v8 = vrot.slane %v1212_v43, 6  ;;  %v1246_v58 = vrot.slane %v1222_v37, 5  ;;  %v1254_v37 = vrot.slane %v1228_v54, 6 }
 0x179   : >> { %1614 = vrot.lane.b32.xlu0 %v4438_v10, %s3109_s23  ;;  %2644 = vmatmul.mubr.bf16.gmra.mrb[4].mxu1 %v1970_v9  ;;  %vm5711_vm13 = vcmask 326656  }
 0x17a   : >> { %1462 = vrot.lane.b32.xlu1 %v4196_v11, %s3102_s14  ;;  %v1244_v43 = vor.u32 %v1243_v8, %v1242_v13  ;;  %v1255_v15 = vor.u32 %v1254_v37, %v1253_v47 }
 0x17b   : >> { %v4837_v23 = vpop.permute.xlu0 %1572 }
 0x17c   : >> { %v2037_v45 = vpop.permute.xlu1 %2036  ;;  %v1245_v60 = vrot.slane %v1244_v43, 4  ;;  %v2172_v43 = vsel %vm1738_vm8, %v2153_v30, %v2018_v34 }
 0x17d   : >> { %2059 = vrot.lane.b32.xlu0 %v4833_v56, %s3104_s16  ;;  %v2188_v36 = vsel %vm1755_vm10, %v2172_v43, %v2037_v45 }
 0x17e   : >> { %1633 = vrot.lane.b32.xlu1 %v5702_v7, %s3110_s24 }
 0x17f   : >> { %v1592_v11 = vpop.permute.xlu0 %1591 }
 0x180   : >> { %v2056_v59 = vpop.permute.xlu1 %2055 }
 0x181   : >> { %1621 = vrot.lane.b32.xlu0 %v5703_v55, %s3110_s24  ;;  %v2204_v25 = vsel %vm5710_vm4, %v2188_v36, %v2056_v59  ;;  %v1259_v59 = vrot.slane %v4753_v6, 6  ;;  %v3074_v6 = vld [vmem:[%s4202_s26 + $0x38] sm:$0xff]  }
 0x182   : >> { %2078 = vrot.lane.b32.xlu1 %v4847_v4, %s3103_s15 }
 0x183   : >> { %v1611_v61 = vpop.permute.xlu0 %1610 }
 0x184   : >> { %v1630_v20 = vpop.permute.xlu1 %1629 }
 0x185   : >> { %2066 = vrot.lane.b32.xlu0 %v5704_v2, %s3103_s15  ;;  %v5708_v2 = vld [vmem:[#allocation67_spill] sm:$0xff] }
 0x186   : >> { %1502 = vrot.lane.b32.xlu1 %v4206_v22, %s3104_s16  ;;  %v1247_v22 = vrot.slane %v1218_v53, 6  ;;  %v5706_v53 = vld [vmem:[#allocation48_spill] sm:$0xff] }
 0x187   : >> { %v4866_v24 = vpop.permute.xlu0 %1458 }
 0x188   : >> { %v4875_v46 = vpop.permute.xlu1 %1498  ;;  %v1248_v51 = vor.u32 %v1247_v22, %v1246_v58  ;;  %v5709_v58 = vld [vmem:[#allocation50_spill] sm:$0xff] }
 0x189   : >> { %1490 = vrot.lane.b32.xlu0 %v4747_v40, %s3104_s16  ;;  %v1728_v40 = vsel %vm1713_vm7, %v5698_v17, %v5707_v32 }
 0x18a   : >> { %1652 = vrot.lane.b32.xlu1 %v5705_v39, %s3112_s27  ;;  %v1250_v29 = vrot.slane %v1248_v51, 4  ;;  %v1748_v13 = vsel %vm1738_vm8, %v1728_v40, %v5708_v2 }
 0x18b   : >> { %v2075_v9 = vpop.permute.xlu0 %2074  ;;  %v1765_v54 = vsel %vm1755_vm10, %v1748_v13, %v4720_v19  ;;  %v1249_v19 = vsel %vm3961_vm15, %v1245_v60, %v1248_v51 }
 0x18c   : >> { %v2094_v50 = vpop.permute.xlu1 %2093  ;;  %v1782_v22 = vsel %vm5710_vm4, %v1765_v54, %v4735_v48  ;;  %v1256_v48 = vsel %vm3961_vm15, %v1250_v29, %v1255_v15  ;;  %v2220_v51 = vsel %vm5711_vm13, %v2204_v25, %v2075_v9  ;;  %vm5713_vm4 = vcmask 654336   ;;  %v3073_v29 = vld [vmem:[%s4202_s26 + $0x30] sm:$0xff]   ;;  %v5714_v15 = vld [vmem:[#allocation52_spill] sm:$0xff]  ;;  %v5721_v25 = vld [vmem:[#allocation53_spill] sm:$0xff] }
 0x18d   : >> { %1640 = vrot.lane.b32.xlu0 %v5706_v53, %s3112_s27  ;;  %v1799_v2 = vsel %vm5711_vm13, %v1782_v22, %v4741_v26  ;;  %v4927_v45 = vcombine.low %v1249_v19, %v1256_v48  ;;  %v2838_v54 = vrot.slane %v4750_v42, 10  ;;  %v1261_v22 = vrot.slane %v1259_v59, 4  ;;  %v5720_v48 = vld [vmem:[#allocation74_spill] sm:$0xff] }
 0x18e   : >> { %2097 = vrot.lane.b32.xlu1 %v4881_v35, %s3106_s20  ;;  %v1816_v37 = vsel %vm1806_vm14, %v1799_v2, %v4788_v49  ;;  %v5712_v49 = vld [vmem:[#allocation73_spill] sm:$0xff]  ;;  %vm5715_vm13 = vcmask 613376  }
 0x18f   : >> { %v1649_v5 = vpop.permute.xlu0 %1648  ;;  %v1833_v26 = vsel %vm1823_vm0, %v1816_v37, %v4797_v1  ;;  %v2236_v1 = vsel %vm1806_vm14, %v2220_v51, %v2094_v50  ;;  %2991 = vmatprep.mubr.msk.bf16.mxu0 %vm5715_vm13, %v3073_v29 }
 0x190   : >> { %v1668_v8 = vpop.permute.xlu1 %1667  ;;  %v1850_v34 = vsel %vm1840_vm1, %v1833_v26, %v4837_v23 }
 0x191   : >> { %2085 = vrot.lane.b32.xlu0 %v5709_v58, %s3106_s20  ;;  %v1867_v32 = vsel %vm1857_vm3, %v1850_v34, %v1592_v11 }
 0x192   : >> { %1521 = vrot.lane.b32.xlu1 %v4438_v10, %s3103_s15 }
 0x193   : >> { %v4906_v47 = vpop.permute.xlu0 %1517 }
 0x194   : >> { %v4915_v10 = vpop.permute.xlu1 %1536 }
 0x195   : >> { %1509 = vrot.lane.b32.xlu0 %v5696_v63, %s3103_s15  ;;  %v1884_v63 = vsel %vm5713_vm4, %v1867_v32, %v1611_v61  ;;  %vm5716_vm4 = vcmask 916480   ;;  %v5722_v32 = vld [vmem:[#allocation59_spill] sm:$0xff] }
 0x196   : >> { %1671 = vrot.lane.b32.xlu1 %v5712_v49, %s3113_s28  ;;  %v1901_v9 = vsel %vm5512_vm6, %v1884_v63, %v1630_v20  ;;  %v1262_v20 = vrot.slane %v4800_v52, 6  ;;  %vm5719_vm6 = vcmask 982016   ;;  %v1260_v52 = vsel %vm4024_vm2, %v2838_v54, %v1259_v59  ;;  %v5723_v63 = vld [vmem:[#allocation65_spill] sm:$0xff] }
 0x197   : >> { %v2113_v40 = vpop.permute.xlu0 %2112  ;;  %v1918_v11 = vsel %vm5511_vm5, %v1901_v9, %v1649_v5  ;;  %vm5717_vm5 = vmmov %vm5715_vm13  ;;  %v5718_v5 = vld [vmem:[#allocation57_spill] sm:$0xff] }
 0x198   : >> { %v2252_v60 = vsel %vm1823_vm0, %v2236_v1, %v2113_v40  ;;  %v2132_v23 = vpop.permute.xlu1 %2131  ;;  %v1935_v61 = vsel %vm1925_vm11, %v1918_v11, %v1668_v8  ;;  %2992 = vmatmul.mubr.msk.bf16.gmra.mrb[12].mxu0 %vm5717_vm5, %v3074_v6  ;;  %v1263_v8 = vsel %vm4024_vm2, %v1261_v22, %v1262_v20  ;;  %vm5726_vm5 = vcmask 261120   ;;  %v5003_v6 = vld [vmem:[%s3606_s11 + $0x84] sm:$0xf] }
 0x199   : >> { %1659 = vrot.lane.b32.xlu0 %v5714_v15, %s3113_s28  ;;  %v2268_v13 = vsel %vm1840_vm1, %v2252_v60, %v2132_v23  ;;  %v4967_v37 = vcombine.low %v1260_v52, %v1263_v8  ;;  %v5724_v60 = vld [vmem:[#allocation60_spill] sm:$0xff]  ;;  %v5725_v23 = vld [vmem:[#allocation69_spill] sm:$0xff]  ;;  %vm5733_vm13 = vmmov %vm5726_vm5 }
 0x19a   : >> { %2116 = vrot.lane.b32.xlu1 %v4927_v45, %s3105_s17  ;;  %2941 = vmatprep.mubr.msk.bf16.mxu1 %vm1857_vm3, %v2268_v13  ;;  %v5729_v8 = vld [vmem:[#allocation45_spill] sm:$0xff] }
 0x19b   : >> { %v1687_v50 = vpop.permute.xlu0 %1686 }
 0x19c   : >> { %v1952_v30 = vsel %vm5716_vm4, %v1935_v61, %v1687_v50  ;;  %v1706_v2 = vpop.permute.xlu1 %1705  ;;  %v5727_v61 = vld [vmem:[#allocation76_spill] sm:$0xff]  ;;  %v5728_v50 = vld [vmem:[#allocation77_spill] sm:$0xff] }
 0x19d   : >> { %2104 = vrot.lane.b32.xlu0 %v5718_v5, %s3105_s17  ;;  %v1973_v43 = vsel %vm5719_vm6, %v1952_v30, %v1706_v2  ;;  %v2841_v54 = vcombine.low %v5728_v50, %v5727_v61  ;;  %v5516_v30 = vshrl.u32 %v5003_v6, 16  ;;  %v5513_v2 = vshll.u32 %v5003_v6, 16 }
 0x19e   : >> { %1540 = vrot.lane.b32.xlu1 %v5702_v7, %s3106_s20  ;;  %2652 = vmatmul.mubr.bf16.gmra.mrb[8].mxu1 %v1973_v43  ;;  %vm5731_vm6 = vcmask 326656  }
 0x19f   : >> { %v4955_v42 = vpop.permute.xlu0 %1555  ;;  %vm5734_vm4 = vmmov %vm5731_vm6 }
 0x1a0   : >> { %v4961_v19 = vpop.permute.xlu1 %1574 }
 0x1a1   : >> { %1528 = vrot.lane.b32.xlu0 %v5703_v55, %s3106_s20 }
 0x1a2   : >> { %1690 = vrot.lane.b32.xlu1 %v5720_v48, %s3114_s29 }
 0x1a3   : >> { %v2001_v36 = vpop.permute.xlu0 %2000 }
 0x1a4   : >> { %v4969_v26 = vpop.permute.xlu1 %1593 }
 0x1a5   : >> { %1678 = vrot.lane.b32.xlu0 %v5721_v25, %s3114_s29 }
 0x1a6   : >> { %2135 = vrot.lane.b32.xlu1 %v4967_v37, %s3107_s21 }
 0x1a7   : >> { %v2020_v34 = vpop.permute.xlu0 %2019 }
 0x1a8   : >> { %v4975_v51 = vpop.permute.xlu1 %1612 }
 0x1a9   : >> { %2123 = vrot.lane.b32.xlu0 %v5722_v32, %s3107_s21 }
 0x1aa   : >> { %1559 = vrot.lane.b32.xlu1 %v5705_v39, %s3105_s17  ;;  %v1734_v39 = vsel %vm1713_vm7, %v5724_v60, %v5723_v63 }
 0x1ab   : >> { %v2039_v55 = vpop.permute.xlu0 %2038 }
 0x1ac   : >> { %v1461_v1 = vpop.permute.xlu1 %1460  ;;  %v5018_v52 = vpop.f32.mrb[0].mxu0 }
 0x1ad   : >> { %1547 = vrot.lane.b32.xlu0 %v5706_v53, %s3105_s17  ;;  %v1752_v53 = vsel %vm1738_vm8, %v1734_v39, %v5725_v23  ;;  %v1267_v39 = vrot.slane %v5516_v30, 4  ;;  %v1270_v23 = vrot.slane %v5513_v2, 5  ;;  %v5050_v2 = vld [vmem:[%s3606_s11 + $0x8c] sm:$0x3] }
 0x1ae   : >> { %1709 = vrot.lane.b32.xlu1 %v4600_v18, %s3116_s30  ;;  %v1769_v9 = vsel %vm1755_vm10, %v1752_v53, %v1461_v1  ;;  %v5024_v1 = vpop.f32.mrb[1].mxu0  ;;  %v1318_v38 = vrot.slane %v5050_v2, 6 }
 0x1af   : >> { %v2058_v40 = vpop.permute.xlu0 %2057  ;;  %v5028_v60 = vpop.f32.mrb[2].mxu0 }
 0x1b0   : >> { %v4985_v59 = vpop.permute.xlu1 %2076  ;;  %v5034_v53 = vpop.f32.mrb[3].mxu0 }
 0x1b1   : >> { %1697 = vrot.lane.b32.xlu0 %v4019_v21, %s3116_s30 }
 0x1b2   : >> { %2004 = vrot.lane.b32.xlu1 %v4881_v35, %s3101_s13  ;;  %v5010_v35 = vld [vmem:[%s3606_s11 + $0x88] sm:$0xf] }
 0x1b3   : >> { %v4996_v29 = vpop.permute.xlu0 %1631  ;;  %v5515_v43 = vshrl.u32 %v5010_v35, 16 }
 0x1b4   : >> { %v1501_v13 = vpop.permute.xlu1 %1500  ;;  %v5057_v30 = vpop.f32.mrb[4].mxu0 }
 0x1b5   : >> { %1992 = vrot.lane.b32.xlu0 %v5709_v58, %s3101_s13  ;;  %v1786_v11 = vsel %vm5726_vm5, %v1769_v9, %v1501_v13  ;;  %v5514_v58 = vshll.u32 %v5010_v35, 16  ;;  %v5730_v9 = vld [vmem:[#allocation47_spill] sm:$0xff]  ;;  %v1280_v50 = vrot.slane %v5515_v43, 4  ;;  %v1284_v43 = vshll.u32 %v5050_v2, 16 }
 0x1b6   : >> { %1578 = vrot.lane.b32.xlu1 %v5712_v49, %s3107_s21  ;;  %v1716_v49 = vsel %vm1713_vm7, %v2841_v54, %v5729_v8  ;;  %v5732_v54 = vld [vmem:[#allocation70_spill] sm:$0xff] }
 0x1b7   : >> { %v1489_v22 = vpop.permute.xlu0 %1488  ;;  %v1740_v13 = vsel %vm1738_vm8, %v1716_v49, %v5730_v9  ;;  %v1276_v61 = vrot.slane %v5514_v58, 5 }
 0x1b8   : >> { %v2096_v20 = vpop.permute.xlu1 %2095  ;;  %v1757_v8 = vsel %vm1755_vm10, %v1740_v13, %v5732_v54 }
 0x1b9   : >> { %1566 = vrot.lane.b32.xlu0 %v5714_v15, %s3107_s21  ;;  %v1774_v49 = vsel %vm5733_vm13, %v1757_v8, %v1489_v22  ;;  %v1281_v58 = vor.u32 %v1280_v50, %v1276_v61  ;;  %v5063_v22 = vpop.f32.mrb[5].mxu0  ;;  %vm5739_vm13 = vmmov %vm5726_vm5 }
 0x1ba   : >> { %2023 = vrot.lane.b32.xlu1 %v4927_v45, %s3100_s12 }
 0x1bb   : >> { %v5026_v63 = vpop.permute.xlu0 %1650 }
 0x1bc   : >> { %v1520_v15 = vpop.permute.xlu1 %1519 }
 0x1bd   : >> { %2011 = vrot.lane.b32.xlu0 %v5718_v5, %s3100_s12  ;;  %v1803_v45 = vsel %vm5731_vm6, %v1786_v11, %v1520_v15  ;;  %v1271_v15 = vor.u32 %v1270_v23, %v1267_v39  ;;  %v5066_v39 = vpop.f32.mrb[6].mxu0  ;;  %vm5737_vm6 = vmmov %vm5734_vm4 }
 0x1be   : >> { %1597 = vrot.lane.b32.xlu1 %v5720_v48, %s3108_s22  ;;  %v2156_v48 = vsel %vm1713_vm7, %v5702_v7, %v2001_v36  ;;  %v5069_v8 = vpop.f32.mrb[7].mxu0  ;;  %v1286_v36 = vrot.slane %v1284_v43, 5 }
 0x1bf   : >> { %v1508_v9 = vpop.permute.xlu0 %1507  ;;  %v2174_v13 = vsel %vm1738_vm8, %v2156_v48, %v2020_v34  ;;  %v1272_v50 = vrot.slane %v1271_v15, 4  ;;  %v5735_v34 = vld [vmem:[#allocation62_spill] sm:$0xff] }
 0x1c0   : >> { %v1791_v5 = vsel %vm5734_vm4, %v1774_v49, %v1508_v9  ;;  %v2115_v11 = vpop.permute.xlu1 %2114  ;;  %v5736_v9 = vld [vmem:[#allocation58_spill] sm:$0xff] }
 0x1c1   : >> { %1585 = vrot.lane.b32.xlu0 %v5721_v25, %s3108_s22  ;;  %v2190_v25 = vsel %vm1755_vm10, %v2174_v13, %v2039_v55  ;;  %v1731_v48 = vsel %vm1713_vm7, %v5736_v9, %v5735_v34 }
 0x1c2   : >> { %2042 = vrot.lane.b32.xlu1 %v4967_v37, %s3102_s14  ;;  %v2206_v49 = vsel %vm5726_vm5, %v2190_v25, %v2058_v40  ;;  %v1282_v37 = vrot.slane %v1281_v58, 4  ;;  %v2896_v40 = vcombine.low %v5003_v6, %v5010_v35  ;;  %vm5745_vm5 = vcmask 719872  }
 0x1c3   : >> { %v1670_v54 = vpop.permute.xlu0 %1669  ;;  %v2222_v55 = vsel %vm5737_vm6, %v2206_v49, %v4985_v59  ;;  %vm5746_vm6 = vcmask 785408  }
 0x1c4   : >> { %v1539_v23 = vpop.permute.xlu1 %1538  ;;  %v2238_v58 = vsel %vm1806_vm14, %v2222_v55, %v2096_v20  ;;  %v1287_v34 = vsel %vm3676_vm12, %v1282_v37, %v1286_v36  ;;  %v2839_v37 = vrot.slane %v5003_v6, 9  ;;  %v5741_v55 = vshll.u32 %v5003_v6, 16 }
 0x1c5   : >> { %2030 = vrot.lane.b32.xlu0 %v5722_v32, %s3102_s14  ;;  %v1820_v7 = vsel %vm1806_vm14, %v1803_v45, %v1539_v23  ;;  %v5738_v32 = vld [vmem:[#allocation66_spill] sm:$0xff]  ;;  %v2254_v25 = vsel %vm1823_vm0, %v2238_v58, %v2115_v11 }
 0x1c6   : >> { %1616 = vrot.lane.b32.xlu1 %v4600_v18, %s3109_s23  ;;  %v1750_v45 = vsel %vm1738_vm8, %v1731_v48, %v5738_v32  ;;  %v1277_v18 = vsel %vm3676_vm12, %v1272_v50, %v1276_v61  ;;  %v5740_v48 = vshrl.u32 %v5003_v6, 16  ;;  %vm5742_vm12 = vcmask 654336  }
 0x1c7   : >> { %v1527_v15 = vpop.permute.xlu0 %1526  ;;  %v1767_v13 = vsel %vm1755_vm10, %v1750_v45, %v4866_v24  ;;  %v1293_v24 = vrot.slane %v5010_v35, 5  ;;  %v2897_v50 = vcombine.low %v1277_v18, %v1287_v34  ;;  %v5743_v32 = vshrl.u32 %v5010_v35, 16 }
 0x1c8   : >> { %v1808_v23 = vsel %vm1806_vm14, %v1791_v5, %v1527_v15  ;;  %v2134_v59 = vpop.permute.xlu1 %2133  ;;  %v1784_v49 = vsel %vm5739_vm13, %v1767_v13, %v4875_v46  ;;  %v1307_v15 = vshrl.u32 %v5050_v2, 16  ;;  %vm5748_vm13 = vcmask 916480  }
 0x1c9   : >> { %1604 = vrot.lane.b32.xlu0 %v4019_v21, %s3109_s23  ;;  %v2270_v20 = vsel %vm1840_vm1, %v2254_v25, %v2134_v59  ;;  %v1801_v5 = vsel %vm5734_vm4, %v1784_v49, %v4906_v47  ;;  %v1295_v36 = vrot.slane %v1293_v24, 4  ;;  %v1302_v45 = vrot.slane %v5743_v32, 5 }
 0x1ca   : >> { %2061 = vrot.lane.b32.xlu1 %v2896_v40, %s3104_s16  ;;  %2942 = vmatprep.mubr.msk.bf16.mxu1 %vm1857_vm3, %v2270_v20  ;;  %v1818_v46 = vsel %vm1806_vm14, %v1801_v5, %v4915_v10  ;;  %v1294_v20 = vsel %vm3602_vm9, %v2839_v37, %v1293_v24  ;;  %vm5749_vm4 = vcmask 982016  }
 0x1cb   : >> { %v1689_v61 = vpop.permute.xlu0 %1688  ;;  %v1835_v21 = vsel %vm1823_vm0, %v1818_v46, %v4955_v42  ;;  %v1296_v42 = vrot.slane %v5050_v2, 5 }
 0x1cc   : >> { %v1558_v11 = vpop.permute.xlu1 %1557  ;;  %v1852_v44 = vsel %vm1840_vm1, %v1835_v21, %v4961_v19  ;;  %v1298_v19 = vrot.slane %v5740_v48, 5  ;;  %v1309_v21 = vrot.slane %v1307_v15, 5  ;;  %v5750_v48 = vld [vmem:[#allocation49_spill] sm:$0xff]  ;;  %v5752_v15 = vld [vmem:[#allocation56_spill] sm:$0xff] }
 0x1cd   : >> { %2049 = vrot.lane.b32.xlu0 %v5736_v9, %s3104_s16  ;;  %v5116_v47 = vsel %vm1823_vm0, %v1820_v7, %v1558_v11  ;;  %v1869_v10 = vsel %vm1857_vm3, %v1852_v44, %v4969_v26  ;;  %v1299_v9 = vrot.slane %v5741_v55, 6  ;;  %v5744_v26 = vshll.u32 %v5010_v35, 16 }
 0x1ce   : >> { %1635 = vrot.lane.b32.xlu1 %v4616_v28, %s3110_s24  ;;  %v1886_v7 = vsel %vm5742_vm12, %v1869_v10, %v4975_v51  ;;  %v5747_v51 = vld [vmem:[#allocation43_spill] sm:$0xff]  ;;  %v1315_v10 = vrot.slane %v5010_v35, 6 }
 0x1cf   : >> { %v1546_v40 = vpop.permute.xlu0 %1545  ;;  %v1303_v58 = vrot.slane %v5744_v26, 6  ;;  %v1903_v13 = vsel %vm5745_vm5, %v1886_v7, %v4996_v29  ;;  %v1297_v29 = vsel %vm3602_vm9, %v1295_v36, %v1296_v42  ;;  %v1300_v34 = vor.u32 %v1299_v9, %v1298_v19 }
 0x1d0   : >> { %v1825_v25 = vsel %vm1823_vm0, %v1808_v23, %v1546_v40  ;;  %v5138_v59 = vpop.permute.xlu1 %1990  ;;  %v1920_v18 = vsel %vm5746_vm6, %v1903_v13, %v5026_v63  ;;  %v1310_v63 = vrot.slane %v1284_v43, 6  ;;  %v2898_v14 = vcombine.low %v1294_v20, %v1297_v29  ;;  %v5753_v29 = vld [vmem:[#allocation64_spill] sm:$0xff] }
 0x1d1   : >> { %1623 = vrot.lane.b32.xlu0 %v5747_v51, %s3110_s24  ;;  %v1937_v49 = vsel %vm1925_vm11, %v1920_v18, %v1670_v54  ;;  %v1304_v46 = vor.u32 %v1303_v58, %v1302_v45  ;;  %v2840_v9 = vrot.slane %v5003_v6, 10  ;;  %v1317_v7 = vrot.slane %v1315_v10, 4  ;;  %v5751_v6 = vld [vmem:[#allocation55_spill] sm:$0xff] }
 0x1d2   : >> { %2080 = vrot.lane.b32.xlu1 %v2897_v50, %s3103_s15  ;;  %v1954_v23 = vsel %vm5748_vm13, %v1937_v49, %v1689_v61  ;;  %v1301_v50 = vrot.slane %v1300_v34, 4  ;;  %v1311_v37 = vor.u32 %v1310_v63, %v1309_v21  ;;  %v1737_v34 = vsel %vm1713_vm7, %v4151_v57, %v5753_v29 }
 0x1d3   : >> { %v1708_v5 = vpop.permute.xlu0 %1707  ;;  %v1306_v44 = vrot.slane %v1304_v46, 4  ;;  %v1316_v32 = vsel %vm4024_vm2, %v2840_v9, %v1315_v10  ;;  %vm5755_vm9 = vcmask 261120  }
 0x1d4   : >> { %v1976_v11 = vsel %vm5749_vm4, %v1954_v23, %v1708_v5  ;;  %v1565_v54 = vpop.permute.xlu1 %1564  ;;  %v1305_v43 = vsel %vm3961_vm15, %v1301_v50, %v1304_v46  ;;  %v5756_v50 = vld [vmem:[#allocation51_spill] sm:$0xff] }
 0x1d5   : >> { %2068 = vrot.lane.b32.xlu0 %v5665_v16, %s3103_s15  ;;  %2660 = vmatmul.mubr.bf16.gmra.mrb[12].mxu1 %v1976_v11  ;;  %v1842_v24 = vsel %vm1840_vm1, %v1825_v25, %v1565_v54  ;;  %v1719_v57 = vsel %vm1713_vm7, %v4690_v0, %v5756_v50 }
 0x1d6   : >> { %1654 = vrot.lane.b32.xlu1 %v4658_v31, %s3112_s27  ;;  %v1312_v31 = vsel %vm3961_vm15, %v1306_v44, %v1311_v37  ;;  %vm5758_vm15 = vcmask 326656  }
 0x1d7   : >> { %v5159_v61 = vpop.permute.xlu0 %2002  ;;  %vm5761_vm12 = vmmov %vm5758_vm15 }
 0x1d8   : >> { %v5161_v36 = vpop.permute.xlu1 %2009  ;;  %vm5763_vm6 = vmmov %vm5761_vm12 }
 0x1d9   : >> { %1642 = vrot.lane.b32.xlu0 %v3893_v33, %s3112_s27  ;;  %v2899_v33 = vcombine.low %v1305_v43, %v1312_v31  ;;  %v5757_v43 = vld [vmem:[#allocation61_spill] sm:$0xff]  ;;  %vm5765_vm4 = vmmov %vm5763_vm6 }
 0x1da   : >> { %2099 = vrot.lane.b32.xlu1 %v2898_v14, %s3106_s20  ;;  %v1742_v31 = vsel %vm1738_vm8, %v1719_v57, %v5757_v43 }
 0x1db   : >> { %v5166_v16 = vpop.permute.xlu0 %1576 }
 0x1dc   : >> { %v1584_v42 = vpop.permute.xlu1 %1583 }
 0x1dd   : >> { %2087 = vrot.lane.b32.xlu0 %v5750_v48, %s3106_s20  ;;  %v5176_v19 = vsel %vm1857_vm3, %v1842_v24, %v1584_v42  ;;  %v5212_v18 = vpop.f32.mrb[8].mxu0  ;;  %v5759_v42 = vld [vmem:[#allocation39_spill] sm:$0xff] }
 0x1de   : >> { %1673 = vrot.lane.b32.xlu1 %v4686_v3, %s3113_s28  ;;  %v1319_v3 = vsel %vm4024_vm2, %v1317_v7, %v1318_v38  ;;  %v5214_v49 = vpop.f32.mrb[9].mxu0  ;;  %v1759_v48 = vsel %vm1755_vm10, %v1742_v31, %v5759_v42  ;;  %vm5760_vm2 = vmmov %vm5755_vm9  ;;  %v5772_v42 = vld [vmem:[#allocation38_spill] sm:$0xff] }
 0x1df   : >> { %v2022_v55 = vpop.permute.xlu0 %2021  ;;  %v2900_v2 = vcombine.low %v1316_v32, %v1319_v3  ;;  %v5216_v20 = vpop.f32.mrb[10].mxu0  ;;  %vm5762_vm5 = vmmov %vm5760_vm2 }
 0x1e0   : >> { %v5182_v40 = vpop.permute.xlu1 %2028  ;;  %v5221_v23 = vpop.f32.mrb[11].mxu0  ;;  %vm5764_vm13 = vmmov %vm5760_vm2 }
 0x1e1   : >> { %1661 = vrot.lane.b32.xlu0 %v4034_v62, %s3113_s28 }
 0x1e2   : >> { %2118 = vrot.lane.b32.xlu1 %v2899_v33, %s3105_s17 }
 0x1e3   : >> { %v5187_v35 = vpop.permute.xlu0 %1595 }
 0x1e4   : >> { %v5193_v45 = vpop.permute.xlu1 %1602 }
 0x1e5   : >> { %2106 = vrot.lane.b32.xlu0 %v5751_v6, %s3105_s17 }
 0x1e6   : >> { %1692 = vrot.lane.b32.xlu1 %v4712_v27, %s3114_s29 }
 0x1e7   : >> { %v2041_v62 = vpop.permute.xlu0 %2040 }
 0x1e8   : >> { %v2048_v26 = vpop.permute.xlu1 %2047 }
 0x1e9   : >> { %1680 = vrot.lane.b32.xlu0 %v4066_v41, %s3114_s29 }
 0x1ea   : >> { %2137 = vrot.lane.b32.xlu1 %v2900_v2, %s3107_s21 }
 0x1eb   : >> { %v5202_v58 = vpop.permute.xlu0 %1614 }
 0x1ec   : >> { %v1463_v12 = vpop.permute.xlu1 %1462 }
 0x1ed   : >> { %2125 = vrot.lane.b32.xlu0 %v5752_v15, %s3107_s21 }
 0x1ee   : >> { %1711 = vrot.lane.b32.xlu1 %v4833_v56, %s3116_s30  ;;  %v5754_v56 = vld [vmem:[#allocation68_spill] sm:$0xff] }
 0x1ef   : >> { %v2060_v13 = vpop.permute.xlu0 %2059  ;;  %v1754_v5 = vsel %vm1738_vm8, %v1737_v34, %v5754_v56 }
 0x1f0   : >> { %v1634_v25 = vpop.permute.xlu1 %1633 }
 0x1f1   : >> { %1699 = vrot.lane.b32.xlu0 %v5698_v17, %s3116_s30  ;;  %v1771_v17 = vsel %vm1755_vm10, %v1754_v5, %v1463_v12  ;;  %v2159_v12 = vsel %vm1713_vm7, %v4616_v28, %v5159_v61 }
 0x1f2   : >> { %v2176_v15 = vsel %vm1738_vm8, %v2159_v12, %v2022_v55 }
 0x1f3   : >> { %v5210_v27 = vpop.permute.xlu0 %1621  ;;  %v2192_v34 = vsel %vm1755_vm10, %v2176_v15, %v2041_v62 }
 0x1f4   : >> { %v2079_v41 = vpop.permute.xlu1 %2078 }
 0x1f7   : >> { %v2067_v46 = vpop.permute.xlu0 %2066 }
 0x1f8   : >> { %v1503_v21 = vpop.permute.xlu1 %1502 }
 0x1f9   : >> { %v1788_v63 = vsel %vm5755_vm9, %v1771_v17, %v1503_v21  ;;  %v2141_v17 = vsel %vm1713_vm7, %v5747_v51, %v5138_v59  ;;  %v2208_v21 = vsel %vm5762_vm5, %v2192_v34, %v2060_v13  ;;  %vm5766_vm9 = vcmask 654336  }
 0x1fa   : >> { %v2224_v28 = vsel %vm5763_vm6, %v2208_v21, %v2079_v41  ;;  %vm2708_vm5 = vcmask 97280  }
 0x1fb   : >> { %v1491_v11 = vpop.permute.xlu0 %1490 }
 0x1fc   : >> { %v1653_v54 = vpop.permute.xlu1 %1652  ;;  %v1776_v33 = vsel %vm5760_vm2, %v1759_v48, %v1491_v11  ;;  %vm5768_vm2 = vcmask 785408  }
 0x1ff   : >> { %v5227_v24 = vpop.permute.xlu0 %1640 }
 0x200   : >> { %v2098_v14 = vpop.permute.xlu1 %2097 }
 0x201   : >> { %v2240_v55 = vsel %vm1806_vm14, %v2224_v28, %v2098_v14 }
 0x203   : >> { %v2086_v44 = vpop.permute.xlu0 %2085 }
 0x204   : >> { %v1522_v37 = vpop.permute.xlu1 %1521 }
 0x205   : >> { %v1805_v10 = vsel %vm5758_vm15, %v1788_v63, %v1522_v37  ;;  %v2164_v63 = vsel %vm1738_vm8, %v2141_v17, %v5161_v36  ;;  %v1854_v36 = vsel %vm1840_vm1, %v5116_v47, %v5166_v16  ;;  %vm5767_vm15 = vcmask 719872  }
 0x206   : >> { %v2180_v61 = vsel %vm1755_vm10, %v2164_v63, %v5182_v40  ;;  %v1871_v40 = vsel %vm1857_vm3, %v1854_v36, %v5187_v35  ;;  %vm5770_vm6 = vmmov %vm5767_vm15 }
 0x207   : >> { %v1510_v9 = vpop.permute.xlu0 %1509  ;;  %v2196_v11 = vsel %vm5764_vm13, %v2180_v61, %v2048_v26  ;;  %vm5771_vm13 = vcmask 916480  }
 0x208   : >> { %v1793_v7 = vsel %vm5761_vm12, %v1776_v33, %v1510_v9  ;;  %v1672_v38 = vpop.permute.xlu1 %1671  ;;  %v2212_v59 = vsel %vm5765_vm4, %v2196_v11, %v2067_v46  ;;  %v1888_v46 = vsel %vm5766_vm9, %v1871_v40, %v5202_v58  ;;  %vm5769_vm12 = vmmov %vm5766_vm9  ;;  %vm5774_vm9 = vcmask 982016  }
 0x209   : >> { %v2228_v13 = vsel %vm1806_vm14, %v2212_v59, %v2086_v44  ;;  %v1905_v47 = vsel %vm5767_vm15, %v1888_v46, %v1634_v25  ;;  %v1876_v31 = vsel %vm5769_vm12, %v5176_v19, %v5193_v45  ;;  %vm5773_vm4 = vmmov %vm5768_vm2  ;;  %vm5778_vm12 = vcmask 261120  }
 0x20a   : >> { %v1922_v44 = vsel %vm5768_vm2, %v1905_v47, %v1653_v54  ;;  %v1893_v54 = vsel %vm5770_vm6, %v1876_v31, %v5210_v27  ;;  %vm5775_vm15 = vmmov %vm5771_vm13  ;;  %vm5779_vm6 = vcmask 326656  }
 0x20b   : >> { %v1660_v32 = vpop.permute.xlu0 %1659  ;;  %v1939_v58 = vsel %vm1925_vm11, %v1922_v44, %v1672_v38  ;;  %v1910_v9 = vsel %vm5773_vm4, %v1893_v54, %v5227_v24  ;;  %vm5776_vm2 = vmmov %vm5774_vm9 }
 0x20c   : >> { %v2117_v3 = vpop.permute.xlu1 %2116  ;;  %v1927_v38 = vsel %vm1925_vm11, %v1910_v9, %v1660_v32  ;;  %vm5783_vm4 = vmmov %vm5779_vm6 }
 0x20d   : >> { %v2256_v50 = vsel %vm1823_vm0, %v2240_v55, %v2117_v3 }
 0x20f   : >> { %v2105_v6 = vpop.permute.xlu0 %2104 }
 0x210   : >> { %v1541_v0 = vpop.permute.xlu1 %1540  ;;  %v2244_v26 = vsel %vm1823_vm0, %v2228_v13, %v2105_v6 }
 0x211   : >> { %v5240_v2 = vsel %vm1806_vm14, %v1805_v10, %v1541_v0 }
 0x213   : >> { %v1529_v29 = vpop.permute.xlu0 %1528 }
 0x214   : >> { %v5248_v56 = vsel %vm1806_vm14, %v1793_v7, %v1529_v29  ;;  %v1691_v5 = vpop.permute.xlu1 %1690 }
 0x217   : >> { %v1679_v62 = vpop.permute.xlu0 %1678 }
 0x218   : >> { %v2136_v57 = vpop.permute.xlu1 %2135  ;;  %v1944_v27 = vsel %vm5775_vm15, %v1927_v38, %v1679_v62 }
 0x219   : >> { %v2272_v51 = vsel %vm1840_vm1, %v2256_v50, %v2136_v57 }
 0x21a   : >> { %2943 = vmatprep.mubr.msk.bf16.mxu1 %vm1857_vm3, %v2272_v51 }
 0x21b   : >> { %v2124_v41 = vpop.permute.xlu0 %2123 }
 0x21c   : >> { %v2260_v14 = vsel %vm1840_vm1, %v2244_v26, %v2124_v41  ;;  %v5275_v37 = vpop.permute.xlu1 %1559 }
 0x21d   : >> { %2937 = vmatprep.mubr.msk.bf16.mxu0 %vm1857_vm3, %v2260_v14  ;;  %v2637_v16 = vpop.f32.mrb[0].mxu1 }
 0x21e   : >> { %v2638_v35 = vadd.f32 %v2637_v16, %v5063_v22  ;;  %v2639_v43 = vpop.f32.mrb[1].mxu1  ;;  %v1956_v22 = vsel %vm5771_vm13, %v1939_v58, %v1691_v5  ;;  %vm5781_vm13 = vmmov %vm5778_vm12 }
 0x21f   : >> { %v5286_v10 = vpop.permute.xlu0 %1547  ;;  %v2640_v25 = vpop.f32.mrb[2].mxu1 }
 0x220   : >> { %v2694_v48 = vadd.f32 %v5772_v42, %v2638_v35  ;;  %v2641_v33 = vadd.f32 %v2640_v25, %v5069_v8  ;;  %v1710_v19 = vpop.permute.xlu1 %1709  ;;  %v2642_v45 = vpop.f32.mrb[3].mxu1 }
 0x221   : >> { %v1979_v7 = vsel %vm5774_vm9, %v1956_v22, %v1710_v19  ;;  %v1839_v22 = vsel %vm1823_vm0, %v5240_v2, %v5275_v37  ;;  %v1827_v2 = vsel %vm1823_vm0, %v5248_v56, %v5286_v10 }
 0x222   : >> { %2713 = vst.msk [vmem:[%s5289_s7 + $0x20] sm:$0xff] %vm2708_vm5, %v2694_v48  ;;  %v2695_v3 = vadd.f32 %v5772_v42, %v2641_v33  ;;  %2668 = vmatmul.mubr.bf16.gmra.mrb[16].mxu1 %v1979_v7  ;;  %v5777_v48 = vld [vmem:[#allocation46_spill] sm:$0xff] }
 0x223   : >> { %v1698_v6 = vpop.permute.xlu0 %1697 }
 0x224   : >> { %2714 = vst.msk [vmem:[%s5289_s7 + $0x28] sm:$0xff] %vm2708_vm5, %v2695_v3  ;;  %v1961_v8 = vsel %vm5776_vm2, %v1944_v27, %v1698_v6  ;;  %v2005_v0 = vpop.permute.xlu1 %2004  ;;  %vm5787_vm2 = vcmask 916480  }
 0x225   : >> { %2620 = vmatmul.mubr.bf16.vlgmr.msra.gmra.mrb[16].mxu0 %v1961_v8 }
 0x227   : >> { %v1993_v12 = vpop.permute.xlu0 %1992 }
 0x228   : >> { %v1579_v24 = vpop.permute.xlu1 %1578  ;;  %v2144_v33 = vsel %vm1713_vm7, %v5777_v48, %v1993_v12 }
 0x229   : >> { %v1856_v45 = vsel %vm1840_vm1, %v1839_v22, %v1579_v24 }
 0x22b   : >> { %v1567_v15 = vpop.permute.xlu0 %1566 }
 0x22c   : >> { %v2024_v29 = vpop.permute.xlu1 %2023  ;;  %v1844_v12 = vsel %vm1840_vm1, %v1827_v2, %v1567_v15 }
 0x22f   : >> { %v2012_v34 = vpop.permute.xlu0 %2011 }
 0x230   : >> { %v1598_v32 = vpop.permute.xlu1 %1597  ;;  %v2166_v9 = vsel %vm1738_vm8, %v2144_v33, %v2012_v34 }
 0x231   : >> { %v1873_v7 = vsel %vm1857_vm3, %v1856_v45, %v1598_v32 }
 0x233   : >> { %v1586_v5 = vpop.permute.xlu0 %1585 }
 0x234   : >> { %v2043_v17 = vpop.permute.xlu1 %2042  ;;  %v1861_v32 = vsel %vm1857_vm3, %v1844_v12, %v1586_v5 }
 0x237   : >> { %v2031_v21 = vpop.permute.xlu0 %2030 }
 0x238   : >> { %v1617_v63 = vpop.permute.xlu1 %1616  ;;  %v2182_v38 = vsel %vm1755_vm10, %v2166_v9, %v2031_v21 }
 0x23b   : >> { %v1605_v28 = vpop.permute.xlu0 %1604 }
 0x23c   : >> { %v2062_v61 = vpop.permute.xlu1 %2061 }
 0x23f   : >> { %v2050_v55 = vpop.permute.xlu0 %2049 }
 0x240   : >> { %v1636_v62 = vpop.permute.xlu1 %1635  ;;  %v2198_v6 = vsel %vm5781_vm13, %v2182_v38, %v2050_v55 }
 0x243   : >> { %v1624_v11 = vpop.permute.xlu0 %1623 }
 0x244   : >> { %v2081_v50 = vpop.permute.xlu1 %2080 }
 0x247   : >> { %v2069_v57 = vpop.permute.xlu0 %2068 }
 0x248   : >> { %v1655_v59 = vpop.permute.xlu1 %1654 }
 0x24b   : >> { %v1643_v51 = vpop.permute.xlu0 %1642 }
 0x24c   : >> { %v2645_v36 = vpop.f32.mrb[4].mxu1  ;;  %v2100_v13 = vpop.permute.xlu1 %2099 }
 0x24d   : >> { %v2646_v40 = vadd.f32 %v5057_v30, %v2645_v36  ;;  %v2647_v26 = vpop.f32.mrb[5].mxu1  ;;  %v2162_v30 = vsel %vm1713_vm7, %v4847_v4, %v2005_v0  ;;  %vm5780_vm7 = vcmask 654336  }
 0x24e   : >> { %v2648_v41 = vpop.f32.mrb[6].mxu1  ;;  %v2178_v58 = vsel %vm1738_vm8, %v2162_v30, %v2024_v29  ;;  %v1890_v37 = vsel %vm5780_vm7, %v1873_v7, %v1617_v63  ;;  %vm5782_vm8 = vcmask 719872   ;;  %v2214_v29 = vsel %vm5783_vm4, %v2198_v6, %v2069_v57  ;;  %vm5785_vm9 = vmmov %vm5780_vm7 }
 0x24f   : >> { %v2696_v46 = vadd.f32 %v5772_v42, %v2646_v40  ;;  %v2649_v14 = vadd.f32 %v5066_v39, %v2648_v41  ;;  %v2650_v47 = vpop.f32.mrb[7].mxu1  ;;  %v2088_v16 = vpop.permute.xlu0 %2087  ;;  %v2194_v54 = vsel %vm1755_vm10, %v2178_v58, %v2043_v17  ;;  %v1907_v24 = vsel %vm5782_vm8, %v1890_v37, %v1636_v62  ;;  %vm5786_vm15 = vmmov %vm5782_vm8 }
 0x250   : >> { %v1674_v44 = vpop.permute.xlu1 %1673  ;;  %v2210_v19 = vsel %vm5778_vm12, %v2194_v54, %v2062_v61  ;;  %vm5784_vm10 = vcmask 785408   ;;  %v2230_v56 = vsel %vm1806_vm14, %v2214_v29, %v2088_v16  ;;  %v1878_v10 = vsel %vm5785_vm9, %v1861_v32, %v1605_v28 }
 0x251   : >> { %2715 = vst.msk [vmem:[%s5289_s7 + $0x30] sm:$0xff] %vm2708_vm5, %v2696_v46  ;;  %v2697_v35 = vadd.f32 %v5772_v42, %v2649_v14  ;;  %v2226_v4 = vsel %vm5779_vm6, %v2210_v19, %v2081_v50  ;;  %v1924_v17 = vsel %vm5784_vm10, %v1907_v24, %v1655_v59  ;;  %v1895_v61 = vsel %vm5786_vm15, %v1878_v10, %v1624_v11  ;;  %vm5788_vm12 = vmmov %vm5784_vm10 }
 0x252   : >> { %v2242_v3 = vsel %vm1806_vm14, %v2226_v4, %v2100_v13  ;;  %v1941_v21 = vsel %vm1925_vm11, %v1924_v17, %v1674_v44  ;;  %v1912_v50 = vsel %vm5788_vm12, %v1895_v61, %v1643_v51  ;;  %vm5789_vm14 = vcmask 982016   ;;  %vm5790_vm6 = vmmov %vm5787_vm2 }
 0x253   : >> { %2716 = vst.msk [vmem:[%s5289_s7 + $0x38] sm:$0xff] %vm2708_vm5, %v2697_v35  ;;  %v1662_v43 = vpop.permute.xlu0 %1661 }
 0x254   : >> { %v2119_v31 = vpop.permute.xlu1 %2118  ;;  %v1929_v28 = vsel %vm1925_vm11, %v1912_v50, %v1662_v43 }
 0x255   : >> { %v2258_v8 = vsel %vm1823_vm0, %v2242_v3, %v2119_v31 }
 0x257   : >> { %v2107_v25 = vpop.permute.xlu0 %2106 }
 0x258   : >> { %v1693_v39 = vpop.permute.xlu1 %1692  ;;  %v2246_v15 = vsel %vm1823_vm0, %v2230_v56, %v2107_v25  ;;  %vm5791_vm0 = vmmov %vm5789_vm14 }
 0x259   : >> { %v1958_v55 = vsel %vm5787_vm2, %v1941_v21, %v1693_v39 }
 0x25b   : >> { %v1681_v27 = vpop.permute.xlu0 %1680 }
 0x25c   : >> { %v2138_v0 = vpop.permute.xlu1 %2137  ;;  %v1946_v59 = vsel %vm5790_vm6, %v1929_v28, %v1681_v27 }
 0x25d   : >> { %v2274_v34 = vsel %vm1840_vm1, %v2258_v8, %v2138_v0 }
 0x25e   : >> { %2944 = vmatprep.mubr.msk.bf16.mxu1 %vm1857_vm3, %v2274_v34 }
 0x25f   : >> { %v2126_v63 = vpop.permute.xlu0 %2125 }
 0x260   : >> { %v2262_v62 = vsel %vm1840_vm1, %v2246_v15, %v2126_v63  ;;  %v1712_v5 = vpop.permute.xlu1 %1711 }
 0x261   : >> { %2938 = vmatprep.mubr.msk.bf16.mxu0 %vm1857_vm3, %v2262_v62  ;;  %v1982_v57 = vsel %vm5789_vm14, %v1958_v55, %v1712_v5 }
 0x262   : >> { %2676 = vmatmul.mubr.bf16.gmra.mrb[20].mxu1 %v1982_v57 }
 0x263   : >> { %v1700_v36 = vpop.permute.xlu0 %1699 }
 0x264   : >> { %v1964_v11 = vsel %vm5791_vm0, %v1946_v59, %v1700_v36 }
 0x265   : >> { %2628 = vmatmul.mubr.bf16.gmra.mrb[20].mxu0 %v1964_v11 }
 0x26b   : >> { %v2993_v13 = vpop.f32.mrb[12].mxu0 }
 0x26c   : >> { %v2477_v40 = vpop.f32.mrb[13].mxu0 }
 0x26d   : >> { %v2994_v41 = vpop.f32.mrb[14].mxu0 }
 0x26e   : >> { %v2480_v14 = vpop.f32.mrb[15].mxu0 }
 0x271   : >> { %v2653_v26 = vpop.f32.mrb[8].mxu1 }
 0x272   : >> { %v2654_v51 = vadd.f32 %v2653_v26, %v5214_v49  ;;  %v2655_v46 = vpop.f32.mrb[9].mxu1 }
 0x273   : >> { %v2656_v47 = vpop.f32.mrb[10].mxu1 }
 0x274   : >> { %v2698_v16 = vadd.f32 %v5772_v42, %v2654_v51  ;;  %v2657_v44 = vadd.f32 %v2656_v47, %v5221_v23  ;;  %v2658_v35 = vpop.f32.mrb[11].mxu1 }
 0x276   : >> { %2717 = vst.msk [vmem:[%s5289_s7 + $0x40] sm:$0xff] %vm2708_vm5, %v2698_v16  ;;  %v2699_v43 = vadd.f32 %v5772_v42, %v2657_v44 }
 0x278   : >> { %2718 = vst.msk [vmem:[%s5289_s7 + $0x48] sm:$0xff] %vm2708_vm5, %v2699_v43 }
 0x2a8   : >> { %v2661_v31 = vpop.f32.mrb[12].mxu1 }
 0x2a9   : >> { %v2662_v30 = vadd.f32 %v5212_v18, %v2661_v31  ;;  %v2663_v49 = vpop.f32.mrb[13].mxu1 }
 0x2aa   : >> { %v2664_v58 = vpop.f32.mrb[14].mxu1 }
 0x2ab   : >> { %v2700_v25 = vadd.f32 %v5772_v42, %v2662_v30  ;;  %v2665_v54 = vadd.f32 %v5216_v20, %v2664_v58  ;;  %v2666_v39 = vpop.f32.mrb[15].mxu1 }
 0x2ad   : >> { %2719 = vst.msk [vmem:[%s5289_s7 + $0x50] sm:$0xff] %vm2708_vm5, %v2700_v25  ;;  %v2701_v23 = vadd.f32 %v5772_v42, %v2665_v54 }
 0x2af   : >> { %2720 = vst.msk [vmem:[%s5289_s7 + $0x58] sm:$0xff] %vm2708_vm5, %v2701_v23 }
 0x2f5   : >> { %v2669_v22 = vpop.f32.mrb[16].mxu1 }
 0x2f6   : >> { %v2670_v48 = vadd.f32 %v2669_v22, %v2477_v40  ;;  %v2671_v33 = vpop.f32.mrb[17].mxu1 }
 0x2f7   : >> { %v2672_v18 = vpop.f32.mrb[18].mxu1 }
 0x2f8   : >> { %v2621_v19 = vpop.f32.mrb[16].mxu0  ;;  %v2702_v45 = vadd.f32 %v5772_v42, %v2670_v48  ;;  %v2673_v9 = vadd.f32 %v2672_v18, %v2480_v14  ;;  %v2674_v4 = vpop.f32.mrb[19].mxu1 }
 0x2f9   : >> { %v2622_v20 = vadd.f32 %v2621_v19, %v5024_v1  ;;  %v2623_v7 = vpop.f32.mrb[17].mxu0 }
 0x2fa   : >> { %2721 = vst.msk [vmem:[%s5289_s7 + $0x60] sm:$0xff] %vm2708_vm5, %v2702_v45  ;;  %v2624_v38 = vpop.f32.mrb[18].mxu0  ;;  %v2703_v3 = vadd.f32 %v5772_v42, %v2673_v9 }
 0x2fb   : >> { %v2690_v27 = vadd.f32 %v5772_v42, %v2622_v20  ;;  %v2625_v2 = vadd.f32 %v2624_v38, %v5034_v53  ;;  %v2626_v37 = vpop.f32.mrb[19].mxu0 }
 0x2fc   : >> { %2722 = vst.msk [vmem:[%s5289_s7 + $0x68] sm:$0xff] %vm2708_vm5, %v2703_v3 }
 0x2fd   : >> { %2709 = vst.msk [vmem:[%s5289_s7] sm:$0xff] %vm2708_vm5, %v2690_v27  ;;  %v2691_v6 = vadd.f32 %v5772_v42, %v2625_v2 }
 0x2ff   : >> { %2710 = vst.msk [vmem:[%s5289_s7 + $0x8] sm:$0xff] %vm2708_vm5, %v2691_v6 }
 0x335   : >> { %v2677_v1 = vpop.f32.mrb[20].mxu1 }
 0x336   : >> { %v2678_v8 = vadd.f32 %v2993_v13, %v2677_v1  ;;  %v2679_v0 = vpop.f32.mrb[21].mxu1 }
 0x337   : >> { %v2680_v12 = vpop.f32.mrb[22].mxu1 }
 0x338   : >> { %v2629_v24 = vpop.f32.mrb[20].mxu0  ;;  %v2704_v53 = vadd.f32 %v5772_v42, %v2678_v8  ;;  %v2681_v29 = vadd.f32 %v2994_v41, %v2680_v12  ;;  %v2682_v34 = vpop.f32.mrb[23].mxu1 }
 0x339   : >> { %v2630_v32 = vadd.f32 %v5018_v52, %v2629_v24  ;;  %v2631_v17 = vpop.f32.mrb[21].mxu0  ;;  %594 = sbr.rel (!%p592_p4) target bundleno = 87 (0x57), region = 84 }
 0x33a   : >> { %2723 = vst.msk [vmem:[%s5289_s7 + $0x70] sm:$0xff] %vm2708_vm5, %v2704_v53  ;;  %v2632_v56 = vpop.f32.mrb[22].mxu0  ;;  %v2705_v10 = vadd.f32 %v5772_v42, %v2681_v29 }
 0x33b   : >> { %v2692_v21 = vadd.f32 %v5772_v42, %v2630_v32  ;;  %v2633_v15 = vadd.f32 %v5028_v60, %v2632_v56  ;;  %v2634_v63 = vpop.f32.mrb[23].mxu0 }
 0x33c   : >> { %2724 = vst.msk [vmem:[%s5289_s7 + $0x78] sm:$0xff] %vm2708_vm5, %v2705_v10 }
 0x33d   : >> { %2711 = vst.msk [vmem:[%s5289_s7 + $0x10] sm:$0xff] %vm2708_vm5, %v2692_v21  ;;  %v2693_v61 = vadd.f32 %v5772_v42, %v2633_v15 }
 0x33f   : >> { %2712 = vst.msk [vmem:[%s5289_s7 + $0x18] sm:$0xff] %vm2708_vm5, %v2693_v61 }
 0x340 PF: > { %s15_s18 = sadd.s32 1, %s3093_s18  }
 0x341   : > { %p12_p5 = scmp.ge.s32.totalorder %s15_s18, 4  }
 0x343   :  { %14 = sbr.rel (!%p12_p5) target bundleno = 1 (0x1), region = 95 }

</bundles_post_ra>
